<compile_context>
chip_gen: v7x
topology: tpu7x:2x2x1
jax: 0.10.0
libtpu: 0.0.40
codegen_flags: <defaults>
</compile_context>

<pallas_src>
import functools
import math

import jax
import jax.numpy as jnp
from jax import lax
from jax.experimental import pallas as pl
from jax.experimental.pallas import tpu as pltpu

EPS = 1e-5                       # nn.LayerNorm default
_SQRT1_2 = 0.7071067811865476
_VMEM_LIMIT = 48 * 1024 * 1024   # safe on v7x (64 MiB/TC); plenty for v5e/v6e


def _round_up(x, m):
    return ((x + m - 1) // m) * m


def _row_tile(n, cap=512):
    """Largest 'nice' row tile that divides n (falls back to full n)."""
    if n <= cap:
        return n
    for d in (512, 256, 128, 64, 32, 16, 8):
        if d <= cap and n % d == 0:
            return d
    return n


def _gelu(y):
    # exact (erf-based) GELU, matching torch.nn.GELU() default
    return 0.5 * y * (1.0 + lax.erf(y * _SQRT1_2))


def _ln_f32(x, g, b):
    """Row LayerNorm in f32. x: (R, D), g/b: (1, D)."""
    mu = jnp.mean(x, axis=-1, keepdims=True)
    xc = x - mu
    var = jnp.mean(xc * xc, axis=-1, keepdims=True)
    return (xc * lax.rsqrt(var + EPS)) * g + b


# ----------------------------------------------------------------------------
# Stems: fused conv-matmul + LN + pos (img), LN + pos (txt)
# ----------------------------------------------------------------------------
def _img_stem_kernel(cols_ref, w_ref, b_ref, g_ref, bln_ref, pos_ref, o_ref):
    y = jnp.dot(cols_ref[0], w_ref[...],
                preferred_element_type=jnp.float32) + b_ref[...]
    y = _ln_f32(y, g_ref[...], bln_ref[...]) + pos_ref[...]
    o_ref[0] = y.astype(o_ref.dtype)


def img_stem(cols, conv_w, conv_b, g, b, pos):
    """cols: (N, HW, C*taps) bf16 -> (N, HW, D) bf16 (conv matmul + LN + pos add)."""
    N, HW, Kc = cols.shape
    D = conv_w.shape[1]
    tmi = _row_tile(HW)
    return pl.pallas_call(
        _img_stem_kernel,
        grid=(N, HW // tmi),
        in_specs=[pl.BlockSpec((1, tmi, Kc), lambda n, t: (n, t, 0)),
                  pl.BlockSpec((Kc, D), lambda n, t: (0, 0)),
                  pl.BlockSpec((1, D), lambda n, t: (0, 0)),
                  pl.BlockSpec((1, D), lambda n, t: (0, 0)),
                  pl.BlockSpec((1, D), lambda n, t: (0, 0)),
                  pl.BlockSpec((tmi, D), lambda n, t: (t, 0))],
        out_specs=pl.BlockSpec((1, tmi, D), lambda n, t: (n, t, 0)),
        out_shape=jax.ShapeDtypeStruct((N, HW, D), jnp.bfloat16),
        compiler_params=pltpu.CompilerParams(
            dimension_semantics=("parallel", "parallel"),
            vmem_limit_bytes=_VMEM_LIMIT),
    )(cols, conv_w.astype(jnp.bfloat16),
      conv_b.reshape(1, D).astype(jnp.float32),
      g.reshape(1, D).astype(jnp.float32),
      b.reshape(1, D).astype(jnp.float32),
      pos.astype(jnp.float32))


def _txt_stem_kernel(x_ref, g_ref, bln_ref, pos_ref, o_ref):
    y = _ln_f32(x_ref[0], g_ref[...], bln_ref[...]) + pos_ref[...]
    o_ref[0] = y.astype(o_ref.dtype)


def txt_stem(emb, g, b, pos):
    """emb: (N, L, D) f32 -> (N, L, D) bf16 (LN + pos add)."""
    N, L, D = emb.shape
    return pl.pallas_call(
        _txt_stem_kernel,
        grid=(N,),
        in_specs=[pl.BlockSpec((1, L, D), lambda n: (n, 0, 0)),
                  pl.BlockSpec((1, D), lambda n: (0, 0)),
                  pl.BlockSpec((1, D), lambda n: (0, 0)),
                  pl.BlockSpec((L, D), lambda n: (0, 0))],
        out_specs=pl.BlockSpec((1, L, D), lambda n: (n, 0, 0)),
        out_shape=jax.ShapeDtypeStruct((N, L, D), jnp.bfloat16),
        compiler_params=pltpu.CompilerParams(
            dimension_semantics=("parallel",),
            vmem_limit_bytes=_VMEM_LIMIT),
    )(emb.astype(jnp.float32),
      g.reshape(1, D).astype(jnp.float32),
      b.reshape(1, D).astype(jnp.float32),
      pos.astype(jnp.float32))


# ----------------------------------------------------------------------------
# Fused LN1 + QKV projection, producing head-major (N, 3*Hh, Tp, Dh) output
# ----------------------------------------------------------------------------
def _ln_qkv_kernel(x_ref, g_ref, bln_ref, w_ref, bq_ref, qkv_ref, xn_ref, *,
                   n_q_heads, scale):
    j = pl.program_id(2)                         # head/qkv column tile (innermost)

    @pl.when(j == 0)                             # LN computed once per x tile,
    def _():                                     # cached in VMEM scratch across j
        xn = _ln_f32(x_ref[0].astype(jnp.float32), g_ref[...], bln_ref[...])
        xn_ref[...] = xn.astype(jnp.bfloat16)

    y = jnp.dot(xn_ref[...], w_ref[0],
                preferred_element_type=jnp.float32) + bq_ref[0]
    # fold the attention 1/sqrt(Dh) scale into the Q heads here
    y = y * jnp.where(j < n_q_heads, jnp.float32(scale), jnp.float32(1.0))
    qkv_ref[0, 0] = y.astype(qkv_ref.dtype)


def ln_qkv(x, g, b, wq_r, bq_r, *, scale, tt):
    """x: (N, Tp, D) bf16; wq_r: (3*Hh, D, Dh); -> qkv (N, 3*Hh, Tp, Dh) bf16."""
    N, Tp, D = x.shape
    HH3, _, Dh = wq_r.shape
    return pl.pallas_call(
        functools.partial(_ln_qkv_kernel, n_q_heads=HH3 // 3, scale=scale),
        grid=(N, Tp // tt, HH3),
        in_specs=[
            pl.BlockSpec((1, tt, D), lambda n, t, j: (n, t, 0)),   # x DMA elided over j
            pl.BlockSpec((1, D), lambda n, t, j: (0, 0)),
            pl.BlockSpec((1, D), lambda n, t, j: (0, 0)),
            pl.BlockSpec((1, D, Dh), lambda n, t, j: (j, 0, 0)),
            pl.BlockSpec((1, 1, Dh), lambda n, t, j: (j, 0, 0)),
        ],
        out_specs=pl.BlockSpec((1, 1, tt, Dh), lambda n, t, j: (n, j, t, 0)),
        out_shape=jax.ShapeDtypeStruct((N, HH3, Tp, Dh), jnp.bfloat16),
        scratch_shapes=[pltpu.VMEM((tt, D), jnp.bfloat16)],
        compiler_params=pltpu.CompilerParams(
            dimension_semantics=("parallel", "parallel", "arbitrary"),
            vmem_limit_bytes=_VMEM_LIMIT),
    )(x, g.reshape(1, D).astype(jnp.float32),
      b.reshape(1, D).astype(jnp.float32), wq_r, bq_r)


# ----------------------------------------------------------------------------
# Flash-style causal attention on the head-major qkv tensor
# ----------------------------------------------------------------------------
def _flash_kernel(q_ref, k_ref, v_ref, o_ref, m_sc, l_sc, acc_sc, *, tq, tk):
    qi = pl.program_id(2)
    ki = pl.program_id(3)

    @pl.when(ki == 0)
    def _():
        m_sc[...] = jnp.full_like(m_sc, -jnp.inf)
        l_sc[...] = jnp.zeros_like(l_sc)
        acc_sc[...] = jnp.zeros_like(acc_sc)

    def step(mask_diag):
        q = q_ref[0, 0]                                   # (tq, Dh) bf16 (pre-scaled)
        k = k_ref[0, 0]
        v = v_ref[0, 0]
        s = lax.dot_general(q, k, (((1,), (1,)), ((), ())),
                            preferred_element_type=jnp.float32)       # (tq, tk)
        if mask_diag:                                     # only on the diagonal block
            row = lax.broadcasted_iota(jnp.int32, (tq, tk), 0)
            col = lax.broadcasted_iota(jnp.int32, (tq, tk), 1)
            s = jnp.where(col <= row, s, -1e30)           # also masks T-padding
        m_prev = m_sc[...]
        m_new = jnp.maximum(m_prev, s.max(axis=-1, keepdims=True))
        alpha = jnp.exp(m_prev - m_new)
        p = jnp.exp(s - m_new)
        l_sc[...] = alpha * l_sc[...] + p.sum(axis=-1, keepdims=True)
        acc_sc[...] = alpha * acc_sc[...] + jnp.dot(
            p.astype(v.dtype), v, preferred_element_type=jnp.float32)
        m_sc[...] = m_new

    @pl.when(ki < qi)           # strictly below the diagonal: no mask needed
    def _():
        step(False)

    @pl.when(ki == qi)          # diagonal block: apply the causal mask
    def _():
        step(True)
    # ki > qi: fully-masked future block — compute skipped, K/V DMA elided by clamp

    @pl.when(ki == pl.num_programs(3) - 1)
    def _():
        inv_l = pl.reciprocal(l_sc[...], approx=True)
        o_ref[0, 0] = (acc_sc[...] * inv_l).astype(o_ref.dtype)


def causal_attention(qkv, *, n_heads, tt):
    """qkv: (N, 3*Hh, Tp, Dh) bf16 -> o: (N, Hh, Tp, Dh) bf16."""
    N, HH3, Tp, Dh = qkv.shape
    Hh = n_heads
    nt = Tp // tt
    return pl.pallas_call(
        functools.partial(_flash_kernel, tq=tt, tk=tt),
        grid=(N, Hh, nt, nt),
        in_specs=[
            pl.BlockSpec((1, 1, tt, Dh), lambda n, h, qi, ki: (n, h, qi, 0)),
            # clamp so future (skipped) kv blocks re-use the previous index -> DMA elided
            pl.BlockSpec((1, 1, tt, Dh),
                         lambda n, h, qi, ki: (n, Hh + h, jnp.minimum(ki, qi), 0)),
            pl.BlockSpec((1, 1, tt, Dh),
                         lambda n, h, qi, ki: (n, 2 * Hh + h, jnp.minimum(ki, qi), 0)),
        ],
        out_specs=pl.BlockSpec((1, 1, tt, Dh), lambda n, h, qi, ki: (n, h, qi, 0)),
        out_shape=jax.ShapeDtypeStruct((N, Hh, Tp, Dh), jnp.bfloat16),
        scratch_shapes=[pltpu.VMEM((tt, 1), jnp.float32),
                        pltpu.VMEM((tt, 1), jnp.float32),
                        pltpu.VMEM((tt, Dh), jnp.float32)],
        compiler_params=pltpu.CompilerParams(
            dimension_semantics=("parallel", "parallel", "parallel", "arbitrary"),
            vmem_limit_bytes=_VMEM_LIMIT),
    )(qkv, qkv, qkv)


# ----------------------------------------------------------------------------
# Output projection (head axis = reduction) + fused residual add
# ----------------------------------------------------------------------------
def _attn_out_kernel(o_ref, w_ref, b_ref, res_ref, y_ref, acc_ref):
    h = pl.program_id(2)

    @pl.when(h == 0)
    def _():
        acc_ref[...] = jnp.zeros_like(acc_ref)

    acc_ref[...] += jnp.dot(o_ref[0, 0], w_ref[0],
                            preferred_element_type=jnp.float32)

    @pl.when(h == pl.num_programs(2) - 1)
    def _():
        y = acc_ref[...] + b_ref[...] + res_ref[0].astype(jnp.float32)
        y_ref[0] = y.astype(y_ref.dtype)


def attn_out_residual(o, wo_r, bo, res, *, tt):
    """o: (N, Hh, Tp, Dh); wo_r: (Hh, Dh, D); res/x: (N, Tp, D) bf16 -> (N, Tp, D) bf16."""
    N, Hh, Tp, Dh = o.shape
    D = wo_r.shape[-1]
    return pl.pallas_call(
        _attn_out_kernel,
        grid=(N, Tp // tt, Hh),
        in_specs=[
            pl.BlockSpec((1, 1, tt, Dh), lambda n, t, h: (n, h, t, 0)),
            pl.BlockSpec((1, Dh, D), lambda n, t, h: (h, 0, 0)),
            pl.BlockSpec((1, D), lambda n, t, h: (0, 0)),
            pl.BlockSpec((1, tt, D), lambda n, t, h: (n, t, 0)),
        ],
        out_specs=pl.BlockSpec((1, tt, D), lambda n, t, h: (n, t, 0)),
        out_shape=jax.ShapeDtypeStruct((N, Tp, D), jnp.bfloat16),
        scratch_shapes=[pltpu.VMEM((tt, D), jnp.float32)],
        compiler_params=pltpu.CompilerParams(
            dimension_semantics=("parallel", "parallel", "arbitrary"),
            vmem_limit_bytes=_VMEM_LIMIT),
    )(o, wo_r, bo.reshape(1, D).astype(jnp.float32), res)


# ----------------------------------------------------------------------------
# Fused LN2 + W1 + GELU (MLP up)
# ----------------------------------------------------------------------------
def _ln_mlp_up_kernel(x_ref, g_ref, bln_ref, w_ref, b_ref, h_ref, xn_ref):
    j = pl.program_id(2)

    @pl.when(j == 0)
    def _():
        xn = _ln_f32(x_ref[0].astype(jnp.float32), g_ref[...], bln_ref[...])
        xn_ref[...] = xn.astype(jnp.bfloat16)

    y = jnp.dot(xn_ref[...], w_ref[...],
                preferred_element_type=jnp.float32) + b_ref[...]
    h_ref[0] = _gelu(y).astype(h_ref.dtype)


def ln_mlp_up(x, g, b, w1, b1, *, tt, tn):
    """x: (N, Tp, D) bf16; w1: (D, Hp) -> h: (N, Tp, Hp) bf16."""
    N, Tp, D = x.shape
    Hp = w1.shape[1]
    return pl.pallas_call(
        _ln_mlp_up_kernel,
        grid=(N, Tp // tt, Hp // tn),
        in_specs=[
            pl.BlockSpec((1, tt, D), lambda n, t, j: (n, t, 0)),
            pl.BlockSpec((1, D), lambda n, t, j: (0, 0)),
            pl.BlockSpec((1, D), lambda n, t, j: (0, 0)),
            pl.BlockSpec((D, tn), lambda n, t, j: (0, j)),
            pl.BlockSpec((1, tn), lambda n, t, j: (0, j)),
        ],
        out_specs=pl.BlockSpec((1, tt, tn), lambda n, t, j: (n, t, j)),
        out_shape=jax.ShapeDtypeStruct((N, Tp, Hp), jnp.bfloat16),
        scratch_shapes=[pltpu.VMEM((tt, D), jnp.bfloat16)],
        compiler_params=pltpu.CompilerParams(
            dimension_semantics=("parallel", "parallel", "arbitrary"),
            vmem_limit_bytes=_VMEM_LIMIT),
    )(x, g.reshape(1, D).astype(jnp.float32),
      b.reshape(1, D).astype(jnp.float32),
      w1.astype(jnp.bfloat16), b1.reshape(1, Hp).astype(jnp.float32))


# ----------------------------------------------------------------------------
# MLP down (W2) + fused residual add + fused per-layer outer LayerNorm
# ----------------------------------------------------------------------------
def _mlp_down_ln_kernel(h_ref, w_ref, b_ref, res_ref, g_ref, bln_ref, y_ref, acc_ref):
    k = pl.program_id(2)

    @pl.when(k == 0)
    def _():
        acc_ref[...] = jnp.zeros_like(acc_ref)

    acc_ref[...] += jnp.dot(h_ref[0], w_ref[...],
                            preferred_element_type=jnp.float32)

    @pl.when(k == pl.num_programs(2) - 1)
    def _():
        y = acc_ref[...] + b_ref[...] + res_ref[0].astype(jnp.float32)
        y_ref[0] = _ln_f32(y, g_ref[...], bln_ref[...]).astype(y_ref.dtype)


def mlp_down_residual_ln(h, w2, b2, res, g, b, *, tt, tk):
    """h: (N, Tp, Hp); w2: (Hp, D); res: (N, Tp, D) -> LN(res + h@w2 + b2), bf16."""
    N, Tp, Hp = h.shape
    D = w2.shape[1]
    return pl.pallas_call(
        _mlp_down_ln_kernel,
        grid=(N, Tp // tt, Hp // tk),
        in_specs=[
            pl.BlockSpec((1, tt, tk), lambda n, t, k: (n, t, k)),
            pl.BlockSpec((tk, D), lambda n, t, k: (k, 0)),
            pl.BlockSpec((1, D), lambda n, t, k: (0, 0)),
            pl.BlockSpec((1, tt, D), lambda n, t, k: (n, t, 0)),
            pl.BlockSpec((1, D), lambda n, t, k: (0, 0)),
            pl.BlockSpec((1, D), lambda n, t, k: (0, 0)),
        ],
        out_specs=pl.BlockSpec((1, tt, D), lambda n, t, k: (n, t, 0)),
        out_shape=jax.ShapeDtypeStruct((N, Tp, D), jnp.bfloat16),
        scratch_shapes=[pltpu.VMEM((tt, D), jnp.float32)],
        compiler_params=pltpu.CompilerParams(
            dimension_semantics=("parallel", "parallel", "arbitrary"),
            vmem_limit_bytes=_VMEM_LIMIT),
    )(h, w2.astype(jnp.bfloat16), b2.reshape(1, D).astype(jnp.float32), res,
      g.reshape(1, D).astype(jnp.float32), b.reshape(1, D).astype(jnp.float32))


# ----------------------------------------------------------------------------
# Fused (img + txt) output heads — single lane-dense matmul over all tokens
# ----------------------------------------------------------------------------
def _head_kernel(x_ref, w_ref, b_ref, o_ref):
    o_ref[0] = (jnp.dot(x_ref[0], w_ref[...],
                        preferred_element_type=jnp.float32) + b_ref[...])


def out_heads(x, w, b, *, tt):
    """x: (N, Tp, D) bf16; w: (D, NHp) -> logits (N, Tp, NHp) f32."""
    N, Tp, D = x.shape
    NHp = w.shape[1]
    return pl.pallas_call(
        _head_kernel,
        grid=(N, Tp // tt),
        in_specs=[pl.BlockSpec((1, tt, D), lambda n, t: (n, t, 0)),
                  pl.BlockSpec((D, NHp), lambda n, t: (0, 0)),
                  pl.BlockSpec((1, NHp), lambda n, t: (0, 0))],
        out_specs=pl.BlockSpec((1, tt, NHp), lambda n, t: (n, t, 0)),
        out_shape=jax.ShapeDtypeStruct((N, Tp, NHp), jnp.float32),
        compiler_params=pltpu.CompilerParams(
            dimension_semantics=("parallel", "parallel"),
            vmem_limit_bytes=_VMEM_LIMIT),
    )(x, w.astype(jnp.bfloat16), b.reshape(1, NHp).astype(jnp.float32))


# ----------------------------------------------------------------------------
# Glue (plain JAX): causal im2col (non-masked taps only), params, forward
# ----------------------------------------------------------------------------
def _causal_taps(ksz):
    # type-A raster mask (mask_center=True): rows above center + left half of center row
    return [(dy, dx) for dy in range(ksz) for dx in range(ksz)
            if dy < ksz // 2 or (dy == ksz // 2 and dx < ksz // 2)]


def im2col_causal(x, ksz):
    """x: (N, C, H, W) -> (N, H*W, C*n_taps); only the non-masked type-A taps."""
    # TODO(synk): gather the taps inside a Pallas kernel (VMEM row band + static pl.ds
    # offsets) to avoid materializing the ~taps-amplified patch tensor in HBM.
    N, C, H, W = x.shape
    p = ksz // 2
    taps = _causal_taps(ksz)
    xp = jnp.pad(x, ((0, 0), (0, 0), (p, p), (p, p)))
    cols = [xp[:, :, dy:dy + H, dx:dx + W] for dy, dx in taps]
    pat = jnp.stack(cols, axis=2)            # (N, C, n_taps, H, W)
    pat = pat.transpose(0, 3, 4, 1, 2)       # (N, H, W, C, n_taps)
    return pat.reshape(N, H * W, C * len(taps))


def init_params(key, cfg):
    C, H, W = cfg["image_shape"]
    D = cfg["d_model"]
    ksz = cfg["kernel_size"]
    n_colors, n_classes = cfg["n_colors"], cfg["n_classes"]
    n_layers, max_len = cfg["n_layers"], cfg["max_len"]
    n_taps = len(_causal_taps(ksz))

    keys = iter(jax.random.split(key, 16 + 8 * n_layers))

    def rnd(shape, scale=0.02):
        return jax.random.normal(next(keys), shape, jnp.float32) * scale

    params = {
        # CausalConv2d(mask_center=True): only the non-masked taps are stored (rest are 0).
        "conv_w": rnd((C * n_taps, D)).astype(jnp.bfloat16),
        "conv_b": rnd((D,)),
        "ln_img_g": jnp.ones((D,), jnp.float32), "ln_img_b": jnp.zeros((D,), jnp.float32),
        "emb": rnd((n_classes, D), 1.0),
        "ln_txt_g": jnp.ones((D,), jnp.float32), "ln_txt_b": jnp.zeros((D,), jnp.float32),
        # nn.Parameter(torch.zeros(...)) positional embeddings
        "pos_img": jnp.zeros((H * W, D), jnp.float32),
        "pos_txt": jnp.zeros((max_len + 2, D), jnp.float32),
        "out_img_w": rnd((D, n_colors * C)).astype(jnp.bfloat16),
        "out_img_b": rnd((n_colors * C,)),
        "out_txt_w": rnd((D, n_classes)).astype(jnp.bfloat16),
        "out_txt_b": rnd((n_classes,)),
        "blocks": [],
    }
    for _ in range(n_layers):
        params["blocks"].append({
            "ln1_g": jnp.ones((D,), jnp.float32), "ln1_b": jnp.zeros((D,), jnp.float32),
            "w_qkv": rnd((D, 3 * D)).astype(jnp.bfloat16),    # fused Q|K|V
            "b_qkv": jnp.zeros((3 * D,), jnp.float32),
            "wo": rnd((D, D)).astype(jnp.bfloat16), "bo": jnp.zeros((D,), jnp.float32),
            "ln2_g": jnp.ones((D,), jnp.float32), "ln2_b": jnp.zeros((D,), jnp.float32),
            "w1": rnd((D, 4 * D)).astype(jnp.bfloat16), "b1": jnp.zeros((4 * D,), jnp.float32),
            "w2": rnd((4 * D, D)).astype(jnp.bfloat16), "b2": jnp.zeros((D,), jnp.float32),
            # the extra LayerNorm mgpt.py pairs with each block
            "lnf_g": jnp.ones((D,), jnp.float32), "lnf_b": jnp.zeros((D,), jnp.float32),
        })
    return params


def multimodal_gpt_forward(params, img, txt, cfg):
    """Mirrors MultimodalGPT.forward with pos=None, kv_cache=None, first key 'img'."""
    N, C, H, W = img.shape
    _, L = txt.shape
    D, Hh = cfg["d_model"], cfg["n_heads"]
    Dh = D // Hh
    n_colors, n_classes = cfg["n_colors"], cfg["n_classes"]
    HW = H * W
    T = HW + L
    scale = 1.0 / math.sqrt(Dh)

    # token tile / padded sequence length (padded ONCE; pads stay in the stream)
    if T <= 512:
        tt = _round_up(T, 8)
        Tp = tt
    else:
        tt = 512
        Tp = _round_up(T, 512)

    # hidden (4D) column/reduction tile
    H4 = 4 * D
    tn_h = H4 if H4 <= 512 else 512
    Hp = _round_up(H4, tn_h)

    # ---- input stems ----
    cols = im2col_causal(img.astype(jnp.bfloat16), cfg["kernel_size"])
    h_img = img_stem(cols, params["conv_w"], params["conv_b"],
                     params["ln_img_g"], params["ln_img_b"], params["pos_img"])
    emb = jnp.take(params["emb"], txt, axis=0)                  # glue: embedding gather
    h_txt = txt_stem(emb, params["ln_txt_g"], params["ln_txt_b"], params["pos_txt"][:L])

    x = jnp.concatenate([h_img, h_txt], axis=1)                 # (N, T, D) bf16
    if Tp != T:
        x = jnp.pad(x, ((0, 0), (0, Tp - T), (0, 0)))           # padded once, kept padded

    # ---- transformer ----
    for blk in params["blocks"]:
        # head-major weight layouts (trace-time reshapes of small weight tensors)
        wq_r = (blk["w_qkv"].reshape(D, 3, Hh, Dh).transpose(1, 2, 0, 3)
                .reshape(3 * Hh, D, Dh))
        bq_r = blk["b_qkv"].reshape(3 * Hh, 1, Dh).astype(jnp.float32)
        wo_r = blk["wo"].reshape(Hh, Dh, D)

        w1p, b1p, w2p = blk["w1"], blk["b1"], blk["w2"]
        if Hp != H4:                                            # pad hidden dim (safe: GELU(0)=0)
            w1p = jnp.pad(w1p, ((0, 0), (0, Hp - H4)))
            b1p = jnp.pad(b1p, ((0, Hp - H4),))
            w2p = jnp.pad(w2p, ((0, Hp - H4), (0, 0)))

        qkv = ln_qkv(x, blk["ln1_g"], blk["ln1_b"], wq_r, bq_r, scale=scale, tt=tt)
        o = causal_attention(qkv, n_heads=Hh, tt=tt)
        x = attn_out_residual(o, wo_r, blk["bo"], x, tt=tt)                # Wo + residual
        h = ln_mlp_up(x, blk["ln2_g"], blk["ln2_b"], w1p, b1p, tt=tt, tn=tn_h)
        x = mlp_down_residual_ln(h, w2p, blk["b2"], x,
                                 blk["lnf_g"], blk["lnf_b"], tt=tt, tk=tn_h)

    # ---- fused output heads (1x1 convs == per-token matmuls) ----
    nci = n_colors * C
    NH = nci + n_classes
    NHp = _round_up(NH, 128)
    w_head = jnp.concatenate([params["out_img_w"], params["out_txt_w"]], axis=1)
    b_head = jnp.concatenate([params["out_img_b"], params["out_txt_b"]], axis=0)
    if NHp != NH:
        w_head = jnp.pad(w_head, ((0, 0), (0, NHp - NH)))
        b_head = jnp.pad(b_head, ((0, NHp - NH),))
    logits = out_heads(x, w_head, b_head, tt=tt)                # (N, Tp, NHp) f32

    img_logits = logits[:, :HW, :nci]
    txt_logits = logits[:, HW:HW + L, nci:nci + n_classes]

    img_logits = img_logits.reshape(N, H, W, nci).transpose(0, 3, 1, 2)
    img_logits = img_logits.reshape(N, n_colors, C, H, W)       # == .view(n, -1, c, h, w)
    txt_logits = txt_logits.transpose(0, 2, 1)                  # (N, n_classes, L)
    return {"img": img_logits, "txt": txt_logits}


# ----------------------------------------------------------------------------
if __name__ == "__main__":
    cfg = dict(image_shape=(1, 8, 8), n_colors=4, n_classes=10, max_len=16,
               d_model=32, n_layers=2, n_heads=4, kernel_size=7)

    key = jax.random.PRNGKey(0)
    pkey, ikey, tkey = jax.random.split(key, 3)
    params = init_params(pkey, cfg)

    N = 2
    C, H, W = cfg["image_shape"]
    L = 8
    img = jax.random.randint(ikey, (N, C, H, W), 0, cfg["n_colors"]).astype(jnp.float32)
    txt = jax.random.randint(tkey, (N, L), 0, cfg["n_classes"])

    fwd = jax.jit(functools.partial(multimodal_gpt_forward, cfg=cfg))
    out = fwd(params, img, txt)
    jax.block_until_ready(out)

    assert out["img"].shape == (N, cfg["n_colors"], C, H, W), out["img"].shape
    assert out["txt"].shape == (N, cfg["n_classes"], L), out["txt"].shape
    assert bool(jnp.all(jnp.isfinite(out["img"]))) and bool(jnp.all(jnp.isfinite(out["txt"])))
    print("KERNEL_OK")
</pallas_src>

<mosaic_0001>
module attributes {stable_mosaic.version = 11 : i64} {
  func.func @_img_stem_kernel(%arg0: i32, %arg1: i32, %arg2: memref<1x64x24xbf16, #tpu.memory_space<vmem>>, %arg3: memref<24x32xbf16, #tpu.memory_space<vmem>>, %arg4: memref<1x32xf32, #tpu.memory_space<vmem>>, %arg5: memref<1x32xf32, #tpu.memory_space<vmem>>, %arg6: memref<1x32xf32, #tpu.memory_space<vmem>>, %arg7: memref<64x32xf32, #tpu.memory_space<vmem>>, %arg8: memref<1x64x32xbf16, #tpu.memory_space<vmem>>) attributes {dimension_semantics = [#tpu.dimension_semantics<parallel>, #tpu.dimension_semantics<parallel>], iteration_bounds = array<i64: 2, 1>, scalar_prefetch = 0 : i64, scratch_operands = 0 : i64, tpu.core_type = #tpu.core_type<tc>, window_params = [{transform_indices = @transform_0, window_bounds = array<i64: 1, 64, 24>}, {pipeline_mode = #tpu.pipeline_mode<synchronous>, transform_indices = @transform_1, window_bounds = array<i64: 24, 32>}, {pipeline_mode = #tpu.pipeline_mode<synchronous>, transform_indices = @transform_2, window_bounds = array<i64: 1, 32>}, {pipeline_mode = #tpu.pipeline_mode<synchronous>, transform_indices = @transform_3, window_bounds = array<i64: 1, 32>}, {pipeline_mode = #tpu.pipeline_mode<synchronous>, transform_indices = @transform_4, window_bounds = array<i64: 1, 32>}, {transform_indices = @transform_5, window_bounds = array<i64: 64, 32>}, {transform_indices = @transform_6, window_bounds = array<i64: 1, 64, 32>}]} {
    %c0 = arith.constant 0 : index
    %c0_0 = arith.constant 0 : index
    %c0_1 = arith.constant 0 : index
    %0 = vector.load %arg2[%c0, %c0_0, %c0_1] : memref<1x64x24xbf16, #tpu.memory_space<vmem>>, vector<1x64x24xbf16>
    %1 = vector.shape_cast %0 : vector<1x64x24xbf16> to vector<64x24xbf16>
    %c0_2 = arith.constant 0 : index
    %c0_3 = arith.constant 0 : index
    %2 = vector.load %arg3[%c0_2, %c0_3] : memref<24x32xbf16, #tpu.memory_space<vmem>>, vector<24x32xbf16>
    %cst = arith.constant dense<0.000000e+00> : vector<64x32xf32>
    %3 = tpu.matmul %1, %2, %cst {dimension_numbers = #tpu.dot_dimension_numbers<[1], [0], [0], [1], [0, 0, 1, 1], [], []>} : vector<64x24xbf16>, vector<24x32xbf16>, vector<64x32xf32> -> vector<64x32xf32>
    %c0_4 = arith.constant 0 : index
    %c0_5 = arith.constant 0 : index
    %4 = vector.load %arg4[%c0_4, %c0_5] : memref<1x32xf32, #tpu.memory_space<vmem>>, vector<1x32xf32>
    %5 = vector.broadcast %4 : vector<1x32xf32> to vector<64x32xf32>
    %6 = arith.addf %3, %5 : vector<64x32xf32>
    %c0_6 = arith.constant 0 : index
    %c0_7 = arith.constant 0 : index
    %7 = vector.load %arg5[%c0_6, %c0_7] : memref<1x32xf32, #tpu.memory_space<vmem>>, vector<1x32xf32>
    %c0_8 = arith.constant 0 : index
    %c0_9 = arith.constant 0 : index
    %8 = vector.load %arg6[%c0_8, %c0_9] : memref<1x32xf32, #tpu.memory_space<vmem>>, vector<1x32xf32>
    %cst_10 = arith.constant dense<0.000000e+00> : vector<64xf32>
    %9 = vector.multi_reduction <add>, %6, %cst_10 [1] : vector<64x32xf32> to vector<64xf32>
    %10 = vector.shape_cast %9 : vector<64xf32> to vector<64x1xf32>
    %cst_11 = arith.constant 3.200000e+01 : f32
    %11 = vector.broadcast %cst_11 : f32 to vector<64x1xf32>
    %12 = arith.divf %10, %11 : vector<64x1xf32>
    %13 = vector.broadcast %12 : vector<64x1xf32> to vector<64x32xf32>
    %14 = arith.subf %6, %13 : vector<64x32xf32>
    %15 = arith.mulf %14, %14 : vector<64x32xf32>
    %cst_12 = arith.constant dense<0.000000e+00> : vector<64xf32>
    %16 = vector.multi_reduction <add>, %15, %cst_12 [1] : vector<64x32xf32> to vector<64xf32>
    %17 = vector.shape_cast %16 : vector<64xf32> to vector<64x1xf32>
    %cst_13 = arith.constant 3.200000e+01 : f32
    %18 = vector.broadcast %cst_13 : f32 to vector<64x1xf32>
    %19 = arith.divf %17, %18 : vector<64x1xf32>
    %cst_14 = arith.constant 9.99999974E-6 : f32
    %20 = vector.broadcast %cst_14 : f32 to vector<64x1xf32>
    %21 = arith.addf %19, %20 : vector<64x1xf32>
    %22 = math.rsqrt %21 : vector<64x1xf32>
    %23 = vector.broadcast %22 : vector<64x1xf32> to vector<64x32xf32>
    %24 = arith.mulf %14, %23 : vector<64x32xf32>
    %25 = vector.broadcast %7 : vector<1x32xf32> to vector<64x32xf32>
    %26 = arith.mulf %24, %25 : vector<64x32xf32>
    %27 = vector.broadcast %8 : vector<1x32xf32> to vector<64x32xf32>
    %28 = arith.addf %26, %27 : vector<64x32xf32>
    %c0_15 = arith.constant 0 : index
    %c0_16 = arith.constant 0 : index
    %29 = vector.load %arg7[%c0_15, %c0_16] : memref<64x32xf32, #tpu.memory_space<vmem>>, vector<64x32xf32>
    %30 = arith.addf %28, %29 : vector<64x32xf32>
    %31 = arith.truncf %30 : vector<64x32xf32> to vector<64x32xbf16>
    %c0_17 = arith.constant 0 : index
    %c0_18 = arith.constant 0 : index
    %c0_19 = arith.constant 0 : index
    %32 = vector.load %arg8[%c0_17, %c0_18, %c0_19] : memref<1x64x32xbf16, #tpu.memory_space<vmem>>, vector<1x64x32xbf16>
    %33 = vector.shape_cast %32 : vector<1x64x32xbf16> to vector<64x32xbf16>
    %34 = vector.shape_cast %31 : vector<64x32xbf16> to vector<1x64x32xbf16>
    tpu.vector_store %arg8[%c0_17, %c0_18, %c0_19], %34 {strides = array<i32>} : memref<1x64x32xbf16, #tpu.memory_space<vmem>>, vector<1x64x32xbf16>,
    return
  }
  func.func @transform_0(%arg0: i32, %arg1: i32) -> (i32, i32, i32) {
    %c0_i32 = arith.constant 0 : i32
    %c0_i32_0 = arith.constant 0 : i32
    return %arg0, %arg1, %c0_i32 : i32, i32, i32
  }
  func.func @transform_1(%arg0: i32, %arg1: i32) -> (i32, i32) {
    %c0_i32 = arith.constant 0 : i32
    %c0_i32_0 = arith.constant 0 : i32
    %c0_i32_1 = arith.constant 0 : i32
    return %c0_i32, %c0_i32_0 : i32, i32
  }
  func.func @transform_2(%arg0: i32, %arg1: i32) -> (i32, i32) {
    %c0_i32 = arith.constant 0 : i32
    %c0_i32_0 = arith.constant 0 : i32
    %c0_i32_1 = arith.constant 0 : i32
    return %c0_i32, %c0_i32_0 : i32, i32
  }
  func.func @transform_3(%arg0: i32, %arg1: i32) -> (i32, i32) {
    %c0_i32 = arith.constant 0 : i32
    %c0_i32_0 = arith.constant 0 : i32
    %c0_i32_1 = arith.constant 0 : i32
    return %c0_i32, %c0_i32_0 : i32, i32
  }
  func.func @transform_4(%arg0: i32, %arg1: i32) -> (i32, i32) {
    %c0_i32 = arith.constant 0 : i32
    %c0_i32_0 = arith.constant 0 : i32
    %c0_i32_1 = arith.constant 0 : i32
    return %c0_i32, %c0_i32_0 : i32, i32
  }
  func.func @transform_5(%arg0: i32, %arg1: i32) -> (i32, i32) {
    %c0_i32 = arith.constant 0 : i32
    %c0_i32_0 = arith.constant 0 : i32
    return %arg1, %c0_i32 : i32, i32
  }
  func.func @transform_6(%arg0: i32, %arg1: i32) -> (i32, i32, i32) {
    %c0_i32 = arith.constant 0 : i32
    %c0_i32_0 = arith.constant 0 : i32
    return %arg0, %arg1, %c0_i32 : i32, i32, i32
  }
}

module attributes {stable_mosaic.version = 11 : i64} {
  func.func @_txt_stem_kernel(%arg0: i32, %arg1: memref<1x8x32xf32, #tpu.memory_space<vmem>>, %arg2: memref<1x32xf32, #tpu.memory_space<vmem>>, %arg3: memref<1x32xf32, #tpu.memory_space<vmem>>, %arg4: memref<8x32xf32, #tpu.memory_space<vmem>>, %arg5: memref<1x8x32xbf16, #tpu.memory_space<vmem>>) attributes {dimension_semantics = [#tpu.dimension_semantics<parallel>], iteration_bounds = array<i64: 2>, scalar_prefetch = 0 : i64, scratch_operands = 0 : i64, tpu.core_type = #tpu.core_type<tc>, window_params = [{transform_indices = @transform_0, window_bounds = array<i64: 1, 8, 32>}, {pipeline_mode = #tpu.pipeline_mode<synchronous>, transform_indices = @transform_1, window_bounds = array<i64: 1, 32>}, {pipeline_mode = #tpu.pipeline_mode<synchronous>, transform_indices = @transform_2, window_bounds = array<i64: 1, 32>}, {pipeline_mode = #tpu.pipeline_mode<synchronous>, transform_indices = @transform_3, window_bounds = array<i64: 8, 32>}, {transform_indices = @transform_4, window_bounds = array<i64: 1, 8, 32>}]} {
    %c0 = arith.constant 0 : index
    %c0_0 = arith.constant 0 : index
    %c0_1 = arith.constant 0 : index
    %0 = vector.load %arg1[%c0, %c0_0, %c0_1] : memref<1x8x32xf32, #tpu.memory_space<vmem>>, vector<1x8x32xf32>
    %1 = vector.shape_cast %0 : vector<1x8x32xf32> to vector<8x32xf32>
    %c0_2 = arith.constant 0 : index
    %c0_3 = arith.constant 0 : index
    %2 = vector.load %arg2[%c0_2, %c0_3] : memref<1x32xf32, #tpu.memory_space<vmem>>, vector<1x32xf32>
    %c0_4 = arith.constant 0 : index
    %c0_5 = arith.constant 0 : index
    %3 = vector.load %arg3[%c0_4, %c0_5] : memref<1x32xf32, #tpu.memory_space<vmem>>, vector<1x32xf32>
    %cst = arith.constant dense<0.000000e+00> : vector<8xf32>
    %4 = vector.multi_reduction <add>, %1, %cst [1] : vector<8x32xf32> to vector<8xf32>
    %5 = vector.shape_cast %4 : vector<8xf32> to vector<8x1xf32>
    %cst_6 = arith.constant 3.200000e+01 : f32
    %6 = vector.broadcast %cst_6 : f32 to vector<8x1xf32>
    %7 = arith.divf %5, %6 : vector<8x1xf32>
    %8 = vector.broadcast %7 : vector<8x1xf32> to vector<8x32xf32>
    %9 = arith.subf %1, %8 : vector<8x32xf32>
    %10 = arith.mulf %9, %9 : vector<8x32xf32>
    %cst_7 = arith.constant dense<0.000000e+00> : vector<8xf32>
    %11 = vector.multi_reduction <add>, %10, %cst_7 [1] : vector<8x32xf32> to vector<8xf32>
    %12 = vector.shape_cast %11 : vector<8xf32> to vector<8x1xf32>
    %cst_8 = arith.constant 3.200000e+01 : f32
    %13 = vector.broadcast %cst_8 : f32 to vector<8x1xf32>
    %14 = arith.divf %12, %13 : vector<8x1xf32>
    %cst_9 = arith.constant 9.99999974E-6 : f32
    %15 = vector.broadcast %cst_9 : f32 to vector<8x1xf32>
    %16 = arith.addf %14, %15 : vector<8x1xf32>
    %17 = math.rsqrt %16 : vector<8x1xf32>
    %18 = vector.broadcast %17 : vector<8x1xf32> to vector<8x32xf32>
    %19 = arith.mulf %9, %18 : vector<8x32xf32>
    %20 = vector.broadcast %2 : vector<1x32xf32> to vector<8x32xf32>
    %21 = arith.mulf %19, %20 : vector<8x32xf32>
    %22 = vector.broadcast %3 : vector<1x32xf32> to vector<8x32xf32>
    %23 = arith.addf %21, %22 : vector<8x32xf32>
    %c0_10 = arith.constant 0 : index
    %c0_11 = arith.constant 0 : index
    %24 = vector.load %arg4[%c0_10, %c0_11] : memref<8x32xf32, #tpu.memory_space<vmem>>, vector<8x32xf32>
    %25 = arith.addf %23, %24 : vector<8x32xf32>
    %26 = arith.truncf %25 : vector<8x32xf32> to vector<8x32xbf16>
    %c0_12 = arith.constant 0 : index
    %c0_13 = arith.constant 0 : index
    %c0_14 = arith.constant 0 : index
    %27 = vector.load %arg5[%c0_12, %c0_13, %c0_14] : memref<1x8x32xbf16, #tpu.memory_space<vmem>>, vector<1x8x32xbf16>
    %28 = vector.shape_cast %27 : vector<1x8x32xbf16> to vector<8x32xbf16>
    %29 = vector.shape_cast %26 : vector<8x32xbf16> to vector<1x8x32xbf16>
    tpu.vector_store %arg5[%c0_12, %c0_13, %c0_14], %29 {strides = array<i32>} : memref<1x8x32xbf16, #tpu.memory_space<vmem>>, vector<1x8x32xbf16>,
    return
  }
  func.func @transform_0(%arg0: i32) -> (i32, i32, i32) {
    %c0_i32 = arith.constant 0 : i32
    %c0_i32_0 = arith.constant 0 : i32
    %c0_i32_1 = arith.constant 0 : i32
    return %arg0, %c0_i32, %c0_i32_0 : i32, i32, i32
  }
  func.func @transform_1(%arg0: i32) -> (i32, i32) {
    %c0_i32 = arith.constant 0 : i32
    %c0_i32_0 = arith.constant 0 : i32
    %c0_i32_1 = arith.constant 0 : i32
    return %c0_i32, %c0_i32_0 : i32, i32
  }
  func.func @transform_2(%arg0: i32) -> (i32, i32) {
    %c0_i32 = arith.constant 0 : i32
    %c0_i32_0 = arith.constant 0 : i32
    %c0_i32_1 = arith.constant 0 : i32
    return %c0_i32, %c0_i32_0 : i32, i32
  }
  func.func @transform_3(%arg0: i32) -> (i32, i32) {
    %c0_i32 = arith.constant 0 : i32
    %c0_i32_0 = arith.constant 0 : i32
    %c0_i32_1 = arith.constant 0 : i32
    return %c0_i32, %c0_i32_0 : i32, i32
  }
  func.func @transform_4(%arg0: i32) -> (i32, i32, i32) {
    %c0_i32 = arith.constant 0 : i32
    %c0_i32_0 = arith.constant 0 : i32
    %c0_i32_1 = arith.constant 0 : i32
    return %arg0, %c0_i32, %c0_i32_0 : i32, i32, i32
  }
}

module attributes {stable_mosaic.version = 11 : i64} {
  func.func @_ln_qkv_kernel(%arg0: i32, %arg1: i32, %arg2: i32, %arg3: memref<1x72x32xbf16, #tpu.memory_space<vmem>>, %arg4: memref<1x32xf32, #tpu.memory_space<vmem>>, %arg5: memref<1x32xf32, #tpu.memory_space<vmem>>, %arg6: memref<1x32x8xbf16, #tpu.memory_space<vmem>>, %arg7: memref<1x1x8xf32, #tpu.memory_space<vmem>>, %arg8: memref<1x1x72x8xbf16, #tpu.memory_space<vmem>>, %arg9: memref<72x32xbf16, #tpu.memory_space<vmem>>) attributes {dimension_semantics = [#tpu.dimension_semantics<parallel>, #tpu.dimension_semantics<parallel>, #tpu.dimension_semantics<arbitrary>], iteration_bounds = array<i64: 2, 1, 12>, scalar_prefetch = 0 : i64, scratch_operands = 1 : i64, tpu.core_type = #tpu.core_type<tc>, window_params = [{transform_indices = @transform_0, window_bounds = array<i64: 1, 72, 32>}, {pipeline_mode = #tpu.pipeline_mode<synchronous>, transform_indices = @transform_1, window_bounds = array<i64: 1, 32>}, {pipeline_mode = #tpu.pipeline_mode<synchronous>, transform_indices = @transform_2, window_bounds = array<i64: 1, 32>}, {transform_indices = @transform_3, window_bounds = array<i64: 1, 32, 8>}, {transform_indices = @transform_4, window_bounds = array<i64: 1, 1, 8>}, {transform_indices = @transform_5, window_bounds = array<i64: 1, 1, 72, 8>}]} {
    %c0_i32 = arith.constant 0 : i32
    %0 = arith.cmpi eq, %arg2, %c0_i32 : i32
    %1 = arith.extui %0 : i1 to i32
    %c0_i32_0 = arith.constant 0 : i32
    %2 = arith.cmpi ne, %1, %c0_i32_0 : i32
    scf.if %2 {
      %c0_14 = arith.constant 0 : index
      %c0_15 = arith.constant 0 : index
      %c0_16 = arith.constant 0 : index
      %19 = vector.load %arg3[%c0_14, %c0_15, %c0_16] : memref<1x72x32xbf16, #tpu.memory_space<vmem>>, vector<1x72x32xbf16>
      %20 = vector.shape_cast %19 : vector<1x72x32xbf16> to vector<72x32xbf16>
      %21 = arith.extf %20 : vector<72x32xbf16> to vector<72x32xf32>
      %c0_17 = arith.constant 0 : index
      %c0_18 = arith.constant 0 : index
      %22 = vector.load %arg4[%c0_17, %c0_18] : memref<1x32xf32, #tpu.memory_space<vmem>>, vector<1x32xf32>
      %c0_19 = arith.constant 0 : index
      %c0_20 = arith.constant 0 : index
      %23 = vector.load %arg5[%c0_19, %c0_20] : memref<1x32xf32, #tpu.memory_space<vmem>>, vector<1x32xf32>
      %cst_21 = arith.constant dense<0.000000e+00> : vector<72xf32>
      %24 = vector.multi_reduction <add>, %21, %cst_21 [1] : vector<72x32xf32> to vector<72xf32>
      %25 = vector.shape_cast %24 : vector<72xf32> to vector<72x1xf32>
      %cst_22 = arith.constant 3.200000e+01 : f32
      %26 = vector.broadcast %cst_22 : f32 to vector<72x1xf32>
      %27 = arith.divf %25, %26 : vector<72x1xf32>
      %28 = vector.broadcast %27 : vector<72x1xf32> to vector<72x32xf32>
      %29 = arith.subf %21, %28 : vector<72x32xf32>
      %30 = arith.mulf %29, %29 : vector<72x32xf32>
      %cst_23 = arith.constant dense<0.000000e+00> : vector<72xf32>
      %31 = vector.multi_reduction <add>, %30, %cst_23 [1] : vector<72x32xf32> to vector<72xf32>
      %32 = vector.shape_cast %31 : vector<72xf32> to vector<72x1xf32>
      %cst_24 = arith.constant 3.200000e+01 : f32
      %33 = vector.broadcast %cst_24 : f32 to vector<72x1xf32>
      %34 = arith.divf %32, %33 : vector<72x1xf32>
      %cst_25 = arith.constant 9.99999974E-6 : f32
      %35 = vector.broadcast %cst_25 : f32 to vector<72x1xf32>
      %36 = arith.addf %34, %35 : vector<72x1xf32>
      %37 = math.rsqrt %36 : vector<72x1xf32>
      %38 = vector.broadcast %37 : vector<72x1xf32> to vector<72x32xf32>
      %39 = arith.mulf %29, %38 : vector<72x32xf32>
      %40 = vector.broadcast %22 : vector<1x32xf32> to vector<72x32xf32>
      %41 = arith.mulf %39, %40 : vector<72x32xf32>
      %42 = vector.broadcast %23 : vector<1x32xf32> to vector<72x32xf32>
      %43 = arith.addf %41, %42 : vector<72x32xf32>
      %44 = arith.truncf %43 : vector<72x32xf32> to vector<72x32xbf16>
      %c0_26 = arith.constant 0 : index
      %c0_27 = arith.constant 0 : index
      %45 = vector.load %arg9[%c0_26, %c0_27] : memref<72x32xbf16, #tpu.memory_space<vmem>>, vector<72x32xbf16>
      tpu.vector_store %arg9[%c0_26, %c0_27], %44 {strides = array<i32>} : memref<72x32xbf16, #tpu.memory_space<vmem>>, vector<72x32xbf16>,
    } else {
    }
    %c0 = arith.constant 0 : index
    %c0_1 = arith.constant 0 : index
    %3 = vector.load %arg9[%c0, %c0_1] : memref<72x32xbf16, #tpu.memory_space<vmem>>, vector<72x32xbf16>
    %c0_2 = arith.constant 0 : index
    %c0_3 = arith.constant 0 : index
    %c0_4 = arith.constant 0 : index
    %4 = vector.load %arg6[%c0_2, %c0_3, %c0_4] : memref<1x32x8xbf16, #tpu.memory_space<vmem>>, vector<1x32x8xbf16>
    %5 = vector.shape_cast %4 : vector<1x32x8xbf16> to vector<32x8xbf16>
    %cst = arith.constant dense<0.000000e+00> : vector<72x8xf32>
    %6 = tpu.matmul %3, %5, %cst {dimension_numbers = #tpu.dot_dimension_numbers<[1], [0], [0], [1], [0, 0, 1, 1], [], []>} : vector<72x32xbf16>, vector<32x8xbf16>, vector<72x8xf32> -> vector<72x8xf32>
    %c0_5 = arith.constant 0 : index
    %c0_6 = arith.constant 0 : index
    %c0_7 = arith.constant 0 : index
    %7 = vector.load %arg7[%c0_5, %c0_6, %c0_7] : memref<1x1x8xf32, #tpu.memory_space<vmem>>, vector<1x1x8xf32>
    %8 = vector.shape_cast %7 : vector<1x1x8xf32> to vector<1x8xf32>
    %9 = vector.broadcast %8 : vector<1x8xf32> to vector<72x8xf32>
    %10 = arith.addf %6, %9 : vector<72x8xf32>
    %c4_i32 = arith.constant 4 : i32
    %11 = arith.cmpi slt, %arg2, %c4_i32 : i32
    %cst_8 = arith.constant 0.353553385 : f32
    %cst_9 = arith.constant 1.000000e+00 : f32
    %12 = arith.select %11, %cst_8, %cst_9 : f32
    %13 = vector.broadcast %12 : f32 to vector<72x8xf32>
    %14 = arith.mulf %10, %13 : vector<72x8xf32>
    %15 = arith.truncf %14 : vector<72x8xf32> to vector<72x8xbf16>
    %c0_10 = arith.constant 0 : index
    %c0_11 = arith.constant 0 : index
    %c0_12 = arith.constant 0 : index
    %c0_13 = arith.constant 0 : index
    %16 = vector.load %arg8[%c0_10, %c0_11, %c0_12, %c0_13] : memref<1x1x72x8xbf16, #tpu.memory_space<vmem>>, vector<1x1x72x8xbf16>
    %17 = vector.shape_cast %16 : vector<1x1x72x8xbf16> to vector<72x8xbf16>
    %18 = vector.shape_cast %15 : vector<72x8xbf16> to vector<1x1x72x8xbf16>
    tpu.vector_store %arg8[%c0_10, %c0_11, %c0_12, %c0_13], %18 {strides = array<i32>} : memref<1x1x72x8xbf16, #tpu.memory_space<vmem>>, vector<1x1x72x8xbf16>,
    return
  }
  func.func @transform_0(%arg0: i32, %arg1: i32, %arg2: i32) -> (i32, i32, i32) {
    %c0_i32 = arith.constant 0 : i32
    %c0_i32_0 = arith.constant 0 : i32
    return %arg0, %arg1, %c0_i32 : i32, i32, i32
  }
  func.func @transform_1(%arg0: i32, %arg1: i32, %arg2: i32) -> (i32, i32) {
    %c0_i32 = arith.constant 0 : i32
    %c0_i32_0 = arith.constant 0 : i32
    %c0_i32_1 = arith.constant 0 : i32
    return %c0_i32, %c0_i32_0 : i32, i32
  }
  func.func @transform_2(%arg0: i32, %arg1: i32, %arg2: i32) -> (i32, i32) {
    %c0_i32 = arith.constant 0 : i32
    %c0_i32_0 = arith.constant 0 : i32
    %c0_i32_1 = arith.constant 0 : i32
    return %c0_i32, %c0_i32_0 : i32, i32
  }
  func.func @transform_3(%arg0: i32, %arg1: i32, %arg2: i32) -> (i32, i32, i32) {
    %c0_i32 = arith.constant 0 : i32
    %c0_i32_0 = arith.constant 0 : i32
    %c0_i32_1 = arith.constant 0 : i32
    return %arg2, %c0_i32, %c0_i32_0 : i32, i32, i32
  }
  func.func @transform_4(%arg0: i32, %arg1: i32, %arg2: i32) -> (i32, i32, i32) {
    %c0_i32 = arith.constant 0 : i32
    %c0_i32_0 = arith.constant 0 : i32
    %c0_i32_1 = arith.constant 0 : i32
    return %arg2, %c0_i32, %c0_i32_0 : i32, i32, i32
  }
  func.func @transform_5(%arg0: i32, %arg1: i32, %arg2: i32) -> (i32, i32, i32, i32) {
    %c0_i32 = arith.constant 0 : i32
    %c0_i32_0 = arith.constant 0 : i32
    return %arg0, %arg2, %arg1, %c0_i32 : i32, i32, i32, i32
  }
}

module attributes {stable_mosaic.version = 11 : i64} {
  func.func @_flash_kernel(%arg0: i32, %arg1: i32, %arg2: i32, %arg3: i32, %arg4: memref<1x1x72x8xbf16, #tpu.memory_space<vmem>>, %arg5: memref<1x1x72x8xbf16, #tpu.memory_space<vmem>>, %arg6: memref<1x1x72x8xbf16, #tpu.memory_space<vmem>>, %arg7: memref<1x1x72x8xbf16, #tpu.memory_space<vmem>>, %arg8: memref<72x1xf32, #tpu.memory_space<vmem>>, %arg9: memref<72x1xf32, #tpu.memory_space<vmem>>, %arg10: memref<72x8xf32, #tpu.memory_space<vmem>>) attributes {dimension_semantics = [#tpu.dimension_semantics<parallel>, #tpu.dimension_semantics<parallel>, #tpu.dimension_semantics<parallel>, #tpu.dimension_semantics<arbitrary>], iteration_bounds = array<i64: 2, 4, 1, 1>, scalar_prefetch = 0 : i64, scratch_operands = 3 : i64, tpu.core_type = #tpu.core_type<tc>, window_params = [{transform_indices = @transform_0, window_bounds = array<i64: 1, 1, 72, 8>}, {transform_indices = @transform_1, window_bounds = array<i64: 1, 1, 72, 8>}, {transform_indices = @transform_2, window_bounds = array<i64: 1, 1, 72, 8>}, {transform_indices = @transform_3, window_bounds = array<i64: 1, 1, 72, 8>}]} {
    %c0_i32 = arith.constant 0 : i32
    %0 = arith.cmpi eq, %arg3, %c0_i32 : i32
    %1 = arith.extui %0 : i1 to i32
    %c0_i32_0 = arith.constant 0 : i32
    %2 = arith.cmpi ne, %1, %c0_i32_0 : i32
    scf.if %2 {
      %cst = arith.constant 0xFF800000 : f32
      %12 = vector.broadcast %cst : f32 to vector<72x1xf32>
      %c0 = arith.constant 0 : index
      %c0_5 = arith.constant 0 : index
      %13 = vector.load %arg8[%c0, %c0_5] : memref<72x1xf32, #tpu.memory_space<vmem>>, vector<72x1xf32>
      tpu.vector_store %arg8[%c0, %c0_5], %12 {strides = array<i32>} : memref<72x1xf32, #tpu.memory_space<vmem>>, vector<72x1xf32>,
      %cst_6 = arith.constant 0.000000e+00 : f32
      %14 = vector.broadcast %cst_6 : f32 to vector<72x1xf32>
      %c0_7 = arith.constant 0 : index
      %c0_8 = arith.constant 0 : index
      %15 = vector.load %arg9[%c0_7, %c0_8] : memref<72x1xf32, #tpu.memory_space<vmem>>, vector<72x1xf32>
      tpu.vector_store %arg9[%c0_7, %c0_8], %14 {strides = array<i32>} : memref<72x1xf32, #tpu.memory_space<vmem>>, vector<72x1xf32>,
      %cst_9 = arith.constant 0.000000e+00 : f32
      %16 = vector.broadcast %cst_9 : f32 to vector<72x8xf32>
      %c0_10 = arith.constant 0 : index
      %c0_11 = arith.constant 0 : index
      %17 = vector.load %arg10[%c0_10, %c0_11] : memref<72x8xf32, #tpu.memory_space<vmem>>, vector<72x8xf32>
      tpu.vector_store %arg10[%c0_10, %c0_11], %16 {strides = array<i32>} : memref<72x8xf32, #tpu.memory_space<vmem>>, vector<72x8xf32>,
    } else {
    }
    %3 = arith.cmpi slt, %arg3, %arg2 : i32
    %4 = arith.extui %3 : i1 to i32
    %c0_i32_1 = arith.constant 0 : i32
    %5 = arith.cmpi ne, %4, %c0_i32_1 : i32
    scf.if %5 {
      %c0 = arith.constant 0 : index
      %c0_5 = arith.constant 0 : index
      %c0_6 = arith.constant 0 : index
      %c0_7 = arith.constant 0 : index
      %12 = vector.load %arg4[%c0, %c0_5, %c0_6, %c0_7] : memref<1x1x72x8xbf16, #tpu.memory_space<vmem>>, vector<1x1x72x8xbf16>
      %13 = vector.shape_cast %12 : vector<1x1x72x8xbf16> to vector<72x8xbf16>
      %c0_8 = arith.constant 0 : index
      %c0_9 = arith.constant 0 : index
      %c0_10 = arith.constant 0 : index
      %c0_11 = arith.constant 0 : index
      %14 = vector.load %arg5[%c0_8, %c0_9, %c0_10, %c0_11] : memref<1x1x72x8xbf16, #tpu.memory_space<vmem>>, vector<1x1x72x8xbf16>
      %15 = vector.shape_cast %14 : vector<1x1x72x8xbf16> to vector<72x8xbf16>
      %c0_12 = arith.constant 0 : index
      %c0_13 = arith.constant 0 : index
      %c0_14 = arith.constant 0 : index
      %c0_15 = arith.constant 0 : index
      %16 = vector.load %arg6[%c0_12, %c0_13, %c0_14, %c0_15] : memref<1x1x72x8xbf16, #tpu.memory_space<vmem>>, vector<1x1x72x8xbf16>
      %17 = vector.shape_cast %16 : vector<1x1x72x8xbf16> to vector<72x8xbf16>
      %cst = arith.constant dense<0.000000e+00> : vector<72x72xf32>
      %18 = tpu.matmul %13, %15, %cst {dimension_numbers = #tpu.dot_dimension_numbers<[1], [1], [0], [0], [0, 0, 1, 0], [], []>} : vector<72x8xbf16>, vector<72x8xbf16>, vector<72x72xf32> -> vector<72x72xf32>
      %c0_16 = arith.constant 0 : index
      %c0_17 = arith.constant 0 : index
      %19 = vector.load %arg8[%c0_16, %c0_17] : memref<72x1xf32, #tpu.memory_space<vmem>>, vector<72x1xf32>
      %cst_18 = arith.constant dense<0xFF800000> : vector<72xf32>
      %20 = vector.multi_reduction <maximumf>, %18, %cst_18 [1] : vector<72x72xf32> to vector<72xf32>
      %21 = vector.shape_cast %20 : vector<72xf32> to vector<72x1xf32>
      %22 = arith.maximumf %19, %21 : vector<72x1xf32>
      %23 = arith.subf %19, %22 : vector<72x1xf32>
      %24 = math.exp %23 : vector<72x1xf32>
      %25 = vector.broadcast %22 : vector<72x1xf32> to vector<72x72xf32>
      %26 = arith.subf %18, %25 : vector<72x72xf32>
      %27 = math.exp %26 : vector<72x72xf32>
      %c0_19 = arith.constant 0 : index
      %c0_20 = arith.constant 0 : index
      %28 = vector.load %arg9[%c0_19, %c0_20] : memref<72x1xf32, #tpu.memory_space<vmem>>, vector<72x1xf32>
      %29 = arith.mulf %24, %28 : vector<72x1xf32>
      %cst_21 = arith.constant dense<0.000000e+00> : vector<72xf32>
      %30 = vector.multi_reduction <add>, %27, %cst_21 [1] : vector<72x72xf32> to vector<72xf32>
      %31 = vector.shape_cast %30 : vector<72xf32> to vector<72x1xf32>
      %32 = arith.addf %29, %31 : vector<72x1xf32>
      %c0_22 = arith.constant 0 : index
      %c0_23 = arith.constant 0 : index
      %33 = vector.load %arg9[%c0_22, %c0_23] : memref<72x1xf32, #tpu.memory_space<vmem>>, vector<72x1xf32>
      tpu.vector_store %arg9[%c0_22, %c0_23], %32 {strides = array<i32>} : memref<72x1xf32, #tpu.memory_space<vmem>>, vector<72x1xf32>,
      %c0_24 = arith.constant 0 : index
      %c0_25 = arith.constant 0 : index
      %34 = vector.load %arg10[%c0_24, %c0_25] : memref<72x8xf32, #tpu.memory_space<vmem>>, vector<72x8xf32>
      %35 = vector.broadcast %24 : vector<72x1xf32> to vector<72x8xf32>
      %36 = arith.mulf %35, %34 : vector<72x8xf32>
      %37 = arith.truncf %27 : vector<72x72xf32> to vector<72x72xbf16>
      %cst_26 = arith.constant dense<0.000000e+00> : vector<72x8xf32>
      %38 = tpu.matmul %37, %17, %cst_26 {dimension_numbers = #tpu.dot_dimension_numbers<[1], [0], [0], [1], [0, 0, 1, 1], [], []>} : vector<72x72xbf16>, vector<72x8xbf16>, vector<72x8xf32> -> vector<72x8xf32>
      %39 = arith.addf %36, %38 : vector<72x8xf32>
      %c0_27 = arith.constant 0 : index
      %c0_28 = arith.constant 0 : index
      %40 = vector.load %arg10[%c0_27, %c0_28] : memref<72x8xf32, #tpu.memory_space<vmem>>, vector<72x8xf32>
      tpu.vector_store %arg10[%c0_27, %c0_28], %39 {strides = array<i32>} : memref<72x8xf32, #tpu.memory_space<vmem>>, vector<72x8xf32>,
      %c0_29 = arith.constant 0 : index
      %c0_30 = arith.constant 0 : index
      %41 = vector.load %arg8[%c0_29, %c0_30] : memref<72x1xf32, #tpu.memory_space<vmem>>, vector<72x1xf32>
      tpu.vector_store %arg8[%c0_29, %c0_30], %22 {strides = array<i32>} : memref<72x1xf32, #tpu.memory_space<vmem>>, vector<72x1xf32>,
    } else {
    }
    %6 = arith.cmpi eq, %arg3, %arg2 : i32
    %7 = arith.extui %6 : i1 to i32
    %c0_i32_2 = arith.constant 0 : i32
    %8 = arith.cmpi ne, %7, %c0_i32_2 : i32
    scf.if %8 {
      %c0 = arith.constant 0 : index
      %c0_5 = arith.constant 0 : index
      %c0_6 = arith.constant 0 : index
      %c0_7 = arith.constant 0 : index
      %12 = vector.load %arg4[%c0, %c0_5, %c0_6, %c0_7] : memref<1x1x72x8xbf16, #tpu.memory_space<vmem>>, vector<1x1x72x8xbf16>
      %13 = vector.shape_cast %12 : vector<1x1x72x8xbf16> to vector<72x8xbf16>
      %c0_8 = arith.constant 0 : index
      %c0_9 = arith.constant 0 : index
      %c0_10 = arith.constant 0 : index
      %c0_11 = arith.constant 0 : index
      %14 = vector.load %arg5[%c0_8, %c0_9, %c0_10, %c0_11] : memref<1x1x72x8xbf16, #tpu.memory_space<vmem>>, vector<1x1x72x8xbf16>
      %15 = vector.shape_cast %14 : vector<1x1x72x8xbf16> to vector<72x8xbf16>
      %c0_12 = arith.constant 0 : index
      %c0_13 = arith.constant 0 : index
      %c0_14 = arith.constant 0 : index
      %c0_15 = arith.constant 0 : index
      %16 = vector.load %arg6[%c0_12, %c0_13, %c0_14, %c0_15] : memref<1x1x72x8xbf16, #tpu.memory_space<vmem>>, vector<1x1x72x8xbf16>
      %17 = vector.shape_cast %16 : vector<1x1x72x8xbf16> to vector<72x8xbf16>
      %cst = arith.constant dense<0.000000e+00> : vector<72x72xf32>
      %18 = tpu.matmul %13, %15, %cst {dimension_numbers = #tpu.dot_dimension_numbers<[1], [1], [0], [0], [0, 0, 1, 0], [], []>} : vector<72x8xbf16>, vector<72x8xbf16>, vector<72x72xf32> -> vector<72x72xf32>
      %19 = tpu.iota {dimensions = array<i32: 0>} : vector<72x72xi32>
      %20 = tpu.iota {dimensions = array<i32: 1>} : vector<72x72xi32>
      %21 = arith.cmpi sle, %20, %19 : vector<72x72xi32>
      %cst_16 = arith.constant -1.000000e+30 : f32
      %22 = vector.broadcast %cst_16 : f32 to vector<72x72xf32>
      %23 = arith.select %21, %18, %22 : vector<72x72xi1>, vector<72x72xf32>
      %c0_17 = arith.constant 0 : index
      %c0_18 = arith.constant 0 : index
      %24 = vector.load %arg8[%c0_17, %c0_18] : memref<72x1xf32, #tpu.memory_space<vmem>>, vector<72x1xf32>
      %cst_19 = arith.constant dense<0xFF800000> : vector<72xf32>
      %25 = vector.multi_reduction <maximumf>, %23, %cst_19 [1] : vector<72x72xf32> to vector<72xf32>
      %26 = vector.shape_cast %25 : vector<72xf32> to vector<72x1xf32>
      %27 = arith.maximumf %24, %26 : vector<72x1xf32>
      %28 = arith.subf %24, %27 : vector<72x1xf32>
      %29 = math.exp %28 : vector<72x1xf32>
      %30 = vector.broadcast %27 : vector<72x1xf32> to vector<72x72xf32>
      %31 = arith.subf %23, %30 : vector<72x72xf32>
      %32 = math.exp %31 : vector<72x72xf32>
      %c0_20 = arith.constant 0 : index
      %c0_21 = arith.constant 0 : index
      %33 = vector.load %arg9[%c0_20, %c0_21] : memref<72x1xf32, #tpu.memory_space<vmem>>, vector<72x1xf32>
      %34 = arith.mulf %29, %33 : vector<72x1xf32>
      %cst_22 = arith.constant dense<0.000000e+00> : vector<72xf32>
      %35 = vector.multi_reduction <add>, %32, %cst_22 [1] : vector<72x72xf32> to vector<72xf32>
      %36 = vector.shape_cast %35 : vector<72xf32> to vector<72x1xf32>
      %37 = arith.addf %34, %36 : vector<72x1xf32>
      %c0_23 = arith.constant 0 : index
      %c0_24 = arith.constant 0 : index
      %38 = vector.load %arg9[%c0_23, %c0_24] : memref<72x1xf32, #tpu.memory_space<vmem>>, vector<72x1xf32>
      tpu.vector_store %arg9[%c0_23, %c0_24], %37 {strides = array<i32>} : memref<72x1xf32, #tpu.memory_space<vmem>>, vector<72x1xf32>,
      %c0_25 = arith.constant 0 : index
      %c0_26 = arith.constant 0 : index
      %39 = vector.load %arg10[%c0_25, %c0_26] : memref<72x8xf32, #tpu.memory_space<vmem>>, vector<72x8xf32>
      %40 = vector.broadcast %29 : vector<72x1xf32> to vector<72x8xf32>
      %41 = arith.mulf %40, %39 : vector<72x8xf32>
      %42 = arith.truncf %32 : vector<72x72xf32> to vector<72x72xbf16>
      %cst_27 = arith.constant dense<0.000000e+00> : vector<72x8xf32>
      %43 = tpu.matmul %42, %17, %cst_27 {dimension_numbers = #tpu.dot_dimension_numbers<[1], [0], [0], [1], [0, 0, 1, 1], [], []>} : vector<72x72xbf16>, vector<72x8xbf16>, vector<72x8xf32> -> vector<72x8xf32>
      %44 = arith.addf %41, %43 : vector<72x8xf32>
      %c0_28 = arith.constant 0 : index
      %c0_29 = arith.constant 0 : index
      %45 = vector.load %arg10[%c0_28, %c0_29] : memref<72x8xf32, #tpu.memory_space<vmem>>, vector<72x8xf32>
      tpu.vector_store %arg10[%c0_28, %c0_29], %44 {strides = array<i32>} : memref<72x8xf32, #tpu.memory_space<vmem>>, vector<72x8xf32>,
      %c0_30 = arith.constant 0 : index
      %c0_31 = arith.constant 0 : index
      %46 = vector.load %arg8[%c0_30, %c0_31] : memref<72x1xf32, #tpu.memory_space<vmem>>, vector<72x1xf32>
      tpu.vector_store %arg8[%c0_30, %c0_31], %27 {strides = array<i32>} : memref<72x1xf32, #tpu.memory_space<vmem>>, vector<72x1xf32>,
    } else {
    }
    %c0_i32_3 = arith.constant 0 : i32
    %9 = arith.cmpi eq, %arg3, %c0_i32_3 : i32
    %10 = arith.extui %9 : i1 to i32
    %c0_i32_4 = arith.constant 0 : i32
    %11 = arith.cmpi ne, %10, %c0_i32_4 : i32
    scf.if %11 {
      %c0 = arith.constant 0 : index
      %c0_5 = arith.constant 0 : index
      %12 = vector.load %arg9[%c0, %c0_5] : memref<72x1xf32, #tpu.memory_space<vmem>>, vector<72x1xf32>
      %13 = tpu.reciprocal %12 {approx = true} : vector<72x1xf32> -> vector<72x1xf32>
      %c0_6 = arith.constant 0 : index
      %c0_7 = arith.constant 0 : index
      %14 = vector.load %arg10[%c0_6, %c0_7] : memref<72x8xf32, #tpu.memory_space<vmem>>, vector<72x8xf32>
      %15 = vector.broadcast %13 : vector<72x1xf32> to vector<72x8xf32>
      %16 = arith.mulf %14, %15 : vector<72x8xf32>
      %17 = arith.truncf %16 : vector<72x8xf32> to vector<72x8xbf16>
      %c0_8 = arith.constant 0 : index
      %c0_9 = arith.constant 0 : index
      %c0_10 = arith.constant 0 : index
      %c0_11 = arith.constant 0 : index
      %18 = vector.load %arg7[%c0_8, %c0_9, %c0_10, %c0_11] : memref<1x1x72x8xbf16, #tpu.memory_space<vmem>>, vector<1x1x72x8xbf16>
      %19 = vector.shape_cast %18 : vector<1x1x72x8xbf16> to vector<72x8xbf16>
      %20 = vector.shape_cast %17 : vector<72x8xbf16> to vector<1x1x72x8xbf16>
      tpu.vector_store %arg7[%c0_8, %c0_9, %c0_10, %c0_11], %20 {strides = array<i32>} : memref<1x1x72x8xbf16, #tpu.memory_space<vmem>>, vector<1x1x72x8xbf16>,
    } else {
    }
    return
  }
  func.func @transform_0(%arg0: i32, %arg1: i32, %arg2: i32, %arg3: i32) -> (i32, i32, i32, i32) {
    %c0_i32 = arith.constant 0 : i32
    %c0_i32_0 = arith.constant 0 : i32
    return %arg0, %arg1, %arg2, %c0_i32 : i32, i32, i32, i32
  }
  func.func @transform_1(%arg0: i32, %arg1: i32, %arg2: i32, %arg3: i32) -> (i32, i32, i32, i32) {
    %c4_i32 = arith.constant 4 : i32
    %0 = arith.addi %c4_i32, %arg1 : i32
    %1 = arith.minsi %arg3, %arg2 : i32
    %c0_i32 = arith.constant 0 : i32
    %c0_i32_0 = arith.constant 0 : i32
    return %arg0, %0, %1, %c0_i32 : i32, i32, i32, i32
  }
  func.func @transform_2(%arg0: i32, %arg1: i32, %arg2: i32, %arg3: i32) -> (i32, i32, i32, i32) {
    %c8_i32 = arith.constant 8 : i32
    %0 = arith.addi %c8_i32, %arg1 : i32
    %1 = arith.minsi %arg3, %arg2 : i32
    %c0_i32 = arith.constant 0 : i32
    %c0_i32_0 = arith.constant 0 : i32
    return %arg0, %0, %1, %c0_i32 : i32, i32, i32, i32
  }
  func.func @transform_3(%arg0: i32, %arg1: i32, %arg2: i32, %arg3: i32) -> (i32, i32, i32, i32) {
    %c0_i32 = arith.constant 0 : i32
    %c0_i32_0 = arith.constant 0 : i32
    return %arg0, %arg1, %arg2, %c0_i32 : i32, i32, i32, i32
  }
}

module attributes {stable_mosaic.version = 11 : i64} {
  func.func @_attn_out_kernel(%arg0: i32, %arg1: i32, %arg2: i32, %arg3: memref<1x1x72x8xbf16, #tpu.memory_space<vmem>>, %arg4: memref<1x8x32xbf16, #tpu.memory_space<vmem>>, %arg5: memref<1x32xf32, #tpu.memory_space<vmem>>, %arg6: memref<1x72x32xbf16, #tpu.memory_space<vmem>>, %arg7: memref<1x72x32xbf16, #tpu.memory_space<vmem>>, %arg8: memref<72x32xf32, #tpu.memory_space<vmem>>) attributes {dimension_semantics = [#tpu.dimension_semantics<parallel>, #tpu.dimension_semantics<parallel>, #tpu.dimension_semantics<arbitrary>], iteration_bounds = array<i64: 2, 1, 4>, scalar_prefetch = 0 : i64, scratch_operands = 1 : i64, tpu.core_type = #tpu.core_type<tc>, window_params = [{transform_indices = @transform_0, window_bounds = array<i64: 1, 1, 72, 8>}, {transform_indices = @transform_1, window_bounds = array<i64: 1, 8, 32>}, {pipeline_mode = #tpu.pipeline_mode<synchronous>, transform_indices = @transform_2, window_bounds = array<i64: 1, 32>}, {transform_indices = @transform_3, window_bounds = array<i64: 1, 72, 32>}, {transform_indices = @transform_4, window_bounds = array<i64: 1, 72, 32>}]} {
    %c0_i32 = arith.constant 0 : i32
    %0 = arith.cmpi eq, %arg2, %c0_i32 : i32
    %1 = arith.extui %0 : i1 to i32
    %c0_i32_0 = arith.constant 0 : i32
    %2 = arith.cmpi ne, %1, %c0_i32_0 : i32
    scf.if %2 {
      %cst_12 = arith.constant 0.000000e+00 : f32
      %14 = vector.broadcast %cst_12 : f32 to vector<72x32xf32>
      %c0_13 = arith.constant 0 : index
      %c0_14 = arith.constant 0 : index
      %15 = vector.load %arg8[%c0_13, %c0_14] : memref<72x32xf32, #tpu.memory_space<vmem>>, vector<72x32xf32>
      tpu.vector_store %arg8[%c0_13, %c0_14], %14 {strides = array<i32>} : memref<72x32xf32, #tpu.memory_space<vmem>>, vector<72x32xf32>,
    } else {
    }
    %c0 = arith.constant 0 : index
    %c0_1 = arith.constant 0 : index
    %3 = vector.load %arg8[%c0, %c0_1] : memref<72x32xf32, #tpu.memory_space<vmem>>, vector<72x32xf32>
    %c0_2 = arith.constant 0 : index
    %c0_3 = arith.constant 0 : index
    %c0_4 = arith.constant 0 : index
    %c0_5 = arith.constant 0 : index
    %4 = vector.load %arg3[%c0_2, %c0_3, %c0_4, %c0_5] : memref<1x1x72x8xbf16, #tpu.memory_space<vmem>>, vector<1x1x72x8xbf16>
    %5 = vector.shape_cast %4 : vector<1x1x72x8xbf16> to vector<72x8xbf16>
    %c0_6 = arith.constant 0 : index
    %c0_7 = arith.constant 0 : index
    %c0_8 = arith.constant 0 : index
    %6 = vector.load %arg4[%c0_6, %c0_7, %c0_8] : memref<1x8x32xbf16, #tpu.memory_space<vmem>>, vector<1x8x32xbf16>
    %7 = vector.shape_cast %6 : vector<1x8x32xbf16> to vector<8x32xbf16>
    %cst = arith.constant dense<0.000000e+00> : vector<72x32xf32>
    %8 = tpu.matmul %5, %7, %cst {dimension_numbers = #tpu.dot_dimension_numbers<[1], [0], [0], [1], [0, 0, 1, 1], [], []>} : vector<72x8xbf16>, vector<8x32xbf16>, vector<72x32xf32> -> vector<72x32xf32>
    %9 = arith.addf %3, %8 : vector<72x32xf32>
    %c0_9 = arith.constant 0 : index
    %c0_10 = arith.constant 0 : index
    %10 = vector.load %arg8[%c0_9, %c0_10] : memref<72x32xf32, #tpu.memory_space<vmem>>, vector<72x32xf32>
    tpu.vector_store %arg8[%c0_9, %c0_10], %9 {strides = array<i32>} : memref<72x32xf32, #tpu.memory_space<vmem>>, vector<72x32xf32>,
    %c3_i32 = arith.constant 3 : i32
    %11 = arith.cmpi eq, %arg2, %c3_i32 : i32
    %12 = arith.extui %11 : i1 to i32
    %c0_i32_11 = arith.constant 0 : i32
    %13 = arith.cmpi ne, %12, %c0_i32_11 : i32
    scf.if %13 {
      %c0_12 = arith.constant 0 : index
      %c0_13 = arith.constant 0 : index
      %14 = vector.load %arg8[%c0_12, %c0_13] : memref<72x32xf32, #tpu.memory_space<vmem>>, vector<72x32xf32>
      %c0_14 = arith.constant 0 : index
      %c0_15 = arith.constant 0 : index
      %15 = vector.load %arg5[%c0_14, %c0_15] : memref<1x32xf32, #tpu.memory_space<vmem>>, vector<1x32xf32>
      %16 = vector.broadcast %15 : vector<1x32xf32> to vector<72x32xf32>
      %17 = arith.addf %14, %16 : vector<72x32xf32>
      %c0_16 = arith.constant 0 : index
      %c0_17 = arith.constant 0 : index
      %c0_18 = arith.constant 0 : index
      %18 = vector.load %arg6[%c0_16, %c0_17, %c0_18] : memref<1x72x32xbf16, #tpu.memory_space<vmem>>, vector<1x72x32xbf16>
      %19 = vector.shape_cast %18 : vector<1x72x32xbf16> to vector<72x32xbf16>
      %20 = arith.extf %19 : vector<72x32xbf16> to vector<72x32xf32>
      %21 = arith.addf %17, %20 : vector<72x32xf32>
      %22 = arith.truncf %21 : vector<72x32xf32> to vector<72x32xbf16>
      %c0_19 = arith.constant 0 : index
      %c0_20 = arith.constant 0 : index
      %c0_21 = arith.constant 0 : index
      %23 = vector.load %arg7[%c0_19, %c0_20, %c0_21] : memref<1x72x32xbf16, #tpu.memory_space<vmem>>, vector<1x72x32xbf16>
      %24 = vector.shape_cast %23 : vector<1x72x32xbf16> to vector<72x32xbf16>
      %25 = vector.shape_cast %22 : vector<72x32xbf16> to vector<1x72x32xbf16>
      tpu.vector_store %arg7[%c0_19, %c0_20, %c0_21], %25 {strides = array<i32>} : memref<1x72x32xbf16, #tpu.memory_space<vmem>>, vector<1x72x32xbf16>,
    } else {
    }
    return
  }
  func.func @transform_0(%arg0: i32, %arg1: i32, %arg2: i32) -> (i32, i32, i32, i32) {
    %c0_i32 = arith.constant 0 : i32
    %c0_i32_0 = arith.constant 0 : i32
    return %arg0, %arg2, %arg1, %c0_i32 : i32, i32, i32, i32
  }
  func.func @transform_1(%arg0: i32, %arg1: i32, %arg2: i32) -> (i32, i32, i32) {
    %c0_i32 = arith.constant 0 : i32
    %c0_i32_0 = arith.constant 0 : i32
    %c0_i32_1 = arith.constant 0 : i32
    return %arg2, %c0_i32, %c0_i32_0 : i32, i32, i32
  }
  func.func @transform_2(%arg0: i32, %arg1: i32, %arg2: i32) -> (i32, i32) {
    %c0_i32 = arith.constant 0 : i32
    %c0_i32_0 = arith.constant 0 : i32
    %c0_i32_1 = arith.constant 0 : i32
    return %c0_i32, %c0_i32_0 : i32, i32
  }
  func.func @transform_3(%arg0: i32, %arg1: i32, %arg2: i32) -> (i32, i32, i32) {
    %c0_i32 = arith.constant 0 : i32
    %c0_i32_0 = arith.constant 0 : i32
    return %arg0, %arg1, %c0_i32 : i32, i32, i32
  }
  func.func @transform_4(%arg0: i32, %arg1: i32, %arg2: i32) -> (i32, i32, i32) {
    %c0_i32 = arith.constant 0 : i32
    %c0_i32_0 = arith.constant 0 : i32
    return %arg0, %arg1, %c0_i32 : i32, i32, i32
  }
}

module attributes {stable_mosaic.version = 11 : i64} {
  func.func @_ln_mlp_up_kernel(%arg0: i32, %arg1: i32, %arg2: i32, %arg3: memref<1x72x32xbf16, #tpu.memory_space<vmem>>, %arg4: memref<1x32xf32, #tpu.memory_space<vmem>>, %arg5: memref<1x32xf32, #tpu.memory_space<vmem>>, %arg6: memref<32x128xbf16, #tpu.memory_space<vmem>>, %arg7: memref<1x128xf32, #tpu.memory_space<vmem>>, %arg8: memref<1x72x128xbf16, #tpu.memory_space<vmem>>, %arg9: memref<72x32xbf16, #tpu.memory_space<vmem>>) attributes {dimension_semantics = [#tpu.dimension_semantics<parallel>, #tpu.dimension_semantics<parallel>, #tpu.dimension_semantics<arbitrary>], iteration_bounds = array<i64: 2, 1, 1>, scalar_prefetch = 0 : i64, scratch_operands = 1 : i64, tpu.core_type = #tpu.core_type<tc>, window_params = [{transform_indices = @transform_0, window_bounds = array<i64: 1, 72, 32>}, {pipeline_mode = #tpu.pipeline_mode<synchronous>, transform_indices = @transform_1, window_bounds = array<i64: 1, 32>}, {pipeline_mode = #tpu.pipeline_mode<synchronous>, transform_indices = @transform_2, window_bounds = array<i64: 1, 32>}, {transform_indices = @transform_3, window_bounds = array<i64: 32, 128>}, {transform_indices = @transform_4, window_bounds = array<i64: 1, 128>}, {transform_indices = @transform_5, window_bounds = array<i64: 1, 72, 128>}]} {
    %c0_i32 = arith.constant 0 : i32
    %0 = arith.cmpi eq, %arg2, %c0_i32 : i32
    %1 = arith.extui %0 : i1 to i32
    %c0_i32_0 = arith.constant 0 : i32
    %2 = arith.cmpi ne, %1, %c0_i32_0 : i32
    scf.if %2 {
      %c0_12 = arith.constant 0 : index
      %c0_13 = arith.constant 0 : index
      %c0_14 = arith.constant 0 : index
      %21 = vector.load %arg3[%c0_12, %c0_13, %c0_14] : memref<1x72x32xbf16, #tpu.memory_space<vmem>>, vector<1x72x32xbf16>
      %22 = vector.shape_cast %21 : vector<1x72x32xbf16> to vector<72x32xbf16>
      %23 = arith.extf %22 : vector<72x32xbf16> to vector<72x32xf32>
      %c0_15 = arith.constant 0 : index
      %c0_16 = arith.constant 0 : index
      %24 = vector.load %arg4[%c0_15, %c0_16] : memref<1x32xf32, #tpu.memory_space<vmem>>, vector<1x32xf32>
      %c0_17 = arith.constant 0 : index
      %c0_18 = arith.constant 0 : index
      %25 = vector.load %arg5[%c0_17, %c0_18] : memref<1x32xf32, #tpu.memory_space<vmem>>, vector<1x32xf32>
      %cst_19 = arith.constant dense<0.000000e+00> : vector<72xf32>
      %26 = vector.multi_reduction <add>, %23, %cst_19 [1] : vector<72x32xf32> to vector<72xf32>
      %27 = vector.shape_cast %26 : vector<72xf32> to vector<72x1xf32>
      %cst_20 = arith.constant 3.200000e+01 : f32
      %28 = vector.broadcast %cst_20 : f32 to vector<72x1xf32>
      %29 = arith.divf %27, %28 : vector<72x1xf32>
      %30 = vector.broadcast %29 : vector<72x1xf32> to vector<72x32xf32>
      %31 = arith.subf %23, %30 : vector<72x32xf32>
      %32 = arith.mulf %31, %31 : vector<72x32xf32>
      %cst_21 = arith.constant dense<0.000000e+00> : vector<72xf32>
      %33 = vector.multi_reduction <add>, %32, %cst_21 [1] : vector<72x32xf32> to vector<72xf32>
      %34 = vector.shape_cast %33 : vector<72xf32> to vector<72x1xf32>
      %cst_22 = arith.constant 3.200000e+01 : f32
      %35 = vector.broadcast %cst_22 : f32 to vector<72x1xf32>
      %36 = arith.divf %34, %35 : vector<72x1xf32>
      %cst_23 = arith.constant 9.99999974E-6 : f32
      %37 = vector.broadcast %cst_23 : f32 to vector<72x1xf32>
      %38 = arith.addf %36, %37 : vector<72x1xf32>
      %39 = math.rsqrt %38 : vector<72x1xf32>
      %40 = vector.broadcast %39 : vector<72x1xf32> to vector<72x32xf32>
      %41 = arith.mulf %31, %40 : vector<72x32xf32>
      %42 = vector.broadcast %24 : vector<1x32xf32> to vector<72x32xf32>
      %43 = arith.mulf %41, %42 : vector<72x32xf32>
      %44 = vector.broadcast %25 : vector<1x32xf32> to vector<72x32xf32>
      %45 = arith.addf %43, %44 : vector<72x32xf32>
      %46 = arith.truncf %45 : vector<72x32xf32> to vector<72x32xbf16>
      %c0_24 = arith.constant 0 : index
      %c0_25 = arith.constant 0 : index
      %47 = vector.load %arg9[%c0_24, %c0_25] : memref<72x32xbf16, #tpu.memory_space<vmem>>, vector<72x32xbf16>
      tpu.vector_store %arg9[%c0_24, %c0_25], %46 {strides = array<i32>} : memref<72x32xbf16, #tpu.memory_space<vmem>>, vector<72x32xbf16>,
    } else {
    }
    %c0 = arith.constant 0 : index
    %c0_1 = arith.constant 0 : index
    %3 = vector.load %arg9[%c0, %c0_1] : memref<72x32xbf16, #tpu.memory_space<vmem>>, vector<72x32xbf16>
    %c0_2 = arith.constant 0 : index
    %c0_3 = arith.constant 0 : index
    %4 = vector.load %arg6[%c0_2, %c0_3] : memref<32x128xbf16, #tpu.memory_space<vmem>>, vector<32x128xbf16>
    %cst = arith.constant dense<0.000000e+00> : vector<72x128xf32>
    %5 = tpu.matmul %3, %4, %cst {dimension_numbers = #tpu.dot_dimension_numbers<[1], [0], [0], [1], [0, 0, 1, 1], [], []>} : vector<72x32xbf16>, vector<32x128xbf16>, vector<72x128xf32> -> vector<72x128xf32>
    %c0_4 = arith.constant 0 : index
    %c0_5 = arith.constant 0 : index
    %6 = vector.load %arg7[%c0_4, %c0_5] : memref<1x128xf32, #tpu.memory_space<vmem>>, vector<1x128xf32>
    %7 = vector.broadcast %6 : vector<1x128xf32> to vector<72x128xf32>
    %8 = arith.addf %5, %7 : vector<72x128xf32>
    %cst_6 = arith.constant 5.000000e-01 : f32
    %9 = vector.broadcast %cst_6 : f32 to vector<72x128xf32>
    %10 = arith.mulf %9, %8 : vector<72x128xf32>
    %cst_7 = arith.constant 0.707106769 : f32
    %11 = vector.broadcast %cst_7 : f32 to vector<72x128xf32>
    %12 = arith.mulf %8, %11 : vector<72x128xf32>
    %13 = math.erf %12 : vector<72x128xf32>
    %cst_8 = arith.constant 1.000000e+00 : f32
    %14 = vector.broadcast %cst_8 : f32 to vector<72x128xf32>
    %15 = arith.addf %14, %13 : vector<72x128xf32>
    %16 = arith.mulf %10, %15 : vector<72x128xf32>
    %17 = arith.truncf %16 : vector<72x128xf32> to vector<72x128xbf16>
    %c0_9 = arith.constant 0 : index
    %c0_10 = arith.constant 0 : index
    %c0_11 = arith.constant 0 : index
    %18 = vector.load %arg8[%c0_9, %c0_10, %c0_11] : memref<1x72x128xbf16, #tpu.memory_space<vmem>>, vector<1x72x128xbf16>
    %19 = vector.shape_cast %18 : vector<1x72x128xbf16> to vector<72x128xbf16>
    %20 = vector.shape_cast %17 : vector<72x128xbf16> to vector<1x72x128xbf16>
    tpu.vector_store %arg8[%c0_9, %c0_10, %c0_11], %20 {strides = array<i32>} : memref<1x72x128xbf16, #tpu.memory_space<vmem>>, vector<1x72x128xbf16>,
    return
  }
  func.func @transform_0(%arg0: i32, %arg1: i32, %arg2: i32) -> (i32, i32, i32) {
    %c0_i32 = arith.constant 0 : i32
    %c0_i32_0 = arith.constant 0 : i32
    return %arg0, %arg1, %c0_i32 : i32, i32, i32
  }
  func.func @transform_1(%arg0: i32, %arg1: i32, %arg2: i32) -> (i32, i32) {
    %c0_i32 = arith.constant 0 : i32
    %c0_i32_0 = arith.constant 0 : i32
    %c0_i32_1 = arith.constant 0 : i32
    return %c0_i32, %c0_i32_0 : i32, i32
  }
  func.func @transform_2(%arg0: i32, %arg1: i32, %arg2: i32) -> (i32, i32) {
    %c0_i32 = arith.constant 0 : i32
    %c0_i32_0 = arith.constant 0 : i32
    %c0_i32_1 = arith.constant 0 : i32
    return %c0_i32, %c0_i32_0 : i32, i32
  }
  func.func @transform_3(%arg0: i32, %arg1: i32, %arg2: i32) -> (i32, i32) {
    %c0_i32 = arith.constant 0 : i32
    %c0_i32_0 = arith.constant 0 : i32
    return %c0_i32, %arg2 : i32, i32
  }
  func.func @transform_4(%arg0: i32, %arg1: i32, %arg2: i32) -> (i32, i32) {
    %c0_i32 = arith.constant 0 : i32
    %c0_i32_0 = arith.constant 0 : i32
    return %c0_i32, %arg2 : i32, i32
  }
  func.func @transform_5(%arg0: i32, %arg1: i32, %arg2: i32) -> (i32, i32, i32) {
    %c0_i32 = arith.constant 0 : i32
    return %arg0, %arg1, %arg2 : i32, i32, i32
  }
}

module attributes {stable_mosaic.version = 11 : i64} {
  func.func @_mlp_down_ln_kernel(%arg0: i32, %arg1: i32, %arg2: i32, %arg3: memref<1x72x128xbf16, #tpu.memory_space<vmem>>, %arg4: memref<128x32xbf16, #tpu.memory_space<vmem>>, %arg5: memref<1x32xf32, #tpu.memory_space<vmem>>, %arg6: memref<1x72x32xbf16, #tpu.memory_space<vmem>>, %arg7: memref<1x32xf32, #tpu.memory_space<vmem>>, %arg8: memref<1x32xf32, #tpu.memory_space<vmem>>, %arg9: memref<1x72x32xbf16, #tpu.memory_space<vmem>>, %arg10: memref<72x32xf32, #tpu.memory_space<vmem>>) attributes {dimension_semantics = [#tpu.dimension_semantics<parallel>, #tpu.dimension_semantics<parallel>, #tpu.dimension_semantics<arbitrary>], iteration_bounds = array<i64: 2, 1, 1>, scalar_prefetch = 0 : i64, scratch_operands = 1 : i64, tpu.core_type = #tpu.core_type<tc>, window_params = [{transform_indices = @transform_0, window_bounds = array<i64: 1, 72, 128>}, {transform_indices = @transform_1, window_bounds = array<i64: 128, 32>}, {pipeline_mode = #tpu.pipeline_mode<synchronous>, transform_indices = @transform_2, window_bounds = array<i64: 1, 32>}, {transform_indices = @transform_3, window_bounds = array<i64: 1, 72, 32>}, {pipeline_mode = #tpu.pipeline_mode<synchronous>, transform_indices = @transform_4, window_bounds = array<i64: 1, 32>}, {pipeline_mode = #tpu.pipeline_mode<synchronous>, transform_indices = @transform_5, window_bounds = array<i64: 1, 32>}, {transform_indices = @transform_6, window_bounds = array<i64: 1, 72, 32>}]} {
    %c0_i32 = arith.constant 0 : i32
    %0 = arith.cmpi eq, %arg2, %c0_i32 : i32
    %1 = arith.extui %0 : i1 to i32
    %c0_i32_0 = arith.constant 0 : i32
    %2 = arith.cmpi ne, %1, %c0_i32_0 : i32
    scf.if %2 {
      %cst_11 = arith.constant 0.000000e+00 : f32
      %13 = vector.broadcast %cst_11 : f32 to vector<72x32xf32>
      %c0_12 = arith.constant 0 : index
      %c0_13 = arith.constant 0 : index
      %14 = vector.load %arg10[%c0_12, %c0_13] : memref<72x32xf32, #tpu.memory_space<vmem>>, vector<72x32xf32>
      tpu.vector_store %arg10[%c0_12, %c0_13], %13 {strides = array<i32>} : memref<72x32xf32, #tpu.memory_space<vmem>>, vector<72x32xf32>,
    } else {
    }
    %c0 = arith.constant 0 : index
    %c0_1 = arith.constant 0 : index
    %3 = vector.load %arg10[%c0, %c0_1] : memref<72x32xf32, #tpu.memory_space<vmem>>, vector<72x32xf32>
    %c0_2 = arith.constant 0 : index
    %c0_3 = arith.constant 0 : index
    %c0_4 = arith.constant 0 : index
    %4 = vector.load %arg3[%c0_2, %c0_3, %c0_4] : memref<1x72x128xbf16, #tpu.memory_space<vmem>>, vector<1x72x128xbf16>
    %5 = vector.shape_cast %4 : vector<1x72x128xbf16> to vector<72x128xbf16>
    %c0_5 = arith.constant 0 : index
    %c0_6 = arith.constant 0 : index
    %6 = vector.load %arg4[%c0_5, %c0_6] : memref<128x32xbf16, #tpu.memory_space<vmem>>, vector<128x32xbf16>
    %cst = arith.constant dense<0.000000e+00> : vector<72x32xf32>
    %7 = tpu.matmul %5, %6, %cst {dimension_numbers = #tpu.dot_dimension_numbers<[1], [0], [0], [1], [0, 0, 1, 1], [], []>} : vector<72x128xbf16>, vector<128x32xbf16>, vector<72x32xf32> -> vector<72x32xf32>
    %8 = arith.addf %3, %7 : vector<72x32xf32>
    %c0_7 = arith.constant 0 : index
    %c0_8 = arith.constant 0 : index
    %9 = vector.load %arg10[%c0_7, %c0_8] : memref<72x32xf32, #tpu.memory_space<vmem>>, vector<72x32xf32>
    tpu.vector_store %arg10[%c0_7, %c0_8], %8 {strides = array<i32>} : memref<72x32xf32, #tpu.memory_space<vmem>>, vector<72x32xf32>,
    %c0_i32_9 = arith.constant 0 : i32
    %10 = arith.cmpi eq, %arg2, %c0_i32_9 : i32
    %11 = arith.extui %10 : i1 to i32
    %c0_i32_10 = arith.constant 0 : i32
    %12 = arith.cmpi ne, %11, %c0_i32_10 : i32
    scf.if %12 {
      %c0_11 = arith.constant 0 : index
      %c0_12 = arith.constant 0 : index
      %13 = vector.load %arg10[%c0_11, %c0_12] : memref<72x32xf32, #tpu.memory_space<vmem>>, vector<72x32xf32>
      %c0_13 = arith.constant 0 : index
      %c0_14 = arith.constant 0 : index
      %14 = vector.load %arg5[%c0_13, %c0_14] : memref<1x32xf32, #tpu.memory_space<vmem>>, vector<1x32xf32>
      %15 = vector.broadcast %14 : vector<1x32xf32> to vector<72x32xf32>
      %16 = arith.addf %13, %15 : vector<72x32xf32>
      %c0_15 = arith.constant 0 : index
      %c0_16 = arith.constant 0 : index
      %c0_17 = arith.constant 0 : index
      %17 = vector.load %arg6[%c0_15, %c0_16, %c0_17] : memref<1x72x32xbf16, #tpu.memory_space<vmem>>, vector<1x72x32xbf16>
      %18 = vector.shape_cast %17 : vector<1x72x32xbf16> to vector<72x32xbf16>
      %19 = arith.extf %18 : vector<72x32xbf16> to vector<72x32xf32>
      %20 = arith.addf %16, %19 : vector<72x32xf32>
      %c0_18 = arith.constant 0 : index
      %c0_19 = arith.constant 0 : index
      %21 = vector.load %arg7[%c0_18, %c0_19] : memref<1x32xf32, #tpu.memory_space<vmem>>, vector<1x32xf32>
      %c0_20 = arith.constant 0 : index
      %c0_21 = arith.constant 0 : index
      %22 = vector.load %arg8[%c0_20, %c0_21] : memref<1x32xf32, #tpu.memory_space<vmem>>, vector<1x32xf32>
      %cst_22 = arith.constant dense<0.000000e+00> : vector<72xf32>
      %23 = vector.multi_reduction <add>, %20, %cst_22 [1] : vector<72x32xf32> to vector<72xf32>
      %24 = vector.shape_cast %23 : vector<72xf32> to vector<72x1xf32>
      %cst_23 = arith.constant 3.200000e+01 : f32
      %25 = vector.broadcast %cst_23 : f32 to vector<72x1xf32>
      %26 = arith.divf %24, %25 : vector<72x1xf32>
      %27 = vector.broadcast %26 : vector<72x1xf32> to vector<72x32xf32>
      %28 = arith.subf %20, %27 : vector<72x32xf32>
      %29 = arith.mulf %28, %28 : vector<72x32xf32>
      %cst_24 = arith.constant dense<0.000000e+00> : vector<72xf32>
      %30 = vector.multi_reduction <add>, %29, %cst_24 [1] : vector<72x32xf32> to vector<72xf32>
      %31 = vector.shape_cast %30 : vector<72xf32> to vector<72x1xf32>
      %cst_25 = arith.constant 3.200000e+01 : f32
      %32 = vector.broadcast %cst_25 : f32 to vector<72x1xf32>
      %33 = arith.divf %31, %32 : vector<72x1xf32>
      %cst_26 = arith.constant 9.99999974E-6 : f32
      %34 = vector.broadcast %cst_26 : f32 to vector<72x1xf32>
      %35 = arith.addf %33, %34 : vector<72x1xf32>
      %36 = math.rsqrt %35 : vector<72x1xf32>
      %37 = vector.broadcast %36 : vector<72x1xf32> to vector<72x32xf32>
      %38 = arith.mulf %28, %37 : vector<72x32xf32>
      %39 = vector.broadcast %21 : vector<1x32xf32> to vector<72x32xf32>
      %40 = arith.mulf %38, %39 : vector<72x32xf32>
      %41 = vector.broadcast %22 : vector<1x32xf32> to vector<72x32xf32>
      %42 = arith.addf %40, %41 : vector<72x32xf32>
      %43 = arith.truncf %42 : vector<72x32xf32> to vector<72x32xbf16>
      %c0_27 = arith.constant 0 : index
      %c0_28 = arith.constant 0 : index
      %c0_29 = arith.constant 0 : index
      %44 = vector.load %arg9[%c0_27, %c0_28, %c0_29] : memref<1x72x32xbf16, #tpu.memory_space<vmem>>, vector<1x72x32xbf16>
      %45 = vector.shape_cast %44 : vector<1x72x32xbf16> to vector<72x32xbf16>
      %46 = vector.shape_cast %43 : vector<72x32xbf16> to vector<1x72x32xbf16>
      tpu.vector_store %arg9[%c0_27, %c0_28, %c0_29], %46 {strides = array<i32>} : memref<1x72x32xbf16, #tpu.memory_space<vmem>>, vector<1x72x32xbf16>,
    } else {
    }
    return
  }
  func.func @transform_0(%arg0: i32, %arg1: i32, %arg2: i32) -> (i32, i32, i32) {
    %c0_i32 = arith.constant 0 : i32
    return %arg0, %arg1, %arg2 : i32, i32, i32
  }
  func.func @transform_1(%arg0: i32, %arg1: i32, %arg2: i32) -> (i32, i32) {
    %c0_i32 = arith.constant 0 : i32
    %c0_i32_0 = arith.constant 0 : i32
    return %arg2, %c0_i32 : i32, i32
  }
  func.func @transform_2(%arg0: i32, %arg1: i32, %arg2: i32) -> (i32, i32) {
    %c0_i32 = arith.constant 0 : i32
    %c0_i32_0 = arith.constant 0 : i32
    %c0_i32_1 = arith.constant 0 : i32
    return %c0_i32, %c0_i32_0 : i32, i32
  }
  func.func @transform_3(%arg0: i32, %arg1: i32, %arg2: i32) -> (i32, i32, i32) {
    %c0_i32 = arith.constant 0 : i32
    %c0_i32_0 = arith.constant 0 : i32
    return %arg0, %arg1, %c0_i32 : i32, i32, i32
  }
  func.func @transform_4(%arg0: i32, %arg1: i32, %arg2: i32) -> (i32, i32) {
    %c0_i32 = arith.constant 0 : i32
    %c0_i32_0 = arith.constant 0 : i32
    %c0_i32_1 = arith.constant 0 : i32
    return %c0_i32, %c0_i32_0 : i32, i32
  }
  func.func @transform_5(%arg0: i32, %arg1: i32, %arg2: i32) -> (i32, i32) {
    %c0_i32 = arith.constant 0 : i32
    %c0_i32_0 = arith.constant 0 : i32
    %c0_i32_1 = arith.constant 0 : i32
    return %c0_i32, %c0_i32_0 : i32, i32
  }
  func.func @transform_6(%arg0: i32, %arg1: i32, %arg2: i32) -> (i32, i32, i32) {
    %c0_i32 = arith.constant 0 : i32
    %c0_i32_0 = arith.constant 0 : i32
    return %arg0, %arg1, %c0_i32 : i32, i32, i32
  }
}

module attributes {stable_mosaic.version = 11 : i64} {
  func.func @_head_kernel(%arg0: i32, %arg1: i32, %arg2: memref<1x72x32xbf16, #tpu.memory_space<vmem>>, %arg3: memref<32x128xbf16, #tpu.memory_space<vmem>>, %arg4: memref<1x128xf32, #tpu.memory_space<vmem>>, %arg5: memref<1x72x128xf32, #tpu.memory_space<vmem>>) attributes {dimension_semantics = [#tpu.dimension_semantics<parallel>, #tpu.dimension_semantics<parallel>], iteration_bounds = array<i64: 2, 1>, scalar_prefetch = 0 : i64, scratch_operands = 0 : i64, tpu.core_type = #tpu.core_type<tc>, window_params = [{transform_indices = @transform_0, window_bounds = array<i64: 1, 72, 32>}, {pipeline_mode = #tpu.pipeline_mode<synchronous>, transform_indices = @transform_1, window_bounds = array<i64: 32, 128>}, {pipeline_mode = #tpu.pipeline_mode<synchronous>, transform_indices = @transform_2, window_bounds = array<i64: 1, 128>}, {transform_indices = @transform_3, window_bounds = array<i64: 1, 72, 128>}]} {
    %c0 = arith.constant 0 : index
    %c0_0 = arith.constant 0 : index
    %c0_1 = arith.constant 0 : index
    %0 = vector.load %arg2[%c0, %c0_0, %c0_1] : memref<1x72x32xbf16, #tpu.memory_space<vmem>>, vector<1x72x32xbf16>
    %1 = vector.shape_cast %0 : vector<1x72x32xbf16> to vector<72x32xbf16>
    %c0_2 = arith.constant 0 : index
    %c0_3 = arith.constant 0 : index
    %2 = vector.load %arg3[%c0_2, %c0_3] : memref<32x128xbf16, #tpu.memory_space<vmem>>, vector<32x128xbf16>
    %cst = arith.constant dense<0.000000e+00> : vector<72x128xf32>
    %3 = tpu.matmul %1, %2, %cst {dimension_numbers = #tpu.dot_dimension_numbers<[1], [0], [0], [1], [0, 0, 1, 1], [], []>} : vector<72x32xbf16>, vector<32x128xbf16>, vector<72x128xf32> -> vector<72x128xf32>
    %c0_4 = arith.constant 0 : index
    %c0_5 = arith.constant 0 : index
    %4 = vector.load %arg4[%c0_4, %c0_5] : memref<1x128xf32, #tpu.memory_space<vmem>>, vector<1x128xf32>
    %5 = vector.broadcast %4 : vector<1x128xf32> to vector<72x128xf32>
    %6 = arith.addf %3, %5 : vector<72x128xf32>
    %c0_6 = arith.constant 0 : index
    %c0_7 = arith.constant 0 : index
    %c0_8 = arith.constant 0 : index
    %7 = vector.load %arg5[%c0_6, %c0_7, %c0_8] : memref<1x72x128xf32, #tpu.memory_space<vmem>>, vector<1x72x128xf32>
    %8 = vector.shape_cast %7 : vector<1x72x128xf32> to vector<72x128xf32>
    %9 = vector.shape_cast %6 : vector<72x128xf32> to vector<1x72x128xf32>
    tpu.vector_store %arg5[%c0_6, %c0_7, %c0_8], %9 {strides = array<i32>} : memref<1x72x128xf32, #tpu.memory_space<vmem>>, vector<1x72x128xf32>,
    return
  }
  func.func @transform_0(%arg0: i32, %arg1: i32) -> (i32, i32, i32) {
    %c0_i32 = arith.constant 0 : i32
    %c0_i32_0 = arith.constant 0 : i32
    return %arg0, %arg1, %c0_i32 : i32, i32, i32
  }
  func.func @transform_1(%arg0: i32, %arg1: i32) -> (i32, i32) {
    %c0_i32 = arith.constant 0 : i32
    %c0_i32_0 = arith.constant 0 : i32
    %c0_i32_1 = arith.constant 0 : i32
    return %c0_i32, %c0_i32_0 : i32, i32
  }
  func.func @transform_2(%arg0: i32, %arg1: i32) -> (i32, i32) {
    %c0_i32 = arith.constant 0 : i32
    %c0_i32_0 = arith.constant 0 : i32
    %c0_i32_1 = arith.constant 0 : i32
    return %c0_i32, %c0_i32_0 : i32, i32
  }
  func.func @transform_3(%arg0: i32, %arg1: i32) -> (i32, i32, i32) {
    %c0_i32 = arith.constant 0 : i32
    %c0_i32_0 = arith.constant 0 : i32
    return %arg0, %arg1, %c0_i32 : i32, i32, i32
  }
}

</mosaic_0001>

<bundles_post_ra>
// kernel: multimodal_gpt_forward.14
= control target key start
LH: loop header
LB: loop body
LE: loop exit
PB: predicated region body
PF: predicated region fallthrough
CT: control target
= control target key end

     0   :  { %s337_s15 = smov 0   ;;  %s363_s0 = inlined_call_operand.vmem [shape: f32[2,8,32], index: 0, kind: input, shape index: {}]   ;;  %s364_s1 = inlined_call_operand.vmem [shape: f32[1,32], index: 1, kind: input, shape index: {}]   ;;  %s365_s2 = inlined_call_operand.vmem [shape: f32[1,32], index: 2, kind: input, shape index: {}]   ;;  %s366_s3 = inlined_call_operand.vmem [shape: f32[8,32], index: 3, kind: input, shape index: {}]   ;;  %s367_s4 = inlined_call_operand.vmem [shape: bf16[2,8,32], index: 4, kind: output, shape index: {}]  }
   0x1 LB: > { %s283_s16 = sadd.s32 4294967295, %s310_s15   ;;  %p287_p0 = scmp.ge.s32.totalorder %s310_s15, 1  ;;  %s310_s15 = sphi %s337_s15, %s14_s15  }
   0x2   : > { %p161_p1 = scmp.lt.s32.totalorder %s310_s15, 3 }
   0x4   : > { %p162_p2 = pnand %p287_p0, %p161_p1 }
   0x5   : > { %p185_p3 = scmp.lt.s32.totalorder (!%p162_p2), %s283_s16, 1  ;;  %vm196_vm0 = vcmask (!%p162_p2), 261120   ;;  %v290_v11 = vld [vmem:[%s364_s1] ss:$0 sm:$0xff] (!%p162_p2)  ;;  %vm228_vm1 = vcmask (!%p162_p2), 257024  }
   0x6   : > { %165 = sbr.rel (%p162_p2) target bundleno = 335 (0x14f), region = 36  ;;  %v291_v13 = vld [vmem:[%s365_s2] ss:$0 sm:$0xff] (!%p162_p2) }
   0x7   : > { %v225_v15 = vld [vmem:[%s366_s3] sm:$0xff] (!%p162_p2) }
   0xd   : > { %s369_s16 = smov (!%p185_p3, %s283_s16), 1 }
   0xe   : > { %s288_s17 = sshll.u32 %s369_s16, 3  ;;  %s289_s27 = sshll.u32 %s369_s16, 2 }
   0xf   : > { %s188_s20 = scalar_lea.vmem %s363_s0, %s288_s17  ;;  %s192_s30 = scalar_lea.vmem %s367_s4, %s289_s27 }
  0x10   : > { %v193_v0 = vld [vmem:[%s188_s20] sm:$0xff] }
  0x11   : > { %v197_v1 = vsel %vm196_vm0, %v193_v0, 0.0 }
  0x12   : > { %198 = vadd.xlane.f32.xlu0 %v197_v1 }
  0x9f   : > { %v199_v2 = vpop.xlane.xlu0 %198 }
  0xa0   : > { %v201_v3 = vmul.f32 0.03125, %v199_v2 }
  0xa2   : > { %v202_v4 = vsub.f32 %v193_v0, %v201_v3 }
  0xa4   : > { %v203_v5 = vmul.f32 %v202_v4, %v202_v4 }
  0xa6   : > { %v204_v6 = vsel %vm196_vm0, %v203_v5, 0.0 }
  0xa7   : > { %205 = vadd.xlane.f32.xlu0 %v204_v6 }
 0x134   : > { %v206_v7 = vpop.xlane.xlu0 %205 }
 0x135   : > { %v207_v8 = vmul.f32 0.03125, %v206_v7 }
 0x137   : > { %v208_v9 = vadd.f32 1e-05, %v207_v8 }
 0x139   : > { %302 = vrsqrt.f32 %v208_v9 }
 0x143   : > { %v303_v10 = vpop.eup %302 }
 0x144   : > { %v210_v12 = vmul.f32 %v303_v10, %v202_v4 }
 0x146   : > { %v217_v14 = vmul.f32 %v290_v11, %v210_v12 }
 0x148   : > { %v224_v16 = vadd.f32 %v291_v13, %v217_v14 }
 0x14a   : > { %v226_v17 = vadd.f32 %v225_v15, %v224_v16 }
 0x14c   : > { %v227_v18 = vpack.c.bf16 %v226_v17, %v226_v17 }
 0x14e   : > { %229 = vst.msk [vmem:[%s192_s30] sm:$0xf] %vm228_vm1, %v227_v18 }
 0x14f PF: > { %s14_s15 = sadd.s32 1, %s310_s15  }
 0x150   : > { %p11_p4 = scmp.ge.s32.totalorder %s14_s15, 4  }
 0x152   :  { %13 = sbr.rel (!%p11_p4) target bundleno = 1 (0x1), region = 66 }

// kernel: multimodal_gpt_forward.13
= control target key start
LH: loop header
LB: loop body
LE: loop exit
PB: predicated region body
PF: predicated region fallthrough
CT: control target
= control target key end

     0   :  { %s910_s21 = smov 0   ;;  %s912_s22 = smov 0   ;;  %s1083_s0 = inlined_call_operand.vmem [shape: bf16[2,64,24], index: 0, kind: input, shape index: {}]   ;;  %s1084_s1 = inlined_call_operand.vmem [shape: bf16[24,32], index: 1, kind: input, shape index: {}]   ;;  %s1085_s2 = inlined_call_operand.vmem [shape: f32[1,32], index: 2, kind: input, shape index: {}]   ;;  %s1086_s3 = inlined_call_operand.vmem [shape: f32[1,32], index: 3, kind: input, shape index: {}]   ;;  %s1087_s4 = inlined_call_operand.vmem [shape: f32[1,32], index: 4, kind: input, shape index: {}]   ;;  %s1088_s5 = inlined_call_operand.vmem [shape: f32[64,32], index: 5, kind: input, shape index: {}]   ;;  %s1089_s6 = inlined_call_operand.vmem [shape: bf16[2,64,32], index: 6, kind: output, shape index: {}]  }
   0x1   :  { %s914_s23 = smov 0  }
   0x2 LB: > { %s28_s24 = sadd.s32 1, %s869_s22  ;;  %p743_p0 = scmp.ge.s32.totalorder %s873_s23, 1  ;;  %s873_s23 = sphi %s914_s23, %s16_s23   ;;  %s869_s22 = sphi %s912_s22, %s1091_s22   ;;  %s865_s21 = sphi %s910_s21, %s1090_s21  }
   0x3   : > { %p30_p1 = scmp.ge.s32.totalorder %s28_s24, 2  ;;  %p244_p2 = scmp.lt.s32.totalorder %s873_s23, 3 }
   0x5   : > { %s1093_s24 = smov (%p30_p1, %s28_s24), 0  ;;  %p245_p3 = pnand %p743_p0, %p244_p2 }
   0x6   : > { %v829_v0 = vld [vmem:[%s1084_s1] sm:$0xff] (!%p245_p3)   ;;  %v830_v1 = vld [vmem:[%s1084_s1 + $0x8] ss:$0 sps:$4 sm:$0xff] (!%p245_p3)   ;;  %vm374_vm0 = vcmask (!%p245_p3), 1043456   ;;  %p288_p4 = scmp.lt.s32.totalorder (!%p245_p3), %s865_s21, 1  ;;  %vm361_vm1 = vcmask (!%p245_p3), 195584  }
   0x7   : > { %248 = sbr.rel (%p245_p3) target bundleno = 568 (0x238), region = 44  ;;  %787 = vmatprep.subr.bf16.mxu0 (!%p245_p3), %v829_v0  ;;  %799 = vmatprep.subr.bf16.mxu1 (!%p245_p3), %v829_v0  ;;  %v376_v2 = vsel (!%p245_p3), %vm374_vm0, %v830_v1, 0  ;;  %v748_v7 = vld [vmem:[%s1085_s2] ss:$0 sm:$0xff] (!%p245_p3)  ;;  %vm445_vm2 = vcmask (!%p245_p3), 261120   ;;  %vm627_vm3 = vcmask (!%p245_p3), 257024  }
   0x8   : > { %788 = vmatpush3.bf16.msra.mxu0 (!%p245_p3), %v829_v0  ;;  %801 = vmatpush3.bf16.msra.mxu1 (!%p245_p3), %v829_v0 }
   0x9   : > { %803 = vmatprep.subr.msk.bf16.mxu0 (!%p245_p3), %vm374_vm0, %v830_v1  ;;  %804 = vmatprep.subr.msk.bf16.mxu1 (!%p245_p3), %vm374_vm0, %v830_v1 }
   0xc   : > { %790 = vmatpush3.bf16.msra.mxu0 (!%p245_p3), %v376_v2  ;;  %802 = vmatpush3.bf16.msra.mxu1 (!%p245_p3), %v376_v2 }
   0xe   : > { %s1095_s21 = smov (!%p288_p4, %s865_s21), 1 }
   0xf   : > { %s771_s29 = sshll.u32 %s1095_s21, 5 }
  0x10   : > { %s295_s8 = scalar_lea.vmem %s1083_s0, %s771_s29  ;;  %s1017_s19 = scalar_lea.vmem %s1089_s6, %s771_s29 }
  0x11   : > { %v831_v3 = vld [vmem:[%s295_s8] sm:$0xff]   ;;  %v832_v4 = vld [vmem:[%s295_s8 + $0x8] sm:$0xff]   ;;  %v833_v5 = vld [vmem:[%s295_s8 + $0x10] sm:$0xff]  }
  0x12   : > { %791 = vmatprep.mubr.msk.bf16.mxu0 %vm361_vm1, %v831_v3  ;;  %v834_v6 = vld [vmem:[%s295_s8 + $0x18] sm:$0xff]   ;;  %795 = vmatprep.mubr.msk.bf16.mxu1 %vm361_vm1, %v833_v5 }
  0x13   : > { %792 = vmatmul.mubr.msk.bf16.vlgmr.msra.gmra.mrb[0].mxu0 %vm361_vm1, %v832_v4  ;;  %796 = vmatmul.mubr.msk.bf16.vlgmr.msra.gmra.mrb[0].mxu1 %vm361_vm1, %v834_v6 }
  0xe6   : > { %v793_v8 = vpop.f32.mrb[0].mxu0  ;;  %v797_v12 = vpop.f32.mrb[0].mxu1 }
  0xe7   : > { %v421_v9 = vadd.f32 %v793_v8, %v748_v7  ;;  %v412_v10 = vpop.f32.mrb[1].mxu0  ;;  %v428_v15 = vpop.f32.mrb[1].mxu1  ;;  %v437_v28 = vadd.f32 %v797_v12, %v748_v7 }
  0xe8   : > { %v413_v11 = vadd.f32 %v748_v7, %v412_v10  ;;  %v794_v13 = vpop.f32.mrb[2].mxu0  ;;  %v429_v18 = vadd.f32 %v748_v7, %v428_v15  ;;  %v798_v19 = vpop.f32.mrb[2].mxu1 }
  0xe9   : > { %v424_v14 = vadd.f32 %v794_v13, %v748_v7  ;;  %v415_v16 = vpop.f32.mrb[3].mxu0  ;;  %v452_v17 = vsel %vm445_vm2, %v421_v9, 0.0  ;;  %v431_v21 = vpop.f32.mrb[3].mxu1  ;;  %v440_v26 = vadd.f32 %v798_v19, %v748_v7  ;;  %v464_v31 = vsel %vm445_vm2, %v437_v28, 0.0 }
  0xea   : > { %453 = vadd.xlane.f32.xlu1 %v452_v17  ;;  %v446_v20 = vsel %vm445_vm2, %v413_v11, 0.0  ;;  %v458_v22 = vsel %vm445_vm2, %v429_v18, 0.0  ;;  %v432_v23 = vadd.f32 %v748_v7, %v431_v21  ;;  %v416_v25 = vadd.f32 %v748_v7, %v415_v16 }
  0xeb   : > { %447 = vadd.xlane.f32.xlu0 %v446_v20  ;;  %v455_v24 = vsel %vm445_vm2, %v424_v14, 0.0  ;;  %v467_v30 = vsel %vm445_vm2, %v440_v26, 0.0 }
  0xec   : > { %v461_v27 = vsel %vm445_vm2, %v432_v23, 0.0  ;;  %v449_v29 = vsel %vm445_vm2, %v416_v25, 0.0 }
  0xee   : > { %456 = vadd.xlane.f32.xlu1 %v455_v24 }
  0xef   : > { %459 = vadd.xlane.f32.xlu0 %v458_v22 }
  0xf2   : > { %462 = vadd.xlane.f32.xlu1 %v461_v27 }
  0xf3   : > { %450 = vadd.xlane.f32.xlu0 %v449_v29 }
  0xf6   : > { %468 = vadd.xlane.f32.xlu1 %v467_v30 }
  0xf7   : > { %465 = vadd.xlane.f32.xlu0 %v464_v31 }
 0x177   : > { %v454_v32 = vpop.xlane.xlu1 %453 }
 0x178   : > { %v473_v33 = vmul.f32 0.03125, %v454_v32  ;;  %v448_v34 = vpop.xlane.xlu0 %447  ;;  %v1002_v32 = vld [vmem:[%s1087_s4] ss:$0 sm:$0xff] }
 0x179   : > { %v471_v35 = vmul.f32 0.03125, %v448_v34 }
 0x17a   : > { %v953_v36 = vsub.f32 %v421_v9, %v473_v33 }
 0x17b   : > { %v955_v37 = vsub.f32 %v413_v11, %v471_v35  ;;  %v457_v38 = vpop.xlane.xlu1 %456 }
 0x17c   : > { %v474_v39 = vmul.f32 0.03125, %v457_v38  ;;  %v460_v40 = vpop.xlane.xlu0 %459  ;;  %v489_v41 = vmul.f32 %v953_v36, %v953_v36 }
 0x17d   : > { %v475_v42 = vmul.f32 0.03125, %v460_v40  ;;  %v487_v45 = vmul.f32 %v955_v37, %v955_v37 }
 0x17e   : > { %v959_v43 = vsub.f32 %v424_v14, %v474_v39  ;;  %v501_v44 = vsel %vm445_vm2, %v489_v41, 0.0  ;;  %v581_v39 = vld [vmem:[%s1088_s5 + $0x10] sm:$0xff] }
 0x17f   : > { %v964_v46 = vsub.f32 %v429_v18, %v475_v42  ;;  %v463_v47 = vpop.xlane.xlu1 %462  ;;  %502 = vadd.xlane.f32.xlu0 %v501_v44  ;;  %v495_v53 = vsel %vm445_vm2, %v487_v45, 0.0 }
 0x180   : > { %v476_v48 = vmul.f32 0.03125, %v463_v47  ;;  %v451_v49 = vpop.xlane.xlu0 %450  ;;  %v490_v50 = vmul.f32 %v959_v43, %v959_v43 }
 0x181   : > { %v472_v51 = vmul.f32 0.03125, %v451_v49  ;;  %v491_v54 = vmul.f32 %v964_v46, %v964_v46 }
 0x182   : > { %v504_v52 = vsel %vm445_vm2, %v490_v50, 0.0  ;;  %v972_v55 = vsub.f32 %v432_v23, %v476_v48 }
 0x183   : > { %v974_v56 = vsub.f32 %v416_v25, %v472_v51  ;;  %505 = vadd.xlane.f32.xlu1 %v504_v52  ;;  %v469_v57 = vpop.xlane.xlu1 %468  ;;  %496 = vadd.xlane.f32.xlu0 %v495_v53  ;;  %v507_v62 = vsel %vm445_vm2, %v491_v54, 0.0  ;;  %v579_v52 = vld [vmem:[%s1088_s5] sm:$0xff] }
 0x184   : > { %v478_v58 = vmul.f32 0.03125, %v469_v57  ;;  %v466_v59 = vpop.xlane.xlu0 %465  ;;  %v492_v2 = vmul.f32 %v972_v55, %v972_v55 }
 0x185   : > { %v477_v60 = vmul.f32 0.03125, %v466_v59  ;;  %v488_v61 = vmul.f32 %v974_v56, %v974_v56 }
 0x186   : > { %v979_v63 = vsub.f32 %v440_v26, %v478_v58  ;;  %v510_v4 = vsel %vm445_vm2, %v492_v2, 0.0 }
 0x187   : > { %v981_v0 = vsub.f32 %v437_v28, %v477_v60  ;;  %508 = vadd.xlane.f32.xlu0 %v507_v62  ;;  %v498_v1 = vsel %vm445_vm2, %v488_v61, 0.0  ;;  %v996_v28 = vld [vmem:[%s1086_s3] ss:$0 sm:$0xff] }
 0x188   : > { %499 = vadd.xlane.f32.xlu1 %v498_v1  ;;  %v494_v6 = vmul.f32 %v979_v63, %v979_v63  ;;  %v583_v61 = vld [vmem:[%s1088_s5 + $0x20] sm:$0xff] }
 0x189   : > { %v493_v3 = vmul.f32 %v981_v0, %v981_v0 }
 0x18a   : > { %v516_v7 = vsel %vm445_vm2, %v494_v6, 0.0 }
 0x18b   : > { %v513_v5 = vsel %vm445_vm2, %v493_v3, 0.0 }
 0x18c   : > { %511 = vadd.xlane.f32.xlu1 %v510_v4  ;;  %514 = vadd.xlane.f32.xlu0 %v513_v5 }
 0x190   : > { %517 = vadd.xlane.f32.xlu1 %v516_v7 }
 0x20c   : > { %v503_v8 = vpop.xlane.xlu0 %502 }
 0x20d   : > { %v521_v9 = vmul.f32 0.03125, %v503_v8 }
 0x20f   : > { %v529_v10 = vadd.f32 1e-05, %v521_v9 }
 0x210   : > { %v506_v11 = vpop.xlane.xlu1 %505  ;;  %v497_v12 = vpop.xlane.xlu0 %496 }
 0x211   : > { %835 = vrsqrt.f32 %v529_v10  ;;  %v522_v13 = vmul.f32 0.03125, %v506_v11  ;;  %v519_v14 = vmul.f32 0.03125, %v497_v12 }
 0x213   : > { %v530_v15 = vadd.f32 1e-05, %v522_v13  ;;  %v527_v16 = vadd.f32 1e-05, %v519_v14  ;;  %v584_v13 = vld [vmem:[%s1088_s5 + $0x28] sm:$0xff] }
 0x214   : > { %v509_v17 = vpop.xlane.xlu0 %508 }
 0x215   : > { %837 = vrsqrt.f32 %v530_v15  ;;  %v523_v18 = vmul.f32 0.03125, %v509_v17  ;;  %v500_v19 = vpop.xlane.xlu1 %499 }
 0x216   : > { %839 = vrsqrt.f32 %v527_v16  ;;  %v520_v20 = vmul.f32 0.03125, %v500_v19 }
 0x217   : > { %v531_v21 = vadd.f32 1e-05, %v523_v18 }
 0x218   : > { %v528_v22 = vadd.f32 1e-05, %v520_v20 }
 0x219   : > { %841 = vrsqrt.f32 %v531_v21  ;;  %v512_v23 = vpop.xlane.xlu1 %511  ;;  %v515_v24 = vpop.xlane.xlu0 %514  ;;  %v586_v21 = vld [vmem:[%s1088_s5 + $0x38] sm:$0xff] }
 0x21a   : > { %843 = vrsqrt.f32 %v528_v22  ;;  %v524_v25 = vmul.f32 0.03125, %v512_v23  ;;  %v525_v26 = vmul.f32 0.03125, %v515_v24 }
 0x21b   : > { %v836_v27 = vpop.eup %835 }
 0x21c   : > { %v545_v29 = vmul.f32 %v836_v27, %v953_v36  ;;  %v532_v30 = vadd.f32 1e-05, %v524_v25  ;;  %v533_v31 = vadd.f32 1e-05, %v525_v26 }
 0x21d   : > { %v518_v33 = vpop.xlane.xlu1 %517 }
 0x21e   : > { %v559_v34 = vmul.f32 %v996_v28, %v545_v29  ;;  %845 = vrsqrt.f32 %v532_v30  ;;  %v526_v35 = vmul.f32 0.03125, %v518_v33 }
 0x21f   : > { %v838_v38 = vpop.eup %837  ;;  %847 = vrsqrt.f32 %v533_v31 }
 0x220   : > { %v840_v36 = vpop.eup %839  ;;  %v573_v40 = vadd.f32 %v1002_v32, %v559_v34  ;;  %v546_v41 = vmul.f32 %v838_v38, %v959_v43  ;;  %v534_v42 = vadd.f32 1e-05, %v526_v35  ;;  %v582_v43 = vld [vmem:[%s1088_s5 + $0x18] sm:$0xff] }
 0x221   : > { %v543_v44 = vmul.f32 %v840_v36, %v955_v37 }
 0x222   : > { %v589_v45 = vadd.f32 %v581_v39, %v573_v40  ;;  %v560_v47 = vmul.f32 %v996_v28, %v546_v41  ;;  %849 = vrsqrt.f32 %v534_v42 }
 0x223   : > { %v842_v48 = vpop.eup %841  ;;  %v557_v49 = vmul.f32 %v996_v28, %v543_v44 }
 0x224   : > { %v844_v37 = vpop.eup %843  ;;  %v775_v50 = vpack.c.bf16 %v589_v45, %v589_v45  ;;  %v574_v51 = vadd.f32 %v1002_v32, %v560_v47  ;;  %v547_v53 = vmul.f32 %v842_v48, %v964_v46 }
 0x225   : > { %v571_v54 = vadd.f32 %v1002_v32, %v557_v49  ;;  %v544_v57 = vmul.f32 %v844_v37, %v974_v56  ;;  %v580_v56 = vld [vmem:[%s1088_s5 + $0x8] sm:$0xff] }
 0x226   : > { %630 = vst.msk [vmem:[%s1017_s19 + $0x8] sm:$0xf] %vm627_vm3, %v775_v50  ;;  %v590_v58 = vadd.f32 %v582_v43, %v574_v51  ;;  %v561_v59 = vmul.f32 %v996_v28, %v547_v53 }
 0x227   : > { %v587_v60 = vadd.f32 %v579_v52, %v571_v54  ;;  %v558_v62 = vmul.f32 %v996_v28, %v544_v57 }
 0x228   : > { %v846_v1 = vpop.eup %845  ;;  %v776_v46 = vpack.c.bf16 %v590_v58, %v590_v58  ;;  %v575_v2 = vadd.f32 %v1002_v32, %v561_v59 }
 0x229   : > { %v848_v3 = vpop.eup %847  ;;  %v773_v4 = vpack.c.bf16 %v587_v60, %v587_v60  ;;  %v572_v5 = vadd.f32 %v1002_v32, %v558_v62  ;;  %v548_v6 = vmul.f32 %v846_v1, %v972_v55 }
 0x22a   : > { %631 = vst.msk [vmem:[%s1017_s19 + $0xc] sm:$0xf] %vm627_vm3, %v776_v46  ;;  %v591_v7 = vadd.f32 %v583_v61, %v575_v2  ;;  %v549_v8 = vmul.f32 %v848_v3, %v981_v0  ;;  %v585_v0 = vld [vmem:[%s1088_s5 + $0x30] sm:$0xff] }
 0x22b   : > { %628 = vst.msk [vmem:[%s1017_s19] sm:$0xf] %vm627_vm3, %v773_v4  ;;  %v588_v9 = vadd.f32 %v580_v56, %v572_v5  ;;  %v562_v10 = vmul.f32 %v996_v28, %v548_v6 }
 0x22c   : > { %v850_v11 = vpop.eup %849  ;;  %v777_v12 = vpack.c.bf16 %v591_v7, %v591_v7  ;;  %v563_v55 = vmul.f32 %v996_v28, %v549_v8 }
 0x22d   : > { %v774_v14 = vpack.c.bf16 %v588_v9, %v588_v9  ;;  %v576_v15 = vadd.f32 %v1002_v32, %v562_v10  ;;  %v550_v16 = vmul.f32 %v850_v11, %v979_v63 }
 0x22e   : > { %632 = vst.msk [vmem:[%s1017_s19 + $0x10] sm:$0xf] %vm627_vm3, %v777_v12  ;;  %v577_v17 = vadd.f32 %v1002_v32, %v563_v55 }
 0x22f   : > { %629 = vst.msk [vmem:[%s1017_s19 + $0x4] sm:$0xf] %vm627_vm3, %v774_v14  ;;  %v592_v18 = vadd.f32 %v584_v13, %v576_v15  ;;  %v564_v19 = vmul.f32 %v996_v28, %v550_v16 }
 0x230   : > { %v593_v20 = vadd.f32 %v585_v0, %v577_v17 }
 0x231   : > { %v778_v22 = vpack.c.bf16 %v592_v18, %v592_v18  ;;  %v578_v23 = vadd.f32 %v1002_v32, %v564_v19 }
 0x232   : > { %v779_v24 = vpack.c.bf16 %v593_v20, %v593_v20 }
 0x233   : > { %633 = vst.msk [vmem:[%s1017_s19 + $0x14] sm:$0xf] %vm627_vm3, %v778_v22  ;;  %v594_v63 = vadd.f32 %v586_v21, %v578_v23 }
 0x234   : > { %634 = vst.msk [vmem:[%s1017_s19 + $0x18] sm:$0xf] %vm627_vm3, %v779_v24 }
 0x235   : > { %v780_v25 = vpack.c.bf16 %v594_v63, %v594_v63 }
 0x237   : > { %635 = vst.msk [vmem:[%s1017_s19 + $0x1c] sm:$0xf] %vm627_vm3, %v780_v25 }
 0x238 PF: > { %s16_s23 = sadd.s32 1, %s873_s23   ;;  %s1090_s21 = smov %s869_s22 }
 0x239   : > { %p13_p5 = scmp.ge.s32.totalorder %s16_s23, 4   ;;  %s1091_s22 = smov %s1093_s24 }
 0x23b   :  { %15 = sbr.rel (!%p13_p5) target bundleno = 2 (0x2), region = 77 }

// kernel: multimodal_gpt_forward.15
= control target key start
LH: loop header
LB: loop body
LE: loop exit
PB: predicated region body
PF: predicated region fallthrough
CT: control target
= control target key end

     0   :  { %s1128_s18 = smov 0   ;;  %s1130_s19 = smov 0   ;;  %s1315_s0 = inlined_call_operand.vmem [shape: bf16[2,72,32], index: 0, kind: input, shape index: {}]   ;;  %s1316_s1 = inlined_call_operand.vmem [shape: f32[1,32], index: 1, kind: input, shape index: {}]   ;;  %s1317_s2 = inlined_call_operand.vmem [shape: f32[1,32], index: 2, kind: input, shape index: {}]   ;;  %s1318_s3 = inlined_call_operand.vmem [shape: bf16[12,32,8], index: 3, kind: input, shape index: {}]   ;;  %s1319_s4 = inlined_call_operand.vmem [shape: f32[12,1,8], index: 4, kind: input, shape index: {}]   ;;  %s1320_s5 = inlined_call_operand.vmem [shape: bf16[2,12,72,8], index: 5, kind: output, shape index: {}]  }
   0x1   :  { %s1132_s20 = smov 0   ;;  %s1134_s21 = smov 0  }
   0x2   :  { %s1136_s22 = smov 0  }
   0x3 LB: > { %s27_s23 = sadd.s32 1, %s1086_s20  ;;  %s34_s24 = sadd.s32 1, %s1090_s21  ;;  %s1094_s22 = sphi %s1136_s22, %s15_s22   ;;  %s1090_s21 = sphi %s1134_s21, %s1326_s21   ;;  %s1086_s20 = sphi %s1132_s20, %s1325_s20   ;;  %s1082_s19 = sphi %s1130_s19, %s1324_s19   ;;  %s1078_s18 = sphi %s1128_s18, %s1323_s18  }
   0x4   : > { %p28_p0 = scmp.ge.s32.totalorder %s27_s23, 12  ;;  %p872_p1 = scmp.ge.s32.totalorder %s1094_s22, 1 }
   0x5   : > { %p235_p2 = scmp.lt.s32.totalorder %s1094_s22, 25 }
   0x6   : > { %s1328_s23 = smov (%p28_p0, %s27_s23), 0  ;;  %s1330_s24 = smov (!%p28_p0, %s34_s24), %s1090_s21 }
   0x7   : > { %p236_p3 = pnand %p872_p1, %p235_p2  ;;  %p36_p4 = scmp.ge.s32.totalorder %s1330_s24, 2 }
   0x8   : > { %p284_p5 = scmp.lt.s32.totalorder (!%p236_p3), %s1082_s19, 1  ;;  %p293_p6 = scmp.lt.s32.totalorder (!%p236_p3), %s1078_s18, 11 }
   0x9   : > { %s1332_s24 = smov (%p36_p4, %s1330_s24), 0  ;;  %239 = sbr.rel (%p236_p3) target bundleno = 603 (0x25b), region = 40 }
   0xa   : > { %1321 = sst [smem:[#allocation3_spill]] %s1332_s24  ;;  %p877_p7 = scmp.ne.s32.totalorder (!%p236_p3), %s1078_s18, 0 }
  0x10   : > { %s1334_s19 = smov (!%p284_p5, %s1082_s19), 1  ;;  %vm340_vm0 = vcmask (!%p877_p7), 261120   ;;  %vm526_vm1 = vcmask (!%p877_p7), 257024  }
  0x11   : > { %s1162_s25 = scalar_select %p293_p6, %s1078_s18, 11 }
  0x12   : > { %s986_s26 = smul.u32 36, %s1334_s19 }
  0x13   : > { %s913_s27 = sshll.u32 %s1162_s25, 4  ;;  %s300_s30 = scalar_lea.vmem %s1319_s4, %s1162_s25 }
  0x14   : > { %s1172_s8 = scalar_lea.vmem %s1315_s0, %s986_s26  ;;  %s1177_s11 = scalar_lea.vmem %s1318_s3, %s913_s27 }
  0x15   : > { %s987_s12 = smul.u32 9, %s1162_s25  ;;  %v933_v0 = vld [vmem:[%s1172_s8] sm:$0xff] (!%p877_p7)   ;;  %v948_v1 = vld [vmem:[%s1172_s8 + $0x8] sm:$0xff] (!%p877_p7)   ;;  %v949_v6 = vld [vmem:[%s1172_s8 + $0x10] sm:$0xff] (!%p877_p7)  }
  0x16   : > { %s988_s13 = smul.u32 108, %s1334_s19  ;;  %v934_v2 = vunpack.c.l.bf16 (!%p877_p7), %v933_v0  ;;  %v938_v3 = vunpack.c.l.bf16 (!%p877_p7), %v948_v1  ;;  %v935_v4 = vunpack.c.h.bf16 (!%p877_p7), %v933_v0  ;;  %v939_v5 = vunpack.c.h.bf16 (!%p877_p7), %v948_v1  ;;  %v950_v13 = vld [vmem:[%s1172_s8 + $0x18] sm:$0xff] (!%p877_p7)   ;;  %v328_v18 = vld [vmem:[%s1172_s8 + $0x20] sm:$0xf] (!%p877_p7) }
  0x17   : > { %319 = sbr.rel (%p877_p7) target bundleno = 357 (0x165), region = 44  ;;  %v942_v11 = vunpack.c.l.bf16 (!%p877_p7), %v949_v6  ;;  %v943_v12 = vunpack.c.h.bf16 (!%p877_p7), %v949_v6  ;;  %v946_v16 = vunpack.c.l.bf16 (!%p877_p7), %v950_v13  ;;  %v947_v17 = vunpack.c.h.bf16 (!%p877_p7), %v950_v13 }
  0x18   : > { %s311_s14 = sadd.s32 %s988_s13, %s987_s12  ;;  %v341_v7 = vsel (!%p877_p7), %vm340_vm0, %v934_v2, 0.0  ;;  %v347_v8 = vsel (!%p877_p7), %vm340_vm0, %v938_v3, 0.0  ;;  %v344_v9 = vsel (!%p877_p7), %vm340_vm0, %v935_v4, 0.0  ;;  %v350_v10 = vsel (!%p877_p7), %vm340_vm0, %v939_v5, 0.0 }
  0x19   : > { %s876_s15 = sshll.u32 %s311_s14, 2  ;;  %342 = vadd.xlane.f32.xlu0 (!%p877_p7), %v341_v7  ;;  %348 = vadd.xlane.f32.xlu1 (!%p877_p7), %v347_v8  ;;  %v353_v14 = vsel (!%p877_p7), %vm340_vm0, %v942_v11, 0.0  ;;  %v356_v15 = vsel (!%p877_p7), %vm340_vm0, %v943_v12, 0.0  ;;  %v359_v19 = vsel (!%p877_p7), %vm340_vm0, %v946_v16, 0.0  ;;  %v362_v20 = vsel (!%p877_p7), %vm340_vm0, %v947_v17, 0.0 }
  0x1a   : > { %s1183_s24 = scalar_lea.vmem %s1320_s5, %s876_s15  ;;  %v337_v21 = vunpack.c.l.bf16 (!%p877_p7), %v328_v18 }
  0x1c   : > { %v365_v22 = vsel (!%p877_p7), %vm340_vm0, %v337_v21, 0.0 }
  0x1d   : > { %345 = vadd.xlane.f32.xlu0 (!%p877_p7), %v344_v9  ;;  %351 = vadd.xlane.f32.xlu1 (!%p877_p7), %v350_v10 }
  0x21   : > { %354 = vadd.xlane.f32.xlu0 %v353_v14  ;;  %357 = vadd.xlane.f32.xlu1 %v356_v15 }
  0x25   : > { %360 = vadd.xlane.f32.xlu0 %v359_v19  ;;  %363 = vadd.xlane.f32.xlu1 %v362_v20 }
  0x29   : > { %366 = vadd.xlane.f32.xlu0 %v365_v22 }
  0xa6   : > { %v343_v23 = vpop.xlane.xlu0 %342  ;;  %v349_v24 = vpop.xlane.xlu1 %348 }
  0xa7   : > { %v369_v25 = vmul.f32 0.03125, %v343_v23  ;;  %v371_v26 = vmul.f32 0.03125, %v349_v24  ;;  %v878_v24 = vld [vmem:[%s1316_s1] ss:$0 sm:$0xff] }
  0xa9   : > { %v1200_v27 = vsub.f32 %v934_v2, %v369_v25  ;;  %v1202_v28 = vsub.f32 %v938_v3, %v371_v26 }
  0xaa   : > { %v346_v29 = vpop.xlane.xlu0 %345  ;;  %v352_v30 = vpop.xlane.xlu1 %351 }
  0xab   : > { %v370_v31 = vmul.f32 0.03125, %v346_v29  ;;  %v372_v32 = vmul.f32 0.03125, %v352_v30  ;;  %v387_v33 = vmul.f32 %v1200_v27, %v1200_v27  ;;  %v389_v34 = vmul.f32 %v1202_v28, %v1202_v28 }
  0xad   : > { %v1208_v35 = vsub.f32 %v935_v4, %v370_v31  ;;  %v1210_v36 = vsub.f32 %v939_v5, %v372_v32  ;;  %v396_v37 = vsel %vm340_vm0, %v387_v33, 0.0  ;;  %v402_v40 = vsel %vm340_vm0, %v389_v34, 0.0  ;;  %v879_v32 = vld [vmem:[%s1317_s2] ss:$0 sm:$0xff] }
  0xae   : > { %397 = vadd.xlane.f32.xlu1 %v396_v37  ;;  %v355_v38 = vpop.xlane.xlu0 %354  ;;  %v358_v39 = vpop.xlane.xlu1 %357 }
  0xaf   : > { %v373_v41 = vmul.f32 0.03125, %v355_v38  ;;  %v374_v42 = vmul.f32 0.03125, %v358_v39  ;;  %v388_v43 = vmul.f32 %v1208_v35, %v1208_v35  ;;  %v390_v44 = vmul.f32 %v1210_v36, %v1210_v36 }
  0xb1   : > { %v1218_v45 = vsub.f32 %v942_v11, %v373_v41  ;;  %v1220_v46 = vsub.f32 %v943_v12, %v374_v42  ;;  %v399_v47 = vsel %vm340_vm0, %v388_v43, 0.0  ;;  %v405_v50 = vsel %vm340_vm0, %v390_v44, 0.0 }
  0xb2   : > { %403 = vadd.xlane.f32.xlu1 %v402_v40  ;;  %400 = vadd.xlane.f32.xlu0 %v399_v47  ;;  %v361_v48 = vpop.xlane.xlu0 %360  ;;  %v364_v49 = vpop.xlane.xlu1 %363 }
  0xb3   : > { %v375_v51 = vmul.f32 0.03125, %v361_v48  ;;  %v376_v52 = vmul.f32 0.03125, %v364_v49  ;;  %v391_v53 = vmul.f32 %v1218_v45, %v1218_v45  ;;  %v392_v54 = vmul.f32 %v1220_v46, %v1220_v46 }
  0xb5   : > { %v1228_v55 = vsub.f32 %v946_v16, %v375_v51  ;;  %v1230_v56 = vsub.f32 %v947_v17, %v376_v52  ;;  %v408_v57 = vsel %vm340_vm0, %v391_v53, 0.0  ;;  %v411_v60 = vsel %vm340_vm0, %v392_v54, 0.0 }
  0xb6   : > { %406 = vadd.xlane.f32.xlu0 %v405_v50  ;;  %409 = vadd.xlane.f32.xlu1 %v408_v57  ;;  %v367_v58 = vpop.xlane.xlu0 %366 }
  0xb7   : > { %v377_v59 = vmul.f32 0.03125, %v367_v58  ;;  %v393_v61 = vmul.f32 %v1228_v55, %v1228_v55  ;;  %v394_v62 = vmul.f32 %v1230_v56, %v1230_v56 }
  0xb9   : > { %v1238_v63 = vsub.f32 %v337_v21, %v377_v59  ;;  %v414_v0 = vsel %vm340_vm0, %v393_v61, 0.0  ;;  %v417_v1 = vsel %vm340_vm0, %v394_v62, 0.0 }
  0xba   : > { %412 = vadd.xlane.f32.xlu0 %v411_v60  ;;  %415 = vadd.xlane.f32.xlu1 %v414_v0 }
  0xbb   : > { %v395_v2 = vmul.f32 %v1238_v63, %v1238_v63 }
  0xbd   : > { %v420_v3 = vsel %vm340_vm0, %v395_v2, 0.0 }
  0xbe   : > { %418 = vadd.xlane.f32.xlu0 %v417_v1  ;;  %421 = vadd.xlane.f32.xlu1 %v420_v3 }
 0x13b   : > { %v398_v4 = vpop.xlane.xlu1 %397 }
 0x13c   : > { %v423_v5 = vmul.f32 0.03125, %v398_v4 }
 0x13e   : > { %v432_v6 = vadd.f32 1e-05, %v423_v5 }
 0x13f   : > { %v404_v7 = vpop.xlane.xlu1 %403  ;;  %v401_v8 = vpop.xlane.xlu0 %400 }
 0x140   : > { %1031 = vrsqrt.f32 %v432_v6  ;;  %v425_v9 = vmul.f32 0.03125, %v404_v7  ;;  %v424_v10 = vmul.f32 0.03125, %v401_v8 }
 0x142   : > { %v434_v11 = vadd.f32 1e-05, %v425_v9  ;;  %v433_v12 = vadd.f32 1e-05, %v424_v10 }
 0x143   : > { %v410_v13 = vpop.xlane.xlu1 %409  ;;  %v407_v14 = vpop.xlane.xlu0 %406 }
 0x144   : > { %1033 = vrsqrt.f32 %v434_v11  ;;  %v427_v15 = vmul.f32 0.03125, %v410_v13  ;;  %v426_v16 = vmul.f32 0.03125, %v407_v14 }
 0x145   : > { %1035 = vrsqrt.f32 %v433_v12 }
 0x146   : > { %v436_v17 = vadd.f32 1e-05, %v427_v15  ;;  %v435_v18 = vadd.f32 1e-05, %v426_v16 }
 0x147   : > { %v416_v19 = vpop.xlane.xlu1 %415  ;;  %v413_v20 = vpop.xlane.xlu0 %412 }
 0x148   : > { %1037 = vrsqrt.f32 %v436_v17  ;;  %v429_v21 = vmul.f32 0.03125, %v416_v19  ;;  %v428_v22 = vmul.f32 0.03125, %v413_v20 }
 0x149   : > { %1039 = vrsqrt.f32 %v435_v18 }
 0x14a   : > { %v1032_v23 = vpop.eup %1031  ;;  %v438_v25 = vadd.f32 1e-05, %v429_v21  ;;  %v437_v26 = vadd.f32 1e-05, %v428_v22 }
 0x14b   : > { %v450_v29 = vmul.f32 %v1032_v23, %v1200_v27  ;;  %v422_v30 = vpop.xlane.xlu1 %421  ;;  %v419_v31 = vpop.xlane.xlu0 %418 }
 0x14c   : > { %1041 = vrsqrt.f32 %v438_v25  ;;  %v431_v33 = vmul.f32 0.03125, %v422_v30  ;;  %v430_v34 = vmul.f32 0.03125, %v419_v31 }
 0x14d   : > { %v465_v37 = vmul.f32 %v878_v24, %v450_v29  ;;  %1043 = vrsqrt.f32 %v437_v26 }
 0x14e   : > { %v1034_v38 = vpop.eup %1033  ;;  %v440_v39 = vadd.f32 1e-05, %v431_v33  ;;  %v439_v40 = vadd.f32 1e-05, %v430_v34 }
 0x14f   : > { %v1036_v41 = vpop.eup %1035  ;;  %v480_v42 = vadd.f32 %v879_v32, %v465_v37  ;;  %v452_v43 = vmul.f32 %v1034_v38, %v1202_v28 }
 0x150   : > { %v451_v27 = vmul.f32 %v1036_v41, %v1208_v35  ;;  %1045 = vrsqrt.f32 %v440_v39 }
 0x151   : > { %v914_v44 = vpack.c.bf16 %v480_v42, %v480_v42  ;;  %v467_v47 = vmul.f32 %v878_v24, %v452_v43  ;;  %1047 = vrsqrt.f32 %v439_v40 }
 0x152   : > { %v1038_v48 = vpop.eup %1037  ;;  %v466_v49 = vmul.f32 %v878_v24, %v451_v27 }
 0x153   : > { %v1040_v50 = vpop.eup %1039  ;;  %527 = vst.msk [vmem:[#allocation2] sm:$0xf] %vm526_vm1, %v914_v44  ;;  %v482_v51 = vadd.f32 %v879_v32, %v467_v47  ;;  %v454_v52 = vmul.f32 %v1038_v48, %v1218_v45 }
 0x154   : > { %v481_v53 = vadd.f32 %v879_v32, %v466_v49  ;;  %v453_v54 = vmul.f32 %v1040_v50, %v1210_v36 }
 0x155   : > { %v916_v57 = vpack.c.bf16 %v482_v51, %v482_v51  ;;  %v469_v28 = vmul.f32 %v878_v24, %v454_v52 }
 0x156   : > { %v1042_v58 = vpop.eup %1041  ;;  %v915_v59 = vpack.c.bf16 %v481_v53, %v481_v53  ;;  %v468_v35 = vmul.f32 %v878_v24, %v453_v54 }
 0x157   : > { %v1044_v60 = vpop.eup %1043  ;;  %529 = vst.msk [vmem:[#allocation2 + $0x8] sm:$0xf] %vm526_vm1, %v916_v57  ;;  %v484_v61 = vadd.f32 %v879_v32, %v469_v28  ;;  %v456_v62 = vmul.f32 %v1042_v58, %v1228_v55 }
 0x158   : > { %528 = vst.msk [vmem:[#allocation2 + $0x4] sm:$0xf] %vm526_vm1, %v915_v59  ;;  %v483_v0 = vadd.f32 %v879_v32, %v468_v35  ;;  %v455_v1 = vmul.f32 %v1044_v60, %v1220_v46 }
 0x159   : > { %v918_v45 = vpack.c.bf16 %v484_v61, %v484_v61  ;;  %v471_v2 = vmul.f32 %v878_v24, %v456_v62 }
 0x15a   : > { %v1046_v3 = vpop.eup %1045  ;;  %v917_v36 = vpack.c.bf16 %v483_v0, %v483_v0  ;;  %v470_v4 = vmul.f32 %v878_v24, %v455_v1 }
 0x15b   : > { %v1048_v5 = vpop.eup %1047  ;;  %531 = vst.msk [vmem:[#allocation2 + $0x10] sm:$0xf] %vm526_vm1, %v918_v45  ;;  %v486_v6 = vadd.f32 %v879_v32, %v471_v2  ;;  %v458_v7 = vmul.f32 %v1046_v3, %v1238_v63 }
 0x15c   : > { %530 = vst.msk [vmem:[#allocation2 + $0xc] sm:$0xf] %vm526_vm1, %v917_v36  ;;  %v485_v8 = vadd.f32 %v879_v32, %v470_v4  ;;  %v457_v55 = vmul.f32 %v1048_v5, %v1230_v56 }
 0x15d   : > { %v920_v9 = vpack.c.bf16 %v486_v6, %v486_v6  ;;  %v473_v10 = vmul.f32 %v878_v24, %v458_v7 }
 0x15e   : > { %v919_v11 = vpack.c.bf16 %v485_v8, %v485_v8  ;;  %v472_v46 = vmul.f32 %v878_v24, %v457_v55 }
 0x15f   : > { %533 = vst.msk [vmem:[#allocation2 + $0x18] sm:$0xf] %vm526_vm1, %v920_v9  ;;  %v488_v12 = vadd.f32 %v879_v32, %v473_v10 }
 0x160   : > { %532 = vst.msk [vmem:[#allocation2 + $0x14] sm:$0xf] %vm526_vm1, %v919_v11  ;;  %v487_v13 = vadd.f32 %v879_v32, %v472_v46 }
 0x161   : > { %v922_v14 = vpack.c.bf16 %v488_v12, %v488_v12 }
 0x162   : > { %v921_v15 = vpack.c.bf16 %v487_v13, %v487_v13 }
 0x163   : > { %535 = vst.msk [vmem:[#allocation2 + $0x20] sm:$0xf] %vm526_vm1, %v922_v14 }
 0x164   : > { %534 = vst.msk [vmem:[#allocation2 + $0x1c] sm:$0xf] %vm526_vm1, %v921_v15 }
 0x165 PF: > { %v1049_v56 = vld [vmem:[%s1177_s11] sm:$0xff]   ;;  %v1096_v63 = vmov 0.0   ;;  %v1050_v16 = vld [vmem:[%s1177_s11 + $0x8] sm:$0xff]   ;;  %vm1097_vm2 = vmmov 0   ;;  %vm591_vm3 = vcmask 261120   ;;  %p679_p8 = scmp.lt.s32.totalorder %s1078_s18, 4 }
 0x166   : > { %958 = vmatprep.subr.bf16.mxu0 %v1096_v63  ;;  %982 = vmatprep.subr.bf16.mxu1 %v1096_v63  ;;  %v1051_v17 = vld [vmem:[#allocation2] sm:$0xff]   ;;  %v1053_v19 = vld [vmem:[#allocation2 + $0x8] sm:$0xff]   ;;  %vm728_vm4 = vcmask 60416  }
 0x167   : > { %959 = vmatpush3.bf16.msra.mxu0 %v1049_v56  ;;  %962 = vmatprep.mubr.msk.bf16.mxu0 %vm1097_vm2, %v1096_v63  ;;  %v1055_v21 = vld [vmem:[#allocation2 + $0x10] sm:$0xff]   ;;  %s680_s29 = scalar_select %p679_p8, 0.35355338, 1.0  ;;  %v889_v22 = vld [vmem:[%s300_s30] ss:$0 sm:$0xff] }
 0x168   : > { %960 = vmatprep.subr.bf16.mxu0 %v1096_v63  ;;  %984 = vmatpush3.bf16.msra.mxu1 %v1049_v56 }
 0x169   : > { %983 = vmatprep.subr.bf16.mxu1 %v1096_v63  ;;  %974 = vmatprep.mubr.msk.bf16.mxu1 %vm1097_vm2, %v1096_v63  ;;  %v681_v24 = vstv %s680_s29 }
 0x16a   : > { %v1054_v20 = vld [vmem:[#allocation2 + $0x20] ss:$0 sps:$4 sm:$0xff]  }
 0x16b   : > { %961 = vmatpush3.bf16.msra.mxu0 %v1050_v16  ;;  %v1052_v18 = vld [vmem:[#allocation2 + $0x18] sm:$0xff]  }
 0x16c   : > { %985 = vmatpush3.bf16.msra.mxu1 %v1050_v16 }
 0x16e   : > { %963 = vmatmul.mubr.msk.bf16.vlgmr.msra.gmra.mrb[0].mxu0 %vm591_vm3, %v1051_v17 }
 0x16f   : > { %966 = vmatprep.mubr.msk.bf16.mxu0 %vm1097_vm2, %v1096_v63  ;;  %975 = vmatmul.mubr.msk.bf16.vlgmr.msra.gmra.mrb[0].mxu1 %vm591_vm3, %v1052_v18 }
 0x170   : > { %978 = vmatprep.mubr.msk.bf16.mxu1 %vm1097_vm2, %v1096_v63 }
 0x176   : > { %967 = vmatmul.mubr.msk.bf16.gmra.mrb[4].mxu0 %vm591_vm3, %v1053_v19 }
 0x177   : > { %970 = vmatprep.mubr.msk.bf16.mxu0 %vm1097_vm2, %v1096_v63  ;;  %979 = vmatmul.mubr.msk.bf16.gmra.mrb[4].mxu1 %vm591_vm3, %v1054_v20 }
 0x17e   : > { %971 = vmatmul.mubr.msk.bf16.gmra.mrb[8].mxu0 %vm591_vm3, %v1055_v21 }
 0x241   : > { %v641_v23 = vpop.f32.mrb[0].mxu0 }
 0x242   : > { %v642_v25 = vadd.f32 %v889_v22, %v641_v23  ;;  %v964_v26 = vpop.f32.mrb[1].mxu0  ;;  %v665_v29 = vpop.f32.mrb[0].mxu1 }
 0x243   : > { %v644_v30 = vpop.f32.mrb[2].mxu0  ;;  %v666_v31 = vadd.f32 %v889_v22, %v665_v29  ;;  %v976_v32 = vpop.f32.mrb[1].mxu1 }
 0x244   : > { %v682_v33 = vmul.f32 %v681_v24, %v642_v25  ;;  %v645_v34 = vadd.f32 %v889_v22, %v644_v30  ;;  %v965_v37 = vpop.f32.mrb[3].mxu0  ;;  %v668_v38 = vpop.f32.mrb[2].mxu1 }
 0x245   : > { %v688_v39 = vmul.f32 %v681_v24, %v666_v31  ;;  %v669_v40 = vadd.f32 %v889_v22, %v668_v38  ;;  %v977_v41 = vpop.f32.mrb[3].mxu1 }
 0x246   : > { %v923_v42 = vpack.c.bf16 %v682_v33, %v682_v33  ;;  %v683_v43 = vmul.f32 %v681_v24, %v645_v34 }
 0x247   : > { %v929_v27 = vpack.c.bf16 %v688_v39, %v688_v39  ;;  %v689_v44 = vmul.f32 %v681_v24, %v669_v40 }
 0x248   : > { %729 = vst.msk [vmem:[%s1183_s24] sm:$0xf] %vm728_vm4, %v923_v42  ;;  %v924_v47 = vpack.c.bf16 %v683_v43, %v683_v43 }
 0x249   : > { %735 = vst.msk [vmem:[%s1183_s24 + $0x18] sm:$0xf] %vm728_vm4, %v929_v27  ;;  %v649_v48 = vpop.f32.mrb[4].mxu0  ;;  %v930_v49 = vpack.c.bf16 %v689_v44, %v689_v44 }
 0x24a   : > { %730 = vst.msk [vmem:[%s1183_s24 + $0x4] sm:$0xf] %vm728_vm4, %v924_v47  ;;  %v650_v50 = vadd.f32 %v889_v22, %v649_v48  ;;  %v968_v51 = vpop.f32.mrb[5].mxu0  ;;  %v673_v52 = vpop.f32.mrb[4].mxu1 }
 0x24b   : > { %736 = vst.msk [vmem:[%s1183_s24 + $0x1c] sm:$0xf] %vm728_vm4, %v930_v49  ;;  %v652_v53 = vpop.f32.mrb[6].mxu0  ;;  %v674_v54 = vadd.f32 %v889_v22, %v673_v52  ;;  %v980_v57 = vpop.f32.mrb[5].mxu1 }
 0x24c   : > { %v684_v28 = vmul.f32 %v681_v24, %v650_v50  ;;  %v653_v58 = vadd.f32 %v889_v22, %v652_v53  ;;  %v969_v59 = vpop.f32.mrb[7].mxu0  ;;  %v676_v35 = vpop.f32.mrb[6].mxu1 }
 0x24d   : > { %v690_v60 = vmul.f32 %v681_v24, %v674_v54  ;;  %v981_v61 = vpop.f32.mrb[7].mxu1 }
 0x24e   : > { %v925_v62 = vpack.c.bf16 %v684_v28, %v684_v28  ;;  %v685_v0 = vmul.f32 %v681_v24, %v653_v58 }
 0x24f   : > { %v931_v1 = vpack.c.bf16 %v690_v60, %v690_v60 }
 0x250   : > { %731 = vst.msk [vmem:[%s1183_s24 + $0x8] sm:$0xf] %vm728_vm4, %v925_v62  ;;  %v926_v45 = vpack.c.bf16 %v685_v0, %v685_v0 }
 0x251   : > { %737 = vst.msk [vmem:[%s1183_s24 + $0x20] sm:$0xf] %vm728_vm4, %v931_v1  ;;  %v657_v2 = vpop.f32.mrb[8].mxu0 }
 0x252   : > { %732 = vst.msk [vmem:[%s1183_s24 + $0xc] sm:$0xf] %vm728_vm4, %v926_v45  ;;  %v658_v3 = vadd.f32 %v889_v22, %v657_v2  ;;  %v972_v36 = vpop.f32.mrb[9].mxu0 }
 0x253   : > { %v660_v4 = vpop.f32.mrb[10].mxu0 }
 0x254   : > { %v686_v5 = vmul.f32 %v681_v24, %v658_v3  ;;  %v661_v6 = vadd.f32 %v889_v22, %v660_v4  ;;  %v973_v7 = vpop.f32.mrb[11].mxu0 }
 0x256   : > { %v927_v8 = vpack.c.bf16 %v686_v5, %v686_v5  ;;  %v687_v55 = vmul.f32 %v681_v24, %v661_v6 }
 0x258   : > { %733 = vst.msk [vmem:[%s1183_s24 + $0x10] sm:$0xf] %vm728_vm4, %v927_v8  ;;  %v928_v9 = vpack.c.bf16 %v687_v55, %v687_v55 }
 0x25a   : > { %734 = vst.msk [vmem:[%s1183_s24 + $0x14] sm:$0xf] %vm728_vm4, %v928_v9 }
 0x25b PF: > { %s15_s22 = sadd.s32 1, %s1094_s22   ;;  %s1322_s25 = sld [smem:[#allocation3_spill]] }
 0x25c   : > { %p12_p9 = scmp.ge.s32.totalorder %s15_s22, 26   ;;  %s1323_s18 = smov %s1086_s20 }
 0x25d   : > { %s1324_s19 = smov %s1090_s21  ;;  %s1325_s20 = smov %s1328_s23 }
 0x25e   :  { %14 = sbr.rel (!%p12_p9) target bundleno = 3 (0x3), region = 80 }
 0x261   : > { %s1326_s21 = smov %s1322_s25 }

// kernel: multimodal_gpt_forward.17
= control target key start
LH: loop header
LB: loop body
LE: loop exit
PB: predicated region body
PF: predicated region fallthrough
CT: control target
= control target key end

     0   :  { %s920_s15 = smov 0   ;;  %s922_s16 = smov 0   ;;  %s1034_s0 = inlined_call_operand.vmem [shape: bf16[2,4,72,8], index: 0, kind: input, shape index: {}]   ;;  %s1035_s1 = inlined_call_operand.vmem [shape: bf16[4,8,32], index: 1, kind: input, shape index: {}]   ;;  %s1036_s2 = inlined_call_operand.vmem [shape: f32[1,32], index: 2, kind: input, shape index: {}]   ;;  %s1037_s3 = inlined_call_operand.vmem [shape: bf16[2,72,32], index: 3, kind: input, shape index: {}]   ;;  %s1038_s4 = inlined_call_operand.vmem [shape: bf16[2,72,32], index: 4, kind: output, shape index: {}]  }
   0x1   :  { %s924_s17 = smov 0   ;;  %s926_s18 = smov 0  }
   0x2   :  { %s928_s19 = smov 0  }
   0x3 LB: > { %s26_s20 = sadd.s32 1, %s882_s17  ;;  %s33_s21 = sadd.s32 1, %s886_s18  ;;  %s890_s19 = sphi %s928_s19, %s14_s19   ;;  %s886_s18 = sphi %s926_s18, %s1042_s18   ;;  %s882_s17 = sphi %s924_s17, %s1041_s17   ;;  %s878_s16 = sphi %s922_s16, %s1040_s16   ;;  %s874_s15 = sphi %s920_s15, %s1039_s15  }
   0x4   : > { %p27_p0 = scmp.ge.s32.totalorder %s26_s20, 4  ;;  %p715_p1 = scmp.ge.s32.totalorder %s890_s19, 1 }
   0x5   : > { %p222_p2 = scmp.lt.s32.totalorder %s890_s19, 9 }
   0x6   : > { %s1044_s20 = smov (%p27_p0, %s26_s20), 0  ;;  %s1046_s21 = smov (!%p27_p0, %s33_s21), %s886_s18 }
   0x7   : > { %p223_p3 = pnand %p715_p1, %p222_p2  ;;  %p35_p4 = scmp.ge.s32.totalorder %s1046_s21, 2 }
   0x8   : > { %p274_p5 = scmp.lt.s32.totalorder (!%p223_p3), %s878_s16, 1  ;;  %p276_p6 = scmp.lt.s32.totalorder (!%p223_p3), %s874_s15, 3 }
   0x9   : > { %s1048_s21 = smov (%p35_p4, %s1046_s21), 0  ;;  %226 = sbr.rel (%p223_p3) target bundleno = 281 (0x119), region = 36 }
   0xa   : > { %p720_p7 = scmp.ne.s32.totalorder (!%p223_p3), %s874_s15, 0 }
  0x10   : > { %s1050_s16 = smov (!%p274_p5, %s878_s16), 1  ;;  %vm316_vm0 = vcmask (!%p720_p7), 261120   ;;  %v892_v0 = vmov (!%p720_p7), 0.0  }
  0x11   : > { %s277_s22 = scalar_select %p276_p6, %s874_s15, 3 }
  0x12   : > { %s803_s23 = smul.u32 36, %s1050_s16  ;;  %317 = vst.msk [vmem:[#allocation2] sm:$0xff] (!%p720_p7), %vm316_vm0, %v892_v0  ;;  %318 = vst.msk [vmem:[#allocation2 + $0x8] sm:$0xff] (!%p720_p7), %vm316_vm0, %v892_v0 }
  0x13   : > { %s802_s24 = smul.u32 9, %s277_s22  ;;  %s717_s25 = sshll.u32 %s277_s22, 2  ;;  %319 = vst.msk [vmem:[#allocation2 + $0x10] sm:$0xff] (!%p720_p7), %vm316_vm0, %v892_v0  ;;  %320 = vst.msk [vmem:[#allocation2 + $0x18] sm:$0xff] (!%p720_p7), %vm316_vm0, %v892_v0 }
  0x14   : > { %s290_s28 = scalar_lea.vmem %s1035_s1, %s717_s25  ;;  %s960_s5 = scalar_lea.vmem %s1037_s3, %s803_s23  ;;  %321 = vst.msk [vmem:[#allocation2 + $0x20] sm:$0xff] (!%p720_p7), %vm316_vm0, %v892_v0  ;;  %322 = vst.msk [vmem:[#allocation2 + $0x28] sm:$0xff] (!%p720_p7), %vm316_vm0, %v892_v0 }
  0x15   : > { %s283_s6 = sadd.s32 %s803_s23, %s802_s24  ;;  %s965_s9 = scalar_lea.vmem %s1038_s4, %s803_s23  ;;  %323 = vst.msk [vmem:[#allocation2 + $0x30] sm:$0xff] (!%p720_p7), %vm316_vm0, %v892_v0  ;;  %324 = vst.msk [vmem:[#allocation2 + $0x38] sm:$0xff] (!%p720_p7), %vm316_vm0, %v892_v0 }
  0x16   : > { %s716_s10 = sshll.u32 %s283_s6, 2  ;;  %315 = sbr.rel (%p720_p7) target bundleno = 29 (0x1d), region = 40  ;;  %325 = vst.msk [vmem:[#allocation2 + $0x40] sm:$0xff] (!%p720_p7), %vm316_vm0, %v892_v0 }
  0x17   : > { %s970_s13 = scalar_lea.vmem %s1034_s0, %s716_s10 }
  0x1d PF: > { %v344_v1 = vld [vmem:[%s290_s28] sm:$0xf]  ;;  %vm384_vm1 = vcmask 1043456   ;;  %v893_v2 = vmov 0.0   ;;  %vm894_vm2 = vmmov 0   ;;  %vm368_vm3 = vcmask 64512  }
  0x1e   : > { %778 = vmatprep.subr.bf16.mxu0 %v893_v2  ;;  %v386_v3 = vsel %vm384_vm1, %v344_v1, 0  ;;  %780 = vmatprep.mubr.msk.bf16.mxu0 %vm894_vm2, %v893_v2  ;;  %v847_v4 = vld [vmem:[%s970_s13] sm:$0xff]   ;;  %v848_v5 = vld [vmem:[%s970_s13 + $0x18] sm:$0xff]   ;;  %v849_v6 = vld [vmem:[%s970_s13 + $0x8] sm:$0xff]   ;;  %vm469_vm4 = vcmask 261120   ;;  %p731_p8 = scmp.ne.s32.totalorder %s874_s15, 3 }
  0x1f   : > { %779 = vmatpush3.bf16.msra.mxu0 %v386_v3  ;;  %800 = vmatprep.subr.bf16.mxu1 %v893_v2  ;;  %v850_v7 = vld [vmem:[%s970_s13 + $0x20] ss:$0 sps:$4 sm:$0xff]   ;;  %v851_v8 = vld [vmem:[%s970_s13 + $0x10] sm:$0xff]   ;;  %v327_v12 = vld [vmem:[#allocation2 + $0x8] sm:$0xff]  ;;  %vm572_vm5 = vcmask (!%p731_p8), 257024  }
  0x20   : > { %801 = vmatpush3.bf16.msra.mxu1 %v386_v3  ;;  %792 = vmatprep.mubr.msk.bf16.mxu1 %vm894_vm2, %v893_v2  ;;  %v326_v9 = vld [vmem:[#allocation2] sm:$0xff]  ;;  %v332_v10 = vld [vmem:[#allocation2 + $0x30] sm:$0xff]  ;;  %v333_v16 = vld [vmem:[#allocation2 + $0x38] sm:$0xff] }
  0x21   : > { %v328_v25 = vld [vmem:[#allocation2 + $0x10] sm:$0xff]  ;;  %v334_v26 = vld [vmem:[#allocation2 + $0x40] sm:$0xff]  ;;  %v329_v28 = vld [vmem:[#allocation2 + $0x18] sm:$0xff] }
  0x22   : > { %781 = vmatmul.mubr.msk.bf16.vlgmr.msra.gmra.mrb[0].mxu0 %vm368_vm3, %v847_v4  ;;  %v330_v39 = vld [vmem:[#allocation2 + $0x20] sm:$0xff]  ;;  %v331_v41 = vld [vmem:[#allocation2 + $0x28] sm:$0xff]  ;;  %v770_v62 = vld [vmem:[%s960_s5 + $0x10] sm:$0xff] (!%p731_p8)  }
  0x23   : > { %784 = vmatprep.mubr.msk.bf16.mxu0 %vm894_vm2, %v893_v2  ;;  %793 = vmatmul.mubr.msk.bf16.vlgmr.msra.gmra.mrb[0].mxu1 %vm368_vm3, %v848_v5  ;;  %v732_v48 = vld [vmem:[%s1036_s2] ss:$0 sm:$0xff] (!%p731_p8)  ;;  %v769_v55 = vld [vmem:[%s960_s5 + $0x8] sm:$0xff] (!%p731_p8)   ;;  %v771_v5 = vld [vmem:[%s960_s5 + $0x18] sm:$0xff] (!%p731_p8)  }
  0x24   : > { %796 = vmatprep.mubr.msk.bf16.mxu1 %vm894_vm2, %v893_v2  ;;  %v754_v49 = vld [vmem:[%s960_s5] sm:$0xff] (!%p731_p8)   ;;  %v759_v58 = vunpack.c.l.bf16 (!%p731_p8), %v769_v55  ;;  %v760_v60 = vunpack.c.h.bf16 (!%p731_p8), %v769_v55 }
  0x25   : > { %v755_v51 = vunpack.c.l.bf16 (!%p731_p8), %v754_v49  ;;  %v756_v53 = vunpack.c.h.bf16 (!%p731_p8), %v754_v49 }
  0x2a   : > { %785 = vmatmul.mubr.msk.bf16.gmra.mrb[4].mxu0 %vm368_vm3, %v849_v6 }
  0x2b   : > { %788 = vmatprep.mubr.msk.bf16.mxu0 %vm894_vm2, %v893_v2  ;;  %797 = vmatmul.mubr.msk.bf16.gmra.mrb[4].mxu1 %vm368_vm3, %v850_v7  ;;  %v763_v2 = vunpack.c.l.bf16 (!%p731_p8), %v770_v62 }
  0x32   : > { %789 = vmatmul.mubr.msk.bf16.gmra.mrb[8].mxu0 %vm368_vm3, %v851_v8 }
  0xf5   : > { %v422_v11 = vpop.f32.mrb[0].mxu0 }
  0xf6   : > { %v460_v13 = vadd.f32 %v422_v11, %v326_v9  ;;  %v782_v14 = vpop.f32.mrb[1].mxu0  ;;  %v446_v15 = vpop.f32.mrb[0].mxu1  ;;  %v764_v9 = vunpack.c.h.bf16 (!%p731_p8), %v770_v62 }
  0xf7   : > { %v425_v17 = vpop.f32.mrb[2].mxu0  ;;  %v466_v18 = vadd.f32 %v446_v15, %v332_v10  ;;  %v794_v19 = vpop.f32.mrb[1].mxu1 }
  0xf8   : > { %470 = vst.msk [vmem:[#allocation2] sm:$0xff] %vm469_vm4, %v460_v13  ;;  %v461_v20 = vadd.f32 %v425_v17, %v327_v12  ;;  %v783_v21 = vpop.f32.mrb[3].mxu0  ;;  %v449_v22 = vpop.f32.mrb[2].mxu1 }
  0xf9   : > { %476 = vst.msk [vmem:[#allocation2 + $0x30] sm:$0xff] %vm469_vm4, %v466_v18  ;;  %v467_v23 = vadd.f32 %v449_v22, %v333_v16  ;;  %v795_v24 = vpop.f32.mrb[3].mxu1  ;;  %v516_v16 = vld [vmem:[%s960_s5 + $0x20] sm:$0xf] (!%p731_p8) }
  0xfa   : > { %471 = vst.msk [vmem:[#allocation2 + $0x8] sm:$0xff] %vm469_vm4, %v461_v20  ;;  %v767_v20 = vunpack.c.l.bf16 (!%p731_p8), %v771_v5  ;;  %v768_v24 = vunpack.c.h.bf16 (!%p731_p8), %v771_v5 }
  0xfb   : > { %477 = vst.msk [vmem:[#allocation2 + $0x38] sm:$0xff] %vm469_vm4, %v467_v23 }
  0xfd   : > { %v430_v27 = vpop.f32.mrb[4].mxu0 }
  0xfe   : > { %v462_v29 = vadd.f32 %v430_v27, %v328_v25  ;;  %v786_v30 = vpop.f32.mrb[5].mxu0  ;;  %v454_v31 = vpop.f32.mrb[4].mxu1 }
  0xff   : > { %v433_v32 = vpop.f32.mrb[6].mxu0  ;;  %v468_v33 = vadd.f32 %v454_v31, %v334_v26  ;;  %v798_v34 = vpop.f32.mrb[5].mxu1  ;;  %v483_v47 = vld [vmem:[#allocation2] sm:$0xff] (!%p731_p8) }
 0x100   : > { %472 = vst.msk [vmem:[#allocation2 + $0x10] sm:$0xff] %vm469_vm4, %v462_v29  ;;  %v463_v35 = vadd.f32 %v433_v32, %v329_v28  ;;  %v787_v36 = vpop.f32.mrb[7].mxu0  ;;  %v457_v37 = vpop.f32.mrb[6].mxu1  ;;  %v499_v50 = vadd.f32 (!%p731_p8), %v732_v48, %v483_v47  ;;  %v489_v4 = vld [vmem:[#allocation2 + $0x30] sm:$0xff] (!%p731_p8)  ;;  %v525_v28 = vunpack.c.l.bf16 (!%p731_p8), %v516_v16 }
 0x101   : > { %478 = vst.msk [vmem:[#allocation2 + $0x40] sm:$0xff] %vm469_vm4, %v468_v33  ;;  %v799_v38 = vpop.f32.mrb[7].mxu1  ;;  %v484_v52 = vld [vmem:[#allocation2 + $0x8] sm:$0xff] (!%p731_p8)  ;;  %v505_v14 = vadd.f32 (!%p731_p8), %v732_v48, %v489_v4 }
 0x102   : > { %473 = vst.msk [vmem:[#allocation2 + $0x18] sm:$0xff] %vm469_vm4, %v463_v35  ;;  %v500_v56 = vadd.f32 (!%p731_p8), %v732_v48, %v484_v52  ;;  %v526_v63 = vadd.f32 (!%p731_p8), %v755_v51, %v499_v50  ;;  %v490_v10 = vld [vmem:[#allocation2 + $0x38] sm:$0xff] (!%p731_p8) }
 0x103   : > { %v506_v23 = vadd.f32 (!%p731_p8), %v732_v48, %v490_v10  ;;  %v532_v26 = vadd.f32 (!%p731_p8), %v767_v20, %v505_v14 }
 0x104   : > { %482 = sbr.rel (%p731_p8) target bundleno = 281 (0x119), region = 44  ;;  %v527_v6 = vadd.f32 (!%p731_p8), %v756_v53, %v500_v56  ;;  %v744_v11 = vpack.c.bf16 (!%p731_p8), %v526_v63, %v526_v63 }
 0x105   : > { %v438_v40 = vpop.f32.mrb[8].mxu0  ;;  %v533_v29 = vadd.f32 (!%p731_p8), %v768_v24, %v506_v23  ;;  %v750_v30 = vpack.c.bf16 (!%p731_p8), %v532_v26, %v532_v26 }
 0x106   : > { %v464_v42 = vadd.f32 %v438_v40, %v330_v39  ;;  %v790_v43 = vpop.f32.mrb[9].mxu0  ;;  %v745_v17 = vpack.c.bf16 (!%p731_p8), %v527_v6, %v527_v6  ;;  %573 = vst.msk [vmem:[%s965_s9] sm:$0xf] (!%p731_p8), %vm572_vm5, %v744_v11 }
 0x107   : > { %v441_v44 = vpop.f32.mrb[10].mxu0  ;;  %v485_v54 = vld [vmem:[#allocation2 + $0x10] sm:$0xff] (!%p731_p8)  ;;  %v751_v32 = vpack.c.bf16 (!%p731_p8), %v533_v29, %v533_v29  ;;  %579 = vst.msk [vmem:[%s965_s9 + $0x18] sm:$0xf] (!%p731_p8), %vm572_vm5, %v750_v30 }
 0x108   : > { %474 = vst.msk [vmem:[#allocation2 + $0x20] sm:$0xff] %vm469_vm4, %v464_v42  ;;  %v465_v45 = vadd.f32 %v441_v44, %v331_v41  ;;  %v791_v46 = vpop.f32.mrb[11].mxu0  ;;  %v501_v57 = vadd.f32 (!%p731_p8), %v732_v48, %v485_v54  ;;  %v491_v15 = vld [vmem:[#allocation2 + $0x40] sm:$0xff] (!%p731_p8) }
 0x109   : > { %v486_v59 = vld [vmem:[#allocation2 + $0x18] sm:$0xff] (!%p731_p8)  ;;  %574 = vst.msk [vmem:[%s965_s9 + $0x4] sm:$0xf] (!%p731_p8), %vm572_vm5, %v745_v17  ;;  %v507_v27 = vadd.f32 (!%p731_p8), %v732_v48, %v491_v15  ;;  %580 = vst.msk [vmem:[%s965_s9 + $0x1c] sm:$0xf] (!%p731_p8), %vm572_vm5, %v751_v32 }
 0x10a   : > { %475 = vst.msk [vmem:[#allocation2 + $0x28] sm:$0xff] %vm469_vm4, %v465_v45  ;;  %v502_v0 = vadd.f32 (!%p731_p8), %v732_v48, %v486_v59  ;;  %v528_v7 = vadd.f32 (!%p731_p8), %v759_v58, %v501_v57 }
 0x10b   : > { %v534_v31 = vadd.f32 %v525_v28, %v507_v27 }
 0x10c   : > { %v529_v12 = vadd.f32 %v760_v60, %v502_v0  ;;  %v746_v18 = vpack.c.bf16 %v528_v7, %v528_v7 }
 0x10d   : > { %v752_v33 = vpack.c.bf16 %v534_v31, %v534_v31 }
 0x10e   : > { %v747_v21 = vpack.c.bf16 %v529_v12, %v529_v12  ;;  %575 = vst.msk [vmem:[%s965_s9 + $0x8] sm:$0xf] %vm572_vm5, %v746_v18 }
 0x10f   : > { %v487_v61 = vld [vmem:[#allocation2 + $0x20] sm:$0xff]  ;;  %581 = vst.msk [vmem:[%s965_s9 + $0x20] sm:$0xf] %vm572_vm5, %v752_v33 }
 0x110   : > { %v503_v1 = vadd.f32 %v732_v48, %v487_v61  ;;  %576 = vst.msk [vmem:[%s965_s9 + $0xc] sm:$0xf] %vm572_vm5, %v747_v21 }
 0x111   : > { %v488_v3 = vld [vmem:[#allocation2 + $0x28] sm:$0xff] }
 0x112   : > { %v504_v8 = vadd.f32 %v732_v48, %v488_v3  ;;  %v530_v13 = vadd.f32 %v763_v2, %v503_v1 }
 0x114   : > { %v531_v19 = vadd.f32 %v764_v9, %v504_v8  ;;  %v748_v22 = vpack.c.bf16 %v530_v13, %v530_v13 }
 0x116   : > { %v749_v25 = vpack.c.bf16 %v531_v19, %v531_v19  ;;  %577 = vst.msk [vmem:[%s965_s9 + $0x10] sm:$0xf] %vm572_vm5, %v748_v22 }
 0x118   : > { %578 = vst.msk [vmem:[%s965_s9 + $0x14] sm:$0xf] %vm572_vm5, %v749_v25 }
 0x119 PF: > { %s14_s19 = sadd.s32 1, %s890_s19   ;;  %s1039_s15 = smov %s882_s17 }
 0x11a   : > { %p11_p9 = scmp.ge.s32.totalorder %s14_s19, 10   ;;  %s1040_s16 = smov %s886_s18 }
 0x11b   : > { %s1041_s17 = smov %s1044_s20  ;;  %s1042_s18 = smov %s1048_s21 }
 0x11c   :  { %13 = sbr.rel (!%p11_p9) target bundleno = 3 (0x3), region = 80 }

// kernel: multimodal_gpt_forward.16
= control target key start
LH: loop header
LB: loop body
LE: loop exit
PB: predicated region body
PF: predicated region fallthrough
CT: control target
= control target key end

     0   :  { %s2299_s12 = smov 0   ;;  %s2301_s13 = smov 0   ;;  %s2702_s0 = inlined_call_operand.vmem [shape: bf16[2,12,72,8], index: 0, kind: input, shape index: {}, may-alias: {0,1,2}]   ;;  %s2703_s1 = inlined_call_operand.vmem [shape: bf16[2,12,72,8], index: 1, kind: input, shape index: {}, may-alias: {0,1,2}]   ;;  %s2704_s2 = inlined_call_operand.vmem [shape: bf16[2,12,72,8], index: 2, kind: input, shape index: {}, may-alias: {0,1,2}]   ;;  %s2705_s3 = inlined_call_operand.vmem [shape: bf16[2,4,72,8], index: 3, kind: output, shape index: {}]  }
   0x1   :  { %s2303_s14 = smov 0   ;;  %s2305_s15 = smov 0  }
   0x2   :  { %s2307_s16 = smov 0  }
   0x3 LB: > { %s35_s17 = sadd.s32 1, %s2265_s14  ;;  %s39_s18 = sadd.s32 1, %s2269_s15  ;;  %s2273_s16 = sphi %s2307_s16, %s13_s16   ;;  %s2269_s15 = sphi %s2305_s15, %s2710_s15   ;;  %s2265_s14 = sphi %s2303_s14, %s2709_s14   ;;  %s2261_s13 = sphi %s2301_s13, %s2708_s13   ;;  %s2257_s12 = sphi %s2299_s12, %s2707_s12  }
   0x4   : > { %p37_p0 = scmp.ge.s32.totalorder %s35_s17, 4  ;;  %p1959_p1 = scmp.ge.s32.totalorder %s2273_s16, 1 }
   0x5   : > { %p250_p2 = scmp.lt.s32.totalorder %s2273_s16, 9 }
   0x6   : > { %s2712_s17 = smov (%p37_p0, %s35_s17), 0  ;;  %s2714_s18 = smov (!%p37_p0, %s39_s18), %s2269_s15 }
   0x7   : > { %p251_p3 = pnand %p1959_p1, %p250_p2  ;;  %p41_p4 = scmp.ge.s32.totalorder %s2714_s18, 2 }
   0x8   : > { %p323_p5 = scmp.lt.s32.totalorder (!%p251_p3), %s2261_s13, 1  ;;  %s336_s19 = sadd.s32 (!%p251_p3), 4, %s2257_s12  ;;  %vm414_vm0 = vcmask (!%p251_p3), 64512   ;;  %v2275_v0 = vmov (!%p251_p3), 0.0   ;;  %vm2276_vm1 = vmmov (!%p251_p3), 0   ;;  %vm395_vm2 = vcmask (!%p251_p3), 7168  }
   0x9   : > { %s2716_s18 = smov (%p41_p4, %s2714_s18), 0  ;;  %254 = sbr.rel (%p251_p3) target bundleno = 894 (0x37e), region = 32 }
   0xa   : > { %2054 = vmatprep.subr.bf16.mxu0 (!%p251_p3), %v2275_v0  ;;  %p2336_p6 = scmp.lt.s32.totalorder (!%p251_p3), %s336_s19, 11  ;;  %415 = vst.msk [vmem:[#allocation4] sm:$0xff] (!%p251_p3), %vm414_vm0, %v2275_v0  ;;  %416 = vst.msk [vmem:[#allocation4 + $0x8] sm:$0xff] (!%p251_p3), %vm414_vm0, %v2275_v0  ;;  %2064 = vmatprep.mubr.msk.bf16.mxu0 (!%p251_p3), %vm2276_vm1, %v2275_v0  ;;  %p325_p7 = scmp.lt.s32.totalorder (!%p251_p3), %s2257_s12, 11  ;;  %v2277_v16 = vmov (!%p251_p3), -inf   ;;  %v1206_v17 = vlaneseq (!%p251_p3)  ;;  %vm1245_vm4 = vcmask (!%p251_p3), 588800  }
   0xb   : > { %417 = vst.msk [vmem:[#allocation4 + $0x10] sm:$0xff] (!%p251_p3), %vm414_vm0, %v2275_v0  ;;  %418 = vst.msk [vmem:[#allocation4 + $0x18] sm:$0xff] (!%p251_p3), %vm414_vm0, %v2275_v0  ;;  %2084 = vmatprep.subr.bf16.mxu1 (!%p251_p3), %v2275_v0  ;;  %2094 = vmatprep.mubr.msk.bf16.mxu1 (!%p251_p3), %vm2276_vm1, %v2275_v0  ;;  %v2278_v47 = vmov (!%p251_p3), 0   ;;  %s356_s8 = sadd.s32 (!%p251_p3), 8, %s2257_s12  ;;  %vm1555_vm13 = vcmask (!%p251_p3), 1043456   ;;  %p379_p9 = scmp.lt.s32.totalorder (!%p251_p3), %s2257_s12, 3 }
   0xc   : > { %419 = vst.msk [vmem:[#allocation4 + $0x20] sm:$0xff] (!%p251_p3), %vm414_vm0, %v2275_v0  ;;  %420 = vst.msk [vmem:[#allocation4 + $0x28] sm:$0xff] (!%p251_p3), %vm414_vm0, %v2275_v0  ;;  %v1207_v18 = vshrl.u32 (!%p251_p3), %v1206_v17, 7  ;;  %v2432_v19 = vand.u32 (!%p251_p3), 127, %v1206_v17  ;;  %2164 = vset.pattern.permute.xlu1 (!%p251_p3), %v2278_v47  ;;  %2165 = vset.pattern.permute.xlu0 (!%p251_p3), %v2278_v47  ;;  %p362_p8 = scmp.lt.s32.totalorder (!%p251_p3), %s356_s8, 11  ;;  %vm1779_vm14 = vcmask (!%p251_p3), 60416  }
   0xd   : > { %421 = vst.msk [vmem:[#allocation4 + $0x30] sm:$0xff] (!%p251_p3), %vm414_vm0, %v2275_v0  ;;  %422 = vst.msk [vmem:[#allocation4 + $0x38] sm:$0xff] (!%p251_p3), %vm414_vm0, %v2275_v0 }
   0xe   : > { %423 = vst.msk [vmem:[#allocation4 + $0x40] sm:$0xff] (!%p251_p3), %vm414_vm0, %v2275_v0  ;;  %v1208_v20 = vadd.s32 (!%p251_p3), 8, %v1207_v18  ;;  %vm1218_vm3 = vcmp.le.s32.totalorder (!%p251_p3), %v2432_v19, %v1207_v18  ;;  %v1209_v26 = vadd.s32 (!%p251_p3), 16, %v1207_v18  ;;  %v1210_v29 = vadd.s32 (!%p251_p3), 24, %v1207_v18 }
   0xf   : > { %396 = vst.msk [vmem:[#allocation2] sm:$0xff] (!%p251_p3), %vm395_vm2, %v2277_v16  ;;  %397 = vst.msk [vmem:[#allocation2 + $0x8] sm:$0xff] (!%p251_p3), %vm395_vm2, %v2277_v16  ;;  %v1211_v36 = vadd.s32 (!%p251_p3), 32, %v1207_v18  ;;  %v1212_v39 = vadd.s32 (!%p251_p3), 40, %v1207_v18  ;;  %v1213_v46 = vadd.s32 (!%p251_p3), 48, %v1207_v18  ;;  %v1214_v51 = vadd.s32 (!%p251_p3), 56, %v1207_v18 }
  0x10   : > { %s2718_s13 = smov (!%p323_p5, %s2261_s13), 1  ;;  %s2720_s19 = smov (!%p2336_p6, %s336_s19), 11  ;;  %398 = vst.msk [vmem:[#allocation2 + $0x10] sm:$0xff] %vm395_vm2, %v2277_v16  ;;  %399 = vst.msk [vmem:[#allocation2 + $0x18] sm:$0xff] %vm395_vm2, %v2277_v16  ;;  %vm1219_vm5 = vcmp.le.s32.totalorder %v2432_v19, %v1208_v20  ;;  %vm1220_vm6 = vcmp.le.s32.totalorder %v2432_v19, %v1209_v26  ;;  %vm1221_vm7 = vcmp.le.s32.totalorder %v2432_v19, %v1210_v29  ;;  %v1215_v57 = vadd.s32 64, %v1207_v18 }
  0x11   : > { %s2372_s21 = smul.u32 108, %s2718_s13  ;;  %400 = vst.msk [vmem:[#allocation2 + $0x20] sm:$0xff] %vm395_vm2, %v2277_v16  ;;  %401 = vst.msk [vmem:[#allocation2 + $0x28] sm:$0xff] %vm395_vm2, %v2277_v16  ;;  %vm1222_vm8 = vcmp.le.s32.totalorder %v2432_v19, %v1211_v36  ;;  %vm1223_vm9 = vcmp.le.s32.totalorder %v2432_v19, %v1212_v39  ;;  %vm1224_vm10 = vcmp.le.s32.totalorder %v2432_v19, %v1213_v46  ;;  %s2722_s8 = smov (!%p362_p8, %s356_s8), 11 }
  0x12   : > { %s2116_s22 = smul.u32 9, %s2720_s19  ;;  %402 = vst.msk [vmem:[#allocation2 + $0x30] sm:$0xff] %vm395_vm2, %v2277_v16  ;;  %403 = vst.msk [vmem:[#allocation2 + $0x38] sm:$0xff] %vm395_vm2, %v2277_v16  ;;  %vm1225_vm11 = vcmp.le.s32.totalorder %v2432_v19, %v1214_v51  ;;  %vm1226_vm12 = vcmp.le.s32.totalorder %v2432_v19, %v1215_v57 }
  0x13   : > { %s326_s23 = scalar_select %p325_p7, %s2257_s12, 11  ;;  %404 = vst.msk [vmem:[#allocation2 + $0x40] sm:$0xff] %vm395_vm2, %v2277_v16  ;;  %405 = vst.msk [vmem:[#allocation3] sm:$0xff] %vm395_vm2, %v2275_v0 }
  0x14   : > { %s349_s24 = sadd.s32 %s2116_s22, %s2372_s21  ;;  %406 = vst.msk [vmem:[#allocation3 + $0x8] sm:$0xff] %vm395_vm2, %v2275_v0  ;;  %407 = vst.msk [vmem:[#allocation3 + $0x10] sm:$0xff] %vm395_vm2, %v2275_v0  ;;  %s2117_s9 = smul.u32 9, %s2722_s8 }
  0x15   : > { %s1961_s25 = sshll.u32 %s349_s24, 2  ;;  %s2114_s26 = smul.u32 9, %s326_s23  ;;  %408 = vst.msk [vmem:[#allocation3 + $0x18] sm:$0xff] %vm395_vm2, %v2275_v0  ;;  %409 = vst.msk [vmem:[#allocation3 + $0x20] sm:$0xff] %vm395_vm2, %v2275_v0 }
  0x16   : > { %s351_s29 = scalar_lea.vmem %s2703_s1, %s1961_s25  ;;  %410 = vst.msk [vmem:[#allocation3 + $0x28] sm:$0xff] %vm395_vm2, %v2275_v0  ;;  %411 = vst.msk [vmem:[#allocation3 + $0x30] sm:$0xff] %vm395_vm2, %v2275_v0  ;;  %s369_s10 = sadd.s32 %s2117_s9, %s2372_s21 }
  0x17   : > { %v2166_v1 = vld [vmem:[%s351_s29] sm:$0xff]   ;;  %s332_s30 = sadd.s32 %s2372_s21, %s2114_s26  ;;  %v2167_v3 = vld [vmem:[%s351_s29 + $0x8] sm:$0xff]   ;;  %v2168_v5 = vld [vmem:[%s351_s29 + $0x10] sm:$0xff]   ;;  %412 = vst.msk [vmem:[#allocation3 + $0x38] sm:$0xff] %vm395_vm2, %v2275_v0  ;;  %s1962_s11 = sshll.u32 %s369_s10, 2 }
  0x18   : > { %s1960_s4 = sshll.u32 %s332_s30, 2  ;;  %v1120_v2 = vsel %vm414_vm0, %v2166_v1, 0  ;;  %v1123_v4 = vsel %vm414_vm0, %v2167_v3, 0  ;;  %v1126_v6 = vsel %vm414_vm0, %v2168_v5, 0  ;;  %v2169_v7 = vld [vmem:[%s351_s29 + $0x18] sm:$0xff]   ;;  %413 = vst.msk [vmem:[#allocation3 + $0x40] sm:$0xff] %vm395_vm2, %v2275_v0  ;;  %s2491_s22 = scalar_lea.vmem %s2704_s2, %s1962_s11 }
  0x19   : > { %2055 = vmatpush3.bf16.xpose.msra.mxu0 %v1120_v2  ;;  %s334_s7 = scalar_lea.vmem %s2702_s0, %s1960_s4  ;;  %v1129_v8 = vsel %vm414_vm0, %v2169_v7, 0  ;;  %v2170_v9 = vld [vmem:[%s351_s29 + $0x20] ss:$0 sps:$4 sm:$0xff]   ;;  %v2486_v7 = vld [vmem:[#allocation2 + $0x8] sm:$0xff]  ;;  %v2514_v17 = vld [vmem:[#allocation2 + $0x18] sm:$0xff]  ;;  %s2724_s12 = smov (!%p379_p9, %s2257_s12), 3 }
  0x1a   : > { %2056 = vmatprep.subr.bf16.mxu0 %v2275_v0  ;;  %v1132_v10 = vsel %vm414_vm0, %v2170_v9, 0  ;;  %v2171_v11 = vld [vmem:[%s334_s7] sm:$0xff]   ;;  %v2172_v12 = vld [vmem:[%s334_s7 + $0x8] sm:$0xff]   ;;  %v2173_v13 = vld [vmem:[%s334_s7 + $0x10] sm:$0xff]   ;;  %s2119_s21 = smul.u32 36, %s2718_s13 }
  0x1b   : > { %v2174_v14 = vld [vmem:[%s334_s7 + $0x18] sm:$0xff]   ;;  %v2175_v15 = vld [vmem:[%s334_s7 + $0x20] ss:$0 sps:$4 sm:$0xff]   ;;  %v2178_v19 = vld [vmem:[%s2491_s22 + $0x10] sm:$0xff]   ;;  %s2118_s23 = smul.u32 9, %s2724_s12 }
  0x1c   : > { %v2176_v9 = vld [vmem:[%s2491_s22] sm:$0xff]  }
  0x1d   : > { %2085 = vmatpush3.bf16.msra.mxu1 %v2176_v9  ;;  %v2574_v47 = vld [vmem:[#allocation2 + $0x40] sm:$0xff]  ;;  %s386_s24 = sadd.s32 %s2119_s21, %s2118_s23 }
  0x1e   : > { %2086 = vmatprep.subr.bf16.mxu1 %v2275_v0  ;;  %s1963_s25 = sshll.u32 %s386_s24, 2 }
  0x1f   : > { %s2667_s28 = scalar_lea.vmem %s2705_s3, %s1963_s25 }
  0x21   : > { %2057 = vmatpush3.bf16.xpose.msra.mxu0 %v1123_v4  ;;  %v2480_v4 = vld [vmem:[#allocation2] sm:$0xff] }
  0x22   : > { %2058 = vmatprep.subr.bf16.mxu0 %v2275_v0 }
  0x29   : > { %2059 = vmatpush3.bf16.xpose.msra.mxu0 %v1126_v6 }
  0x2a   : > { %2060 = vmatprep.subr.bf16.mxu0 %v2275_v0 }
  0x31   : > { %2061 = vmatpush3.bf16.xpose.msra.mxu0 %v1129_v8 }
  0x32   : > { %2062 = vmatprep.subr.bf16.mxu0 %v2275_v0 }
  0x39   : > { %2063 = vmatpush3.bf16.xpose.msra.mxu0 %v1132_v10 }
  0x40   : > { %2065 = vmatmul.mubr.msk.bf16.vlgmr.msra.gmra.mrb[0].mxu0 %vm414_vm0, %v2171_v11 }
  0x41   : > { %2068 = vmatprep.mubr.msk.bf16.mxu0 %vm2276_vm1, %v2275_v0 }
  0x48   : > { %2069 = vmatmul.mubr.msk.bf16.gmra.mrb[4].mxu0 %vm414_vm0, %v2172_v12  ;;  %v2502_v12 = vld [vmem:[#allocation2 + $0x10] sm:$0xff] }
  0x49   : > { %2072 = vmatprep.mubr.msk.bf16.mxu0 %vm2276_vm1, %v2275_v0 }
  0x50   : > { %2073 = vmatmul.mubr.msk.bf16.gmra.mrb[8].mxu0 %vm414_vm0, %v2173_v13 }
  0x51   : > { %2076 = vmatprep.mubr.msk.bf16.mxu0 %vm2276_vm1, %v2275_v0 }
  0x58   : > { %2077 = vmatmul.mubr.msk.bf16.gmra.mrb[12].mxu0 %vm414_vm0, %v2174_v14  ;;  %v2177_v14 = vld [vmem:[%s2491_s22 + $0x8] sm:$0xff]  }
  0x59   : > { %2080 = vmatprep.mubr.msk.bf16.mxu0 %vm2276_vm1, %v2275_v0  ;;  %2087 = vmatpush3.bf16.msra.mxu1 %v2177_v14 }
  0x5a   : > { %2088 = vmatprep.subr.bf16.mxu1 %v2275_v0 }
  0x5d   : > { %2089 = vmatpush3.bf16.msra.mxu1 %v2178_v19 }
  0x5e   : > { %2090 = vmatprep.subr.bf16.mxu1 %v2275_v0 }
  0x60   : > { %2081 = vmatmul.mubr.msk.bf16.gmra.mrb[16].mxu0 %vm414_vm0, %v2175_v15 }
 0x113   : > { %v1168_v21 = vpop.f32.mrb[0].mxu0 }
 0x114   : > { %v2436_v22 = vsel %vm1218_vm3, %v1168_v21, -1e+30  ;;  %v2066_v23 = vpop.f32.mrb[1].mxu0 }
 0x115   : > { %v1171_v24 = vpop.f32.mrb[2].mxu0  ;;  %v1246_v25 = vsel %vm1245_vm4, %v2436_v22, -inf  ;;  %v2526_v23 = vld [vmem:[#allocation2 + $0x20] sm:$0xff] }
 0x116   : > { %v2440_v27 = vsel %vm1219_vm5, %v1171_v24, -1e+30  ;;  %1247 = vmax.xlane.f32.xlu0 %v1246_v25  ;;  %v2067_v28 = vpop.f32.mrb[3].mxu0  ;;  %v2179_v25 = vld [vmem:[%s2491_s22 + $0x18] sm:$0xff]  }
 0x117   : > { %v1249_v30 = vsel %vm1245_vm4, %v2440_v27, -inf  ;;  %v2535_v28 = vld [vmem:[#allocation2 + $0x28] sm:$0xff]  ;;  %2091 = vmatpush3.bf16.msra.mxu1 %v2179_v25 }
 0x118   : > { %2092 = vmatprep.subr.bf16.mxu1 %v2275_v0 }
 0x11a   : > { %1250 = vmax.xlane.f32.xlu0 %v1249_v30 }
 0x11b   : > { %v1176_v31 = vpop.f32.mrb[4].mxu0 }
 0x11c   : > { %v2446_v32 = vsel %vm1220_vm6, %v1176_v31, -1e+30  ;;  %v2070_v33 = vpop.f32.mrb[5].mxu0  ;;  %v2180_v31 = vld [vmem:[%s2491_s22 + $0x20] ss:$0 sps:$4 sm:$0xff]  }
 0x11d   : > { %v1179_v34 = vpop.f32.mrb[6].mxu0  ;;  %v1252_v35 = vsel %vm1245_vm4, %v2446_v32, -inf }
 0x11e   : > { %v2450_v37 = vsel %vm1221_vm7, %v1179_v34, -1e+30  ;;  %1253 = vmax.xlane.f32.xlu1 %v1252_v35  ;;  %v2071_v38 = vpop.f32.mrb[7].mxu0  ;;  %v1557_v35 = vsel %vm1555_vm13, %v2180_v31, 0 }
 0x11f   : > { %v1255_v40 = vsel %vm1245_vm4, %v2450_v37, -inf  ;;  %2093 = vmatpush3.bf16.msra.mxu1 %v1557_v35  ;;  %v2554_v38 = vld [vmem:[#allocation2 + $0x30] sm:$0xff] }
 0x122   : > { %1256 = vmax.xlane.f32.xlu1 %v1255_v40  ;;  %v2557_v40 = vld [vmem:[#allocation2 + $0x38] sm:$0xff] }
 0x123   : > { %v1184_v41 = vpop.f32.mrb[8].mxu0 }
 0x124   : > { %v2456_v42 = vsel %vm1222_vm8, %v1184_v41, -1e+30  ;;  %v2074_v43 = vpop.f32.mrb[9].mxu0 }
 0x125   : > { %v1187_v44 = vpop.f32.mrb[10].mxu0  ;;  %v1258_v45 = vsel %vm1245_vm4, %v2456_v42, -inf }
 0x126   : > { %v2460_v48 = vsel %vm1223_vm9, %v1187_v44, -1e+30  ;;  %1259 = vmax.xlane.f32.xlu0 %v1258_v45  ;;  %v2075_v49 = vpop.f32.mrb[11].mxu0 }
 0x127   : > { %v1261_v50 = vsel %vm1245_vm4, %v2460_v48, -inf }
 0x128   : > { %1262 = vmax.xlane.f32.xlu1 %v1261_v50 }
 0x12b   : > { %v1192_v52 = vpop.f32.mrb[12].mxu0 }
 0x12c   : > { %v2466_v53 = vsel %vm1224_vm10, %v1192_v52, -1e+30  ;;  %v2078_v54 = vpop.f32.mrb[13].mxu0 }
 0x12d   : > { %v1195_v55 = vpop.f32.mrb[14].mxu0  ;;  %v1264_v56 = vsel %vm1245_vm4, %v2466_v53, -inf }
 0x12e   : > { %v2470_v58 = vsel %vm1225_vm11, %v1195_v55, -1e+30  ;;  %1265 = vmax.xlane.f32.xlu0 %v1264_v56  ;;  %v2079_v59 = vpop.f32.mrb[15].mxu0 }
 0x12f   : > { %v1267_v60 = vsel %vm1245_vm4, %v2470_v58, -inf }
 0x130   : > { %1268 = vmax.xlane.f32.xlu1 %v1267_v60 }
 0x133   : > { %v1200_v61 = vpop.f32.mrb[16].mxu0 }
 0x134   : > { %v2475_v62 = vsel %vm1226_vm12, %v1200_v61, -1e+30  ;;  %v2082_v63 = vpop.f32.mrb[17].mxu0 }
 0x135   : > { %v1203_v1 = vpop.f32.mrb[18].mxu0  ;;  %v1270_v2 = vsel %vm1245_vm4, %v2475_v62, -inf }
 0x136   : > { %1271 = vmax.xlane.f32.xlu0 %v1270_v2  ;;  %v2083_v3 = vpop.f32.mrb[19].mxu0 }
 0x1a3   : > { %v1248_v5 = vpop.xlane.xlu0 %1247 }
 0x1a4   : > { %v2484_v6 = vmax.f32 %v2480_v4, %v1248_v5 }
 0x1a6   : > { %v1282_v8 = vsub.f32 %v2480_v4, %v2484_v6  ;;  %1649 = vst.msk [vmem:[#allocation2] sm:$0xff] %vm395_vm2, %v2484_v6  ;;  %1311 = vperm.xlu1 %2164, %v2484_v6  }
 0x1a7   : > { %v1251_v10 = vpop.xlane.xlu0 %1250 }
 0x1a8   : > { %v2500_v11 = vmax.f32 %v2486_v7, %v1251_v10 }
 0x1aa   : > { %v1283_v13 = vsub.f32 %v2486_v7, %v2500_v11  ;;  %1650 = vst.msk [vmem:[#allocation2 + $0x8] sm:$0xff] %vm395_vm2, %v2500_v11  ;;  %1316 = vperm.xlu0 %2165, %v2500_v11  }
 0x1ab   : > { %v1254_v15 = vpop.xlane.xlu1 %1253 }
 0x1ac   : > { %v2512_v16 = vmax.f32 %v2502_v12, %v1254_v15 }
 0x1ae   : > { %v1284_v18 = vsub.f32 %v2502_v12, %v2512_v16  ;;  %1651 = vst.msk [vmem:[#allocation2 + $0x10] sm:$0xff] %vm395_vm2, %v2512_v16  ;;  %1321 = vperm.xlu1 %2164, %v2512_v16  }
 0x1af   : > { %v1257_v20 = vpop.xlane.xlu1 %1256 }
 0x1b0   : > { %v2524_v21 = vmax.f32 %v2514_v17, %v1257_v20 }
 0x1b2   : > { %v1285_v24 = vsub.f32 %v2514_v17, %v2524_v21  ;;  %1652 = vst.msk [vmem:[#allocation2 + $0x18] sm:$0xff] %vm395_vm2, %v2524_v21  ;;  %1326 = vperm.xlu1 %2164, %v2524_v21  }
 0x1b3   : > { %v1260_v26 = vpop.xlane.xlu0 %1259 }
 0x1b4   : > { %v2538_v29 = vmax.f32 %v2526_v23, %v1260_v26  ;;  %v1297_v4 = vmul.f32 1.442695, %v1285_v24 }
 0x1b5   : > { %v1263_v30 = vpop.xlane.xlu1 %1262 }
 0x1b6   : > { %v1286_v33 = vsub.f32 %v2526_v23, %v2538_v29  ;;  %1653 = vst.msk [vmem:[#allocation2 + $0x20] sm:$0xff] %vm395_vm2, %v2538_v29  ;;  %v2547_v34 = vmax.f32 %v2535_v28, %v1263_v30  ;;  %1331 = vperm.xlu1 %2164, %v2538_v29  }
 0x1b8   : > { %v1287_v36 = vsub.f32 %v2535_v28, %v2547_v34  ;;  %1654 = vst.msk [vmem:[#allocation2 + $0x28] sm:$0xff] %vm395_vm2, %v2547_v34 }
 0x1ba   : > { %1336 = vperm.xlu1 %2164, %v2547_v34   ;;  %v1301_v6 = vmul.f32 1.442695, %v1287_v36 }
 0x1bb   : > { %v1266_v39 = vpop.xlane.xlu0 %1265 }
 0x1bc   : > { %v2560_v41 = vmax.f32 %v2554_v38, %v1266_v39 }
 0x1bd   : > { %v1269_v43 = vpop.xlane.xlu1 %1268 }
 0x1be   : > { %v1288_v44 = vsub.f32 %v2554_v38, %v2560_v41  ;;  %1655 = vst.msk [vmem:[#allocation2 + $0x30] sm:$0xff] %vm395_vm2, %v2560_v41  ;;  %v2567_v45 = vmax.f32 %v2557_v40, %v1269_v43  ;;  %1341 = vperm.xlu1 %2164, %v2560_v41   ;;  %v1382_v38 = vld [vmem:[#allocation3 + $0x8] sm:$0xff] }
 0x1c0   : > { %v1289_v46 = vsub.f32 %v2557_v40, %v2567_v45  ;;  %1656 = vst.msk [vmem:[#allocation2 + $0x38] sm:$0xff] %vm395_vm2, %v2567_v45  ;;  %v1303_v7 = vmul.f32 1.442695, %v1288_v44 }
 0x1c2   : > { %1346 = vperm.xlu1 %2164, %v2567_v45   ;;  %v1305_v16 = vmul.f32 1.442695, %v1289_v46  ;;  %v1383_v45 = vld [vmem:[#allocation3 + $0x10] sm:$0xff] }
 0x1c3   : > { %v1272_v49 = vpop.xlane.xlu0 %1271 }
 0x1c4   : > { %v2578_v50 = vmax.f32 %v2574_v47, %v1272_v49 }
 0x1c6   : > { %v1290_v51 = vsub.f32 %v2574_v47, %v2578_v50  ;;  %1657 = vst.msk [vmem:[#allocation2 + $0x40] sm:$0xff] %vm395_vm2, %v2578_v50  ;;  %1351 = vperm.xlu1 %2164, %v2578_v50  }
 0x225   : > { %v1312_v52 = vpop.permute.xlu1 %1311 }
 0x226   : > { %v1354_v54 = vsub.f32 %v2436_v22, %v1312_v52 }
 0x228   : > { %v1363_v55 = vmul.f32 1.442695, %v1354_v54 }
 0x229   : > { %v1317_v56 = vpop.permute.xlu0 %1316 }
 0x22a   : > { %2181 = vpow2.f32 %v1363_v55  ;;  %v1355_v57 = vsub.f32 %v2440_v27, %v1317_v56 }
 0x22c   : > { %v1365_v59 = vmul.f32 1.442695, %v1355_v57 }
 0x22d   : > { %v1322_v60 = vpop.permute.xlu1 %1321 }
 0x22e   : > { %2183 = vpow2.f32 %v1365_v59  ;;  %v1356_v61 = vsub.f32 %v2446_v32, %v1322_v60 }
 0x230   : > { %v1367_v63 = vmul.f32 1.442695, %v1356_v61 }
 0x231   : > { %v1327_v1 = vpop.permute.xlu1 %1326 }
 0x232   : > { %2185 = vpow2.f32 %v1367_v63  ;;  %v1357_v2 = vsub.f32 %v2450_v37, %v1327_v1 }
 0x234   : > { %v2182_v3 = vpop.eup %2181  ;;  %v1369_v5 = vmul.f32 1.442695, %v1357_v2 }
 0x235   : > { %v1332_v9 = vpop.permute.xlu1 %1331  ;;  %v1399_v22 = vsel %vm1245_vm4, %v2182_v3, 0.0 }
 0x236   : > { %2187 = vpow2.f32 %v1369_v5  ;;  %v1358_v10 = vsub.f32 %v2456_v42, %v1332_v9  ;;  %1400 = vadd.xlane.f32.xlu1 %v1399_v22  ;;  %v1291_v5 = vmul.f32 1.442695, %v1282_v8  ;;  %v1295_v22 = vmul.f32 1.442695, %v1284_v18 }
 0x237   : > { %v1299_v8 = vmul.f32 1.442695, %v1286_v33  ;;  %v1381_v33 = vld [vmem:[#allocation3] sm:$0xff] }
 0x238   : > { %v2184_v27 = vpop.eup %2183  ;;  %v1371_v14 = vmul.f32 1.442695, %v1358_v10 }
 0x239   : > { %v1337_v15 = vpop.permute.xlu1 %1336  ;;  %v1402_v19 = vsel %vm1245_vm4, %v2184_v27, 0.0  ;;  %v1508_v32 = vpack.c.bf16 %v2184_v27, %v2182_v3 }
 0x23a   : > { %2189 = vpow2.f32 %v1371_v14  ;;  %v1359_v20 = vsub.f32 %v2460_v48, %v1337_v15  ;;  %1403 = vadd.xlane.f32.xlu0 %v1402_v19 }
 0x23b   : > { %2095 = vmatmul.mubr.msk.bf16.vlgmr.msra.gmra.mrb[0].mxu1 %vm1245_vm4, %v1508_v32  ;;  %v1385_v32 = vld [vmem:[#allocation3 + $0x20] sm:$0xff] }
 0x23c   : > { %v2186_v37 = vpop.eup %2185  ;;  %v1373_v25 = vmul.f32 1.442695, %v1359_v20  ;;  %2098 = vmatprep.mubr.msk.bf16.mxu1 %vm2276_vm1, %v2275_v0 }
 0x23d   : > { %v1342_v26 = vpop.permute.xlu1 %1341  ;;  %v1405_v42 = vsel %vm1245_vm4, %v2186_v37, 0.0 }
 0x23e   : > { %2191 = vpow2.f32 %v1373_v25  ;;  %v1360_v30 = vsub.f32 %v2466_v53, %v1342_v26  ;;  %1406 = vadd.xlane.f32.xlu0 %v1405_v42  ;;  %v1386_v42 = vld [vmem:[#allocation3 + $0x28] sm:$0xff] }
 0x240   : > { %v2188_v31 = vpop.eup %2187  ;;  %v1375_v35 = vmul.f32 1.442695, %v1360_v30 }
 0x241   : > { %v1347_v39 = vpop.permute.xlu1 %1346  ;;  %v1408_v48 = vsel %vm1245_vm4, %v2188_v31, 0.0  ;;  %v1509_v43 = vpack.c.bf16 %v2188_v31, %v2186_v37 }
 0x242   : > { %2193 = vpow2.f32 %v1375_v35  ;;  %v1361_v49 = vsub.f32 %v2470_v58, %v1347_v39  ;;  %1409 = vadd.xlane.f32.xlu1 %v1408_v48  ;;  %v1387_v48 = vld [vmem:[#allocation3 + $0x30] sm:$0xff] }
 0x243   : > { %2099 = vmatmul.mubr.msk.bf16.gmra.mrb[4].mxu1 %vm1245_vm4, %v1509_v43 }
 0x244   : > { %v2190_v52 = vpop.eup %2189  ;;  %v1377_v54 = vmul.f32 1.442695, %v1361_v49  ;;  %2102 = vmatprep.mubr.msk.bf16.mxu1 %vm2276_vm1, %v2275_v0 }
 0x245   : > { %v1352_v55 = vpop.permute.xlu1 %1351  ;;  %v1411_v53 = vsel %vm1245_vm4, %v2190_v52, 0.0 }
 0x246   : > { %2195 = vpow2.f32 %v1377_v54  ;;  %v1362_v56 = vsub.f32 %v2475_v62, %v1352_v55  ;;  %1412 = vadd.xlane.f32.xlu0 %v1411_v53  ;;  %v1388_v53 = vld [vmem:[#allocation3 + $0x38] sm:$0xff] }
 0x248   : > { %v2192_v57 = vpop.eup %2191  ;;  %v1379_v59 = vmul.f32 1.442695, %v1362_v56 }
 0x249   : > { %v1414_v60 = vsel %vm1245_vm4, %v2192_v57, 0.0  ;;  %v1510_v58 = vpack.c.bf16 %v2192_v57, %v2190_v52 }
 0x24a   : > { %2197 = vpow2.f32 %v1379_v59  ;;  %1415 = vadd.xlane.f32.xlu1 %v1414_v60 }
 0x24b   : > { %2103 = vmatmul.mubr.msk.bf16.gmra.mrb[8].mxu1 %vm1245_vm4, %v1510_v58  ;;  %2199 = vpow2.f32 %v1291_v5 }
 0x24c   : > { %v2194_v61 = vpop.eup %2193  ;;  %2106 = vmatprep.mubr.msk.bf16.mxu1 %vm2276_vm1, %v2275_v0  ;;  %2201 = vpow2.f32 %v1295_v22 }
 0x24d   : > { %v1417_v63 = vsel %vm1245_vm4, %v2194_v61, 0.0  ;;  %2203 = vpow2.f32 %v1297_v4 }
 0x24e   : > { %1418 = vadd.xlane.f32.xlu0 %v1417_v63 }
 0x250   : > { %v2196_v1 = vpop.eup %2195 }
 0x251   : > { %v1420_v62 = vsel %vm1245_vm4, %v2196_v1, 0.0  ;;  %v1511_v2 = vpack.c.bf16 %v2196_v1, %v2194_v61  ;;  %v1389_v61 = vld [vmem:[#allocation3 + $0x40] sm:$0xff] }
 0x252   : > { %1421 = vadd.xlane.f32.xlu1 %v1420_v62 }
 0x253   : > { %2107 = vmatmul.mubr.msk.bf16.gmra.mrb[12].mxu1 %vm1245_vm4, %v1511_v2 }
 0x254   : > { %v2198_v3 = vpop.eup %2197  ;;  %2110 = vmatprep.mubr.msk.bf16.mxu1 %vm2276_vm1, %v2275_v0  ;;  %v1293_v0 = vmul.f32 1.442695, %v1283_v13  ;;  %v1307_v13 = vmul.f32 1.442695, %v1290_v51  ;;  %v1384_v51 = vld [vmem:[#allocation3 + $0x18] sm:$0xff] }
 0x255   : > { %v1423_v9 = vsel %vm1245_vm4, %v2198_v3, 0.0  ;;  %v1512_v10 = vpack.c.bf16 %v2198_v3, %v2198_v3  ;;  %v2200_v12 = vpop.eup %2199 }
 0x256   : > { %1424 = vadd.xlane.f32.xlu0 %v1423_v9  ;;  %2205 = vpow2.f32 %v1293_v0  ;;  %v2202_v11 = vpop.eup %2201  ;;  %v1390_v34 = vmul.f32 %v2200_v12, %v1381_v33 }
 0x257   : > { %2207 = vpow2.f32 %v1301_v6  ;;  %v2204_v17 = vpop.eup %2203  ;;  %v1392_v47 = vmul.f32 %v2202_v11, %v1383_v45 }
 0x258   : > { %2209 = vpow2.f32 %v1299_v8  ;;  %v1393_v15 = vmul.f32 %v2204_v17, %v1384_v51 }
 0x259   : > { %2211 = vpow2.f32 %v1305_v16 }
 0x25a   : > { %2213 = vpow2.f32 %v1303_v7 }
 0x25b   : > { %2111 = vmatmul.mubr.msk.bf16.gmra.mrb[16].mxu1 %vm1245_vm4, %v1512_v10  ;;  %2215 = vpow2.f32 %v1307_v13  ;;  %v1446_v13 = vld [vmem:[#allocation4 + $0x8] sm:$0xff] }
 0x260   : > { %v2206_v18 = vpop.eup %2205 }
 0x261   : > { %v2208_v21 = vpop.eup %2207  ;;  %v1391_v41 = vmul.f32 %v2206_v18, %v1382_v38  ;;  %v1447_v38 = vld [vmem:[#allocation4 + $0x10] sm:$0xff] }
 0x262   : > { %v2210_v23 = vpop.eup %2209  ;;  %v1395_v35 = vmul.f32 %v2208_v21, %v1386_v42 }
 0x263   : > { %1456 = vperm.xlu1 %2164, %v2200_v12   ;;  %v2212_v24 = vpop.eup %2211  ;;  %v1394_v25 = vmul.f32 %v2210_v23, %v1385_v32  ;;  %v1450_v32 = vld [vmem:[#allocation4 + $0x28] sm:$0xff] }
 0x264   : > { %v2214_v28 = vpop.eup %2213  ;;  %v1397_v60 = vmul.f32 %v2212_v24, %v1388_v53 }
 0x265   : > { %v2216_v29 = vpop.eup %2215  ;;  %v1396_v54 = vmul.f32 %v2214_v28, %v1387_v48  ;;  %v1451_v48 = vld [vmem:[#allocation4 + $0x30] sm:$0xff] }
 0x266   : > { %v1398_v2 = vmul.f32 %v2216_v29, %v1389_v61  ;;  %v1453_v61 = vld [vmem:[#allocation4 + $0x40] sm:$0xff] }
 0x267   : > { %1466 = vperm.xlu1 %2164, %v2202_v11   ;;  %v1445_v11 = vld [vmem:[#allocation4] sm:$0xff] }
 0x26b   : > { %1471 = vperm.xlu1 %2164, %v2204_v17  }
 0x26c   : > { %1461 = vperm.xlu0 %2165, %v2206_v18  }
 0x26f   : > { %1481 = vperm.xlu1 %2164, %v2208_v21  }
 0x270   : > { %1476 = vperm.xlu0 %2165, %v2210_v23  }
 0x273   : > { %1491 = vperm.xlu1 %2164, %v2212_v24  }
 0x274   : > { %1486 = vperm.xlu0 %2165, %v2214_v28  }
 0x278   : > { %1496 = vperm.xlu0 %2165, %v2216_v29  }
 0x2c3   : > { %v1401_v36 = vpop.xlane.xlu1 %1400 }
 0x2c4   : > { %v1426_v40 = vadd.f32 %v1401_v36, %v1390_v34 }
 0x2c6   : > { %1436 = vst.msk [vmem:[#allocation3] sm:$0xff] %vm395_vm2, %v1426_v40  ;;  %v1448_v40 = vld [vmem:[#allocation4 + $0x18] sm:$0xff] }
 0x2c7   : > { %v1404_v44 = vpop.xlane.xlu0 %1403 }
 0x2c8   : > { %v1427_v46 = vadd.f32 %v1404_v44, %v1391_v41 }
 0x2ca   : > { %1437 = vst.msk [vmem:[#allocation3 + $0x8] sm:$0xff] %vm395_vm2, %v1427_v46 }
 0x2cb   : > { %v1407_v50 = vpop.xlane.xlu0 %1406 }
 0x2cc   : > { %v1428_v27 = vadd.f32 %v1407_v50, %v1392_v47 }
 0x2cd   : > { %v1661_v14 = vld [vmem:[#allocation3] sm:$0xff] }
 0x2ce   : > { %1438 = vst.msk [vmem:[#allocation3 + $0x10] sm:$0xff] %vm395_vm2, %v1428_v27  ;;  %2217 = vrcp.f32 %v1661_v14 }
 0x2cf   : > { %v1410_v19 = vpop.xlane.xlu1 %1409 }
 0x2d0   : > { %v1429_v20 = vadd.f32 %v1410_v19, %v1393_v15  ;;  %v1449_v15 = vld [vmem:[#allocation4 + $0x20] sm:$0xff] }
 0x2d1   : > { %v1662_v37 = vld [vmem:[#allocation3 + $0x8] sm:$0xff] }
 0x2d2   : > { %1439 = vst.msk [vmem:[#allocation3 + $0x18] sm:$0xff] %vm395_vm2, %v1429_v20  ;;  %2219 = vrcp.f32 %v1662_v37 }
 0x2d3   : > { %v1413_v26 = vpop.xlane.xlu0 %1412 }
 0x2d4   : > { %v1430_v30 = vadd.f32 %v1413_v26, %v1394_v25 }
 0x2d5   : > { %v1663_v31 = vld [vmem:[#allocation3 + $0x10] sm:$0xff] }
 0x2d6   : > { %1440 = vst.msk [vmem:[#allocation3 + $0x20] sm:$0xff] %vm395_vm2, %v1430_v30  ;;  %2221 = vrcp.f32 %v1663_v31 }
 0x2d7   : > { %v1416_v39 = vpop.xlane.xlu1 %1415 }
 0x2d8   : > { %v2218_v43 = vpop.eup %2217  ;;  %v1431_v49 = vadd.f32 %v1416_v39, %v1395_v35 }
 0x2d9   : > { %1690 = vperm.xlu1 %2164, %v2218_v43   ;;  %v1664_v52 = vld [vmem:[#allocation3 + $0x18] sm:$0xff] }
 0x2da   : > { %1441 = vst.msk [vmem:[#allocation3 + $0x28] sm:$0xff] %vm395_vm2, %v1431_v49  ;;  %2223 = vrcp.f32 %v1664_v52  ;;  %v1452_v49 = vld [vmem:[#allocation4 + $0x38] sm:$0xff] }
 0x2db   : > { %v1419_v55 = vpop.xlane.xlu0 %1418 }
 0x2dc   : > { %v2220_v56 = vpop.eup %2219  ;;  %v1432_v57 = vadd.f32 %v1419_v55, %v1396_v54 }
 0x2dd   : > { %1695 = vperm.xlu0 %2165, %v2220_v56   ;;  %v1665_v59 = vld [vmem:[#allocation3 + $0x20] sm:$0xff] }
 0x2de   : > { %1442 = vst.msk [vmem:[#allocation3 + $0x30] sm:$0xff] %vm395_vm2, %v1432_v57  ;;  %2225 = vrcp.f32 %v1665_v59 }
 0x2df   : > { %v1422_v58 = vpop.xlane.xlu1 %1421 }
 0x2e0   : > { %v2222_v63 = vpop.eup %2221  ;;  %v1433_v1 = vadd.f32 %v1422_v58, %v1397_v60 }
 0x2e1   : > { %1700 = vperm.xlu1 %2164, %v2222_v63   ;;  %v1666_v62 = vld [vmem:[#allocation3 + $0x28] sm:$0xff] }
 0x2e2   : > { %1443 = vst.msk [vmem:[#allocation3 + $0x38] sm:$0xff] %vm395_vm2, %v1433_v1  ;;  %2227 = vrcp.f32 %v1666_v62 }
 0x2e3   : > { %v1425_v3 = vpop.xlane.xlu0 %1424  ;;  %v1457_v7 = vpop.permute.xlu1 %1456 }
 0x2e4   : > { %v2224_v5 = vpop.eup %2223  ;;  %v1434_v9 = vadd.f32 %v1425_v3, %v1398_v2  ;;  %v1499_v18 = vmul.f32 %v1457_v7, %v1445_v11 }
 0x2e5   : > { %1705 = vperm.xlu0 %2165, %v2224_v5   ;;  %v1667_v22 = vld [vmem:[#allocation3 + $0x30] sm:$0xff] }
 0x2e6   : > { %1444 = vst.msk [vmem:[#allocation3 + $0x40] sm:$0xff] %vm395_vm2, %v1434_v9  ;;  %2229 = vrcp.f32 %v1667_v22 }
 0x2e7   : > { %v1467_v21 = vpop.permute.xlu1 %1466 }
 0x2e8   : > { %v2226_v10 = vpop.eup %2225  ;;  %v1501_v44 = vmul.f32 %v1467_v21, %v1447_v38 }
 0x2e9   : > { %1710 = vperm.xlu1 %2164, %v2226_v10   ;;  %v1668_v4 = vld [vmem:[#allocation3 + $0x38] sm:$0xff] }
 0x2ea   : > { %2231 = vrcp.f32 %v1668_v4 }
 0x2eb   : > { %v1462_v17 = vpop.permute.xlu0 %1461  ;;  %v1472_v41 = vpop.permute.xlu1 %1471 }
 0x2ec   : > { %v2228_v0 = vpop.eup %2227  ;;  %v1500_v24 = vmul.f32 %v1462_v17, %v1446_v13  ;;  %v1502_v46 = vmul.f32 %v1472_v41, %v1448_v40 }
 0x2ed   : > { %1715 = vperm.xlu0 %2165, %v2228_v0   ;;  %v1669_v6 = vld [vmem:[#allocation3 + $0x40] sm:$0xff] }
 0x2ee   : > { %2233 = vrcp.f32 %v1669_v6 }
 0x2ef   : > { %v1477_v19 = vpop.permute.xlu0 %1476  ;;  %v1482_v20 = vpop.permute.xlu1 %1481 }
 0x2f0   : > { %v2230_v8 = vpop.eup %2229  ;;  %v1503_v37 = vmul.f32 %v1477_v19, %v1449_v15  ;;  %v1504_v26 = vmul.f32 %v1482_v20, %v1450_v32 }
 0x2f1   : > { %1720 = vperm.xlu1 %2164, %v2230_v8  }
 0x2f3   : > { %v1487_v43 = vpop.permute.xlu0 %1486  ;;  %v1492_v52 = vpop.permute.xlu1 %1491 }
 0x2f4   : > { %v2232_v12 = vpop.eup %2231  ;;  %v1505_v54 = vmul.f32 %v1487_v43, %v1451_v48  ;;  %v1506_v53 = vmul.f32 %v1492_v52, %v1452_v49 }
 0x2f5   : > { %1725 = vperm.xlu0 %2165, %v2232_v12  }
 0x2f7   : > { %v1497_v63 = vpop.permute.xlu0 %1496 }
 0x2f8   : > { %v2234_v16 = vpop.eup %2233  ;;  %v1507_v1 = vmul.f32 %v1497_v63, %v1453_v61 }
 0x2f9   : > { %1730 = vperm.xlu1 %2164, %v2234_v16  }
 0x30e   : > { %v1593_v23 = vpop.f32.mrb[0].mxu1 }
 0x30f   : > { %v1631_v28 = vadd.f32 %v1593_v23, %v1499_v18  ;;  %v2096_v29 = vpop.f32.mrb[1].mxu1 }
 0x310   : > { %v1596_v33 = vpop.f32.mrb[2].mxu1 }
 0x311   : > { %1640 = vst.msk [vmem:[#allocation4] sm:$0xff] %vm414_vm0, %v1631_v28  ;;  %v1632_v34 = vadd.f32 %v1596_v33, %v1500_v24  ;;  %v2097_v36 = vpop.f32.mrb[3].mxu1 }
 0x313   : > { %1641 = vst.msk [vmem:[#allocation4 + $0x8] sm:$0xff] %vm414_vm0, %v1632_v34 }
 0x316   : > { %v1601_v45 = vpop.f32.mrb[4].mxu1 }
 0x317   : > { %v1633_v47 = vadd.f32 %v1601_v45, %v1501_v44  ;;  %v2100_v50 = vpop.f32.mrb[5].mxu1 }
 0x318   : > { %v1604_v51 = vpop.f32.mrb[6].mxu1  ;;  %v1679_v10 = vld [vmem:[#allocation4] sm:$0xff] }
 0x319   : > { %1642 = vst.msk [vmem:[#allocation4 + $0x10] sm:$0xff] %vm414_vm0, %v1633_v47  ;;  %v1634_v27 = vadd.f32 %v1604_v51, %v1502_v46  ;;  %v2101_v14 = vpop.f32.mrb[7].mxu1 }
 0x31a   : > { %v1680_v6 = vld [vmem:[#allocation4 + $0x8] sm:$0xff] }
 0x31b   : > { %1643 = vst.msk [vmem:[#allocation4 + $0x18] sm:$0xff] %vm414_vm0, %v1634_v27 }
 0x31e   : > { %v1609_v25 = vpop.f32.mrb[8].mxu1 }
 0x31f   : > { %v1635_v42 = vadd.f32 %v1609_v25, %v1503_v37  ;;  %v2104_v30 = vpop.f32.mrb[9].mxu1 }
 0x320   : > { %v1612_v31 = vpop.f32.mrb[10].mxu1  ;;  %v1681_v7 = vld [vmem:[#allocation4 + $0x10] sm:$0xff] }
 0x321   : > { %1644 = vst.msk [vmem:[#allocation4 + $0x20] sm:$0xff] %vm414_vm0, %v1635_v42  ;;  %v1636_v35 = vadd.f32 %v1612_v31, %v1504_v26  ;;  %v2105_v39 = vpop.f32.mrb[11].mxu1 }
 0x322   : > { %v1682_v18 = vld [vmem:[#allocation4 + $0x18] sm:$0xff] }
 0x323   : > { %1645 = vst.msk [vmem:[#allocation4 + $0x28] sm:$0xff] %vm414_vm0, %v1636_v35 }
 0x326   : > { %v1617_v55 = vpop.f32.mrb[12].mxu1 }
 0x327   : > { %v1637_v56 = vadd.f32 %v1617_v55, %v1505_v54  ;;  %v2108_v57 = vpop.f32.mrb[13].mxu1 }
 0x328   : > { %v1620_v59 = vpop.f32.mrb[14].mxu1  ;;  %v1683_v29 = vld [vmem:[#allocation4 + $0x20] sm:$0xff] }
 0x329   : > { %1646 = vst.msk [vmem:[#allocation4 + $0x30] sm:$0xff] %vm414_vm0, %v1637_v56  ;;  %v1638_v60 = vadd.f32 %v1620_v59, %v1506_v53  ;;  %v2109_v58 = vpop.f32.mrb[15].mxu1 }
 0x32a   : > { %v1684_v36 = vld [vmem:[#allocation4 + $0x28] sm:$0xff] }
 0x32b   : > { %1647 = vst.msk [vmem:[#allocation4 + $0x38] sm:$0xff] %vm414_vm0, %v1638_v60 }
 0x32e   : > { %v1625_v62 = vpop.f32.mrb[16].mxu1 }
 0x32f   : > { %v1639_v2 = vadd.f32 %v1625_v62, %v1507_v1  ;;  %v2112_v3 = vpop.f32.mrb[17].mxu1 }
 0x330   : > { %v1628_v5 = vpop.f32.mrb[18].mxu1  ;;  %v1685_v45 = vld [vmem:[#allocation4 + $0x30] sm:$0xff] }
 0x331   : > { %1648 = vst.msk [vmem:[#allocation4 + $0x40] sm:$0xff] %vm414_vm0, %v1639_v2  ;;  %v2113_v9 = vpop.f32.mrb[19].mxu1 }
 0x332   : > { %v1686_v50 = vld [vmem:[#allocation4 + $0x38] sm:$0xff] }
 0x338   : > { %v1687_v19 = vld [vmem:[#allocation4 + $0x40] sm:$0xff] }
 0x358   : > { %v1691_v22 = vpop.permute.xlu1 %1690 }
 0x359   : > { %v1733_v4 = vmul.f32 %v1691_v22, %v1679_v10 }
 0x35b   : > { %v2025_v0 = vpack.c.bf16 %v1733_v4, %v1733_v4 }
 0x35c   : > { %v1696_v8 = vpop.permute.xlu0 %1695 }
 0x35d   : > { %1780 = vst.msk [vmem:[%s2667_s28] sm:$0xf] %vm1779_vm14, %v2025_v0  ;;  %v1734_v12 = vmul.f32 %v1696_v8, %v1680_v6 }
 0x35f   : > { %v2026_v16 = vpack.c.bf16 %v1734_v12, %v1734_v12 }
 0x360   : > { %v1701_v11 = vpop.permute.xlu1 %1700 }
 0x361   : > { %1781 = vst.msk [vmem:[%s2667_s28 + $0x4] sm:$0xf] %vm1779_vm14, %v2026_v16  ;;  %v1735_v13 = vmul.f32 %v1701_v11, %v1681_v7 }
 0x363   : > { %v2027_v17 = vpack.c.bf16 %v1735_v13, %v1735_v13 }
 0x364   : > { %v1706_v21 = vpop.permute.xlu0 %1705 }
 0x365   : > { %1782 = vst.msk [vmem:[%s2667_s28 + $0x8] sm:$0xf] %vm1779_vm14, %v2027_v17  ;;  %v1736_v23 = vmul.f32 %v1706_v21, %v1682_v18 }
 0x367   : > { %v2028_v24 = vpack.c.bf16 %v1736_v23, %v1736_v23 }
 0x368   : > { %v1711_v28 = vpop.permute.xlu1 %1710 }
 0x369   : > { %1783 = vst.msk [vmem:[%s2667_s28 + $0xc] sm:$0xf] %vm1779_vm14, %v2028_v24  ;;  %v1737_v33 = vmul.f32 %v1711_v28, %v1683_v29 }
 0x36b   : > { %v2029_v34 = vpack.c.bf16 %v1737_v33, %v1737_v33 }
 0x36c   : > { %v1716_v38 = vpop.permute.xlu0 %1715 }
 0x36d   : > { %1784 = vst.msk [vmem:[%s2667_s28 + $0x10] sm:$0xf] %vm1779_vm14, %v2029_v34  ;;  %v1738_v40 = vmul.f32 %v1716_v38, %v1684_v36 }
 0x36f   : > { %v2030_v41 = vpack.c.bf16 %v1738_v40, %v1738_v40 }
 0x370   : > { %v1721_v44 = vpop.permute.xlu1 %1720 }
 0x371   : > { %1785 = vst.msk [vmem:[%s2667_s28 + $0x14] sm:$0xf] %vm1779_vm14, %v2030_v41  ;;  %v1739_v46 = vmul.f32 %v1721_v44, %v1685_v45 }
 0x373   : > { %v2031_v47 = vpack.c.bf16 %v1739_v46, %v1739_v46 }
 0x374   : > { %v1726_v51 = vpop.permute.xlu0 %1725 }
 0x375   : > { %1786 = vst.msk [vmem:[%s2667_s28 + $0x18] sm:$0xf] %vm1779_vm14, %v2031_v47  ;;  %v1740_v27 = vmul.f32 %v1726_v51, %v1686_v50 }
 0x377   : > { %v2032_v14 = vpack.c.bf16 %v1740_v27, %v1740_v27 }
 0x378   : > { %v1731_v15 = vpop.permute.xlu1 %1730 }
 0x379   : > { %1787 = vst.msk [vmem:[%s2667_s28 + $0x1c] sm:$0xf] %vm1779_vm14, %v2032_v14  ;;  %v1741_v32 = vmul.f32 %v1731_v15, %v1687_v19 }
 0x37b   : > { %v2033_v20 = vpack.c.bf16 %v1741_v32, %v1741_v32 }
 0x37d   : > { %1788 = vst.msk [vmem:[%s2667_s28 + $0x20] sm:$0xf] %vm1779_vm14, %v2033_v20 }
 0x37e PF: > { %s13_s16 = sadd.s32 1, %s2273_s16   ;;  %s2707_s12 = smov %s2265_s14 }
 0x37f   : > { %p10_p10 = scmp.ge.s32.totalorder %s13_s16, 10   ;;  %s2708_s13 = smov %s2269_s15 }
 0x380   : > { %s2709_s14 = smov %s2712_s17  ;;  %s2710_s15 = smov %s2716_s18 }
 0x381   :  { %12 = sbr.rel (!%p10_p10) target bundleno = 3 (0x3), region = 84 }

// kernel: multimodal_gpt_forward.18
= control target key start
LH: loop header
LB: loop body
LE: loop exit
PB: predicated region body
PF: predicated region fallthrough
CT: control target
= control target key end

     0   :  { %s1157_s18 = smov 0   ;;  %s1159_s19 = smov 0   ;;  %s1310_s0 = inlined_call_operand.vmem [shape: bf16[2,72,32], index: 0, kind: input, shape index: {}]   ;;  %s1311_s1 = inlined_call_operand.vmem [shape: f32[1,32], index: 1, kind: input, shape index: {}]   ;;  %s1312_s2 = inlined_call_operand.vmem [shape: f32[1,32], index: 2, kind: input, shape index: {}]   ;;  %s1313_s3 = inlined_call_operand.vmem [shape: bf16[32,128], index: 3, kind: input, shape index: {}]   ;;  %s1314_s4 = inlined_call_operand.vmem [shape: f32[1,128], index: 4, kind: input, shape index: {}]   ;;  %s1315_s5 = inlined_call_operand.vmem [shape: bf16[2,72,128], index: 5, kind: output, shape index: {}]  }
   0x1   :  { %s1161_s20 = smov 0  }
   0x2 LB: > { %s34_s21 = sadd.s32 1, %s1119_s19  ;;  %p898_p0 = scmp.ge.s32.totalorder %s1123_s20, 1  ;;  %s1123_s20 = sphi %s1161_s20, %s15_s20   ;;  %s1119_s19 = sphi %s1159_s19, %s1317_s19   ;;  %s1115_s18 = sphi %s1157_s18, %s1316_s18  }
   0x3   : > { %p36_p1 = scmp.ge.s32.totalorder %s34_s21, 2  ;;  %p234_p2 = scmp.lt.s32.totalorder %s1123_s20, 3 }
   0x5   : > { %s1319_s21 = smov (%p36_p1, %s34_s21), 0  ;;  %p235_p3 = pnand %p898_p0, %p234_p2 }
   0x6   : > { %p281_p4 = scmp.lt.s32.totalorder (!%p235_p3), %s1115_s18, 1  ;;  %vm335_vm0 = vcmask (!%p235_p3), 261120   ;;  %vm1126_vm1 = vmmov (!%p235_p3), 0   ;;  %vm521_vm2 = vcmask (!%p235_p3), 257024  }
   0x7   : > { %238 = sbr.rel (%p235_p3) target bundleno = 601 (0x259), region = 40 }
   0xe   : > { %s1321_s18 = smov (!%p281_p4, %s1115_s18), 1 }
   0xf   : > { %s1031_s22 = smul.u32 36, %s1321_s18 }
  0x11   : > { %s288_s25 = scalar_lea.vmem %s1310_s0, %s1031_s22  ;;  %s1294_s13 = scalar_lea.vmem %s1315_s5, %s1031_s22 }
  0x12   : > { %v955_v0 = vld [vmem:[%s288_s25] sm:$0xff]   ;;  %v990_v1 = vld [vmem:[%s288_s25 + $0x8] sm:$0xff]   ;;  %v992_v6 = vld [vmem:[%s288_s25 + $0x18] sm:$0xff]  }
  0x13   : > { %v956_v2 = vunpack.c.l.bf16 %v955_v0  ;;  %v960_v3 = vunpack.c.l.bf16 %v990_v1  ;;  %v957_v4 = vunpack.c.h.bf16 %v955_v0  ;;  %v961_v5 = vunpack.c.h.bf16 %v990_v1  ;;  %v991_v13 = vld [vmem:[%s288_s25 + $0x10] sm:$0xff]   ;;  %v323_v18 = vld [vmem:[%s288_s25 + $0x20] sm:$0xf] }
  0x14   : > { %v968_v11 = vunpack.c.l.bf16 %v992_v6  ;;  %v969_v12 = vunpack.c.h.bf16 %v992_v6  ;;  %v964_v16 = vunpack.c.l.bf16 %v991_v13  ;;  %v965_v17 = vunpack.c.h.bf16 %v991_v13  ;;  %v1059_v6 = vld [vmem:[%s1313_s3 + $0x8] sm:$0xff]  }
  0x15   : > { %v336_v7 = vsel %vm335_vm0, %v956_v2, 0.0  ;;  %v342_v8 = vsel %vm335_vm0, %v960_v3, 0.0  ;;  %v339_v9 = vsel %vm335_vm0, %v957_v4, 0.0  ;;  %v345_v10 = vsel %vm335_vm0, %v961_v5, 0.0 }
  0x16   : > { %337 = vadd.xlane.f32.xlu0 %v336_v7  ;;  %343 = vadd.xlane.f32.xlu1 %v342_v8  ;;  %v354_v14 = vsel %vm335_vm0, %v968_v11, 0.0  ;;  %v357_v15 = vsel %vm335_vm0, %v969_v12, 0.0  ;;  %v348_v19 = vsel %vm335_vm0, %v964_v16, 0.0  ;;  %v351_v20 = vsel %vm335_vm0, %v965_v17, 0.0 }
  0x17   : > { %v332_v21 = vunpack.c.l.bf16 %v323_v18 }
  0x19   : > { %v360_v22 = vsel %vm335_vm0, %v332_v21, 0.0 }
  0x1a   : > { %340 = vadd.xlane.f32.xlu0 %v339_v9  ;;  %346 = vadd.xlane.f32.xlu1 %v345_v10 }
  0x1e   : > { %355 = vadd.xlane.f32.xlu0 %v354_v14  ;;  %358 = vadd.xlane.f32.xlu1 %v357_v15 }
  0x22   : > { %349 = vadd.xlane.f32.xlu0 %v348_v19  ;;  %352 = vadd.xlane.f32.xlu1 %v351_v20 }
  0x26   : > { %361 = vadd.xlane.f32.xlu0 %v360_v22 }
  0xa3   : > { %v338_v23 = vpop.xlane.xlu0 %337  ;;  %v344_v24 = vpop.xlane.xlu1 %343 }
  0xa4   : > { %v364_v25 = vmul.f32 0.03125, %v338_v23  ;;  %v366_v26 = vmul.f32 0.03125, %v344_v24 }
  0xa6   : > { %v1192_v27 = vsub.f32 %v956_v2, %v364_v25  ;;  %v1194_v28 = vsub.f32 %v960_v3, %v366_v26 }
  0xa7   : > { %v341_v29 = vpop.xlane.xlu0 %340  ;;  %v347_v30 = vpop.xlane.xlu1 %346 }
  0xa8   : > { %v365_v31 = vmul.f32 0.03125, %v341_v29  ;;  %v367_v32 = vmul.f32 0.03125, %v347_v30  ;;  %v382_v33 = vmul.f32 %v1192_v27, %v1192_v27  ;;  %v384_v34 = vmul.f32 %v1194_v28, %v1194_v28  ;;  %v901_v29 = vld [vmem:[%s1311_s1] ss:$0 sm:$0xff] }
  0xaa   : > { %v1200_v35 = vsub.f32 %v957_v4, %v365_v31  ;;  %v1202_v36 = vsub.f32 %v961_v5, %v367_v32  ;;  %v391_v37 = vsel %vm335_vm0, %v382_v33, 0.0  ;;  %v397_v40 = vsel %vm335_vm0, %v384_v34, 0.0  ;;  %v1058_v4 = vld [vmem:[%s1313_s3] sm:$0xff]  }
  0xab   : > { %392 = vadd.xlane.f32.xlu1 %v391_v37  ;;  %v356_v38 = vpop.xlane.xlu0 %355  ;;  %v359_v39 = vpop.xlane.xlu1 %358  ;;  %v1125_v5 = vmov 0.0   ;;  %v902_v37 = vld [vmem:[%s1312_s2] ss:$0 sm:$0xff] }
  0xac   : > { %v370_v41 = vmul.f32 0.03125, %v356_v38  ;;  %v371_v42 = vmul.f32 0.03125, %v359_v39  ;;  %v383_v43 = vmul.f32 %v1200_v35, %v1200_v35  ;;  %v385_v44 = vmul.f32 %v1202_v36, %v1202_v36  ;;  %1003 = vmatprep.subr.bf16.mxu0 %v1125_v5  ;;  %1027 = vmatprep.subr.bf16.mxu1 %v1125_v5 }
  0xad   : > { %1004 = vmatpush3.bf16.msra.mxu0 %v1058_v4  ;;  %1029 = vmatpush3.bf16.msra.mxu1 %v1058_v4 }
  0xae   : > { %v1210_v45 = vsub.f32 %v968_v11, %v370_v41  ;;  %v1212_v46 = vsub.f32 %v969_v12, %v371_v42  ;;  %v394_v47 = vsel %vm335_vm0, %v383_v43, 0.0  ;;  %v400_v50 = vsel %vm335_vm0, %v385_v44, 0.0  ;;  %1005 = vmatprep.subr.bf16.mxu0 %v1125_v5  ;;  %1028 = vmatprep.subr.bf16.mxu1 %v1125_v5 }
  0xaf   : > { %398 = vadd.xlane.f32.xlu1 %v397_v40  ;;  %395 = vadd.xlane.f32.xlu0 %v394_v47  ;;  %v350_v48 = vpop.xlane.xlu0 %349  ;;  %v353_v49 = vpop.xlane.xlu1 %352 }
  0xb0   : > { %v368_v51 = vmul.f32 0.03125, %v350_v48  ;;  %v369_v52 = vmul.f32 0.03125, %v353_v49  ;;  %v388_v53 = vmul.f32 %v1210_v45, %v1210_v45  ;;  %v389_v54 = vmul.f32 %v1212_v46, %v1212_v46  ;;  %1007 = vmatprep.mubr.msk.bf16.mxu0 %vm1126_vm1, %v1125_v5  ;;  %1019 = vmatprep.mubr.msk.bf16.mxu1 %vm1126_vm1, %v1125_v5 }
  0xb1   : > { %1006 = vmatpush3.bf16.msra.mxu0 %v1059_v6  ;;  %1030 = vmatpush3.bf16.msra.mxu1 %v1059_v6 }
  0xb2   : > { %v1220_v55 = vsub.f32 %v964_v16, %v368_v51  ;;  %v1222_v56 = vsub.f32 %v965_v17, %v369_v52  ;;  %v409_v57 = vsel %vm335_vm0, %v388_v53, 0.0  ;;  %v412_v60 = vsel %vm335_vm0, %v389_v54, 0.0 }
  0xb3   : > { %401 = vadd.xlane.f32.xlu0 %v400_v50  ;;  %410 = vadd.xlane.f32.xlu1 %v409_v57  ;;  %v362_v58 = vpop.xlane.xlu0 %361 }
  0xb4   : > { %v372_v59 = vmul.f32 0.03125, %v362_v58  ;;  %v386_v61 = vmul.f32 %v1220_v55, %v1220_v55  ;;  %v387_v62 = vmul.f32 %v1222_v56, %v1222_v56 }
  0xb6   : > { %v1230_v63 = vsub.f32 %v332_v21, %v372_v59  ;;  %v403_v0 = vsel %vm335_vm0, %v386_v61, 0.0  ;;  %v406_v1 = vsel %vm335_vm0, %v387_v62, 0.0 }
  0xb7   : > { %413 = vadd.xlane.f32.xlu0 %v412_v60  ;;  %404 = vadd.xlane.f32.xlu1 %v403_v0 }
  0xb8   : > { %v390_v2 = vmul.f32 %v1230_v63, %v1230_v63 }
  0xba   : > { %v415_v3 = vsel %vm335_vm0, %v390_v2, 0.0 }
  0xbb   : > { %407 = vadd.xlane.f32.xlu0 %v406_v1  ;;  %416 = vadd.xlane.f32.xlu1 %v415_v3 }
 0x138   : > { %v393_v7 = vpop.xlane.xlu1 %392 }
 0x139   : > { %v418_v8 = vmul.f32 0.03125, %v393_v7 }
 0x13b   : > { %v427_v9 = vadd.f32 1e-05, %v418_v8 }
 0x13c   : > { %v399_v10 = vpop.xlane.xlu1 %398  ;;  %v396_v11 = vpop.xlane.xlu0 %395 }
 0x13d   : > { %1065 = vrsqrt.f32 %v427_v9  ;;  %v420_v12 = vmul.f32 0.03125, %v399_v10  ;;  %v419_v13 = vmul.f32 0.03125, %v396_v11 }
 0x13f   : > { %v429_v14 = vadd.f32 1e-05, %v420_v12  ;;  %v428_v15 = vadd.f32 1e-05, %v419_v13 }
 0x140   : > { %v411_v16 = vpop.xlane.xlu1 %410  ;;  %v402_v17 = vpop.xlane.xlu0 %401 }
 0x141   : > { %1067 = vrsqrt.f32 %v429_v14  ;;  %v424_v18 = vmul.f32 0.03125, %v411_v16  ;;  %v421_v19 = vmul.f32 0.03125, %v402_v17 }
 0x142   : > { %1069 = vrsqrt.f32 %v428_v15 }
 0x143   : > { %v433_v20 = vadd.f32 1e-05, %v424_v18  ;;  %v430_v21 = vadd.f32 1e-05, %v421_v19 }
 0x144   : > { %v405_v22 = vpop.xlane.xlu1 %404  ;;  %v414_v23 = vpop.xlane.xlu0 %413 }
 0x145   : > { %1071 = vrsqrt.f32 %v433_v20  ;;  %v422_v24 = vmul.f32 0.03125, %v405_v22  ;;  %v425_v25 = vmul.f32 0.03125, %v414_v23  ;;  %v912_v23 = vld [vmem:[%s1314_s4] ss:$0 sm:$0xff] }
 0x146   : > { %1073 = vrsqrt.f32 %v430_v21 }
 0x147   : > { %v1066_v26 = vpop.eup %1065  ;;  %v431_v30 = vadd.f32 1e-05, %v422_v24  ;;  %v434_v31 = vadd.f32 1e-05, %v425_v25 }
 0x148   : > { %v445_v32 = vmul.f32 %v1066_v26, %v1192_v27  ;;  %v417_v33 = vpop.xlane.xlu1 %416  ;;  %v408_v34 = vpop.xlane.xlu0 %407 }
 0x149   : > { %1075 = vrsqrt.f32 %v431_v30  ;;  %v426_v38 = vmul.f32 0.03125, %v417_v33  ;;  %v423_v39 = vmul.f32 0.03125, %v408_v34 }
 0x14a   : > { %v460_v40 = vmul.f32 %v901_v29, %v445_v32  ;;  %1077 = vrsqrt.f32 %v434_v31 }
 0x14b   : > { %v1068_v41 = vpop.eup %1067  ;;  %v435_v42 = vadd.f32 1e-05, %v426_v38  ;;  %v432_v43 = vadd.f32 1e-05, %v423_v39 }
 0x14c   : > { %v1070_v44 = vpop.eup %1069  ;;  %v475_v47 = vadd.f32 %v902_v37, %v460_v40  ;;  %v447_v48 = vmul.f32 %v1068_v41, %v1194_v28 }
 0x14d   : > { %v446_v27 = vmul.f32 %v1070_v44, %v1200_v35  ;;  %1079 = vrsqrt.f32 %v435_v42 }
 0x14e   : > { %v936_v49 = vpack.c.bf16 %v475_v47, %v475_v47  ;;  %v462_v50 = vmul.f32 %v901_v29, %v447_v48  ;;  %1081 = vrsqrt.f32 %v432_v43 }
 0x14f   : > { %v1072_v51 = vpop.eup %1071  ;;  %v461_v52 = vmul.f32 %v901_v29, %v446_v27 }
 0x150   : > { %v1074_v53 = vpop.eup %1073  ;;  %522 = vst.msk [vmem:[#allocation2] sm:$0xf] %vm521_vm2, %v936_v49  ;;  %v477_v54 = vadd.f32 %v902_v37, %v462_v50  ;;  %v451_v57 = vmul.f32 %v1072_v51, %v1210_v45 }
 0x151   : > { %v476_v58 = vadd.f32 %v902_v37, %v461_v52  ;;  %v448_v59 = vmul.f32 %v1074_v53, %v1202_v36 }
 0x152   : > { %v938_v60 = vpack.c.bf16 %v477_v54, %v477_v54  ;;  %v466_v28 = vmul.f32 %v901_v29, %v451_v57 }
 0x153   : > { %v1076_v61 = vpop.eup %1075  ;;  %v937_v62 = vpack.c.bf16 %v476_v58, %v476_v58  ;;  %v463_v35 = vmul.f32 %v901_v29, %v448_v59 }
 0x154   : > { %v1078_v0 = vpop.eup %1077  ;;  %524 = vst.msk [vmem:[#allocation2 + $0x8] sm:$0xf] %vm521_vm2, %v938_v60  ;;  %v481_v1 = vadd.f32 %v902_v37, %v466_v28  ;;  %v449_v2 = vmul.f32 %v1076_v61, %v1220_v55 }
 0x155   : > { %523 = vst.msk [vmem:[#allocation2 + $0x4] sm:$0xf] %vm521_vm2, %v937_v62  ;;  %v478_v3 = vadd.f32 %v902_v37, %v463_v35  ;;  %v452_v4 = vmul.f32 %v1078_v0, %v1212_v46 }
 0x156   : > { %v942_v45 = vpack.c.bf16 %v481_v1, %v481_v1  ;;  %v464_v6 = vmul.f32 %v901_v29, %v449_v2 }
 0x157   : > { %v1080_v7 = vpop.eup %1079  ;;  %v939_v36 = vpack.c.bf16 %v478_v3, %v478_v3  ;;  %v467_v8 = vmul.f32 %v901_v29, %v452_v4 }
 0x158   : > { %v1082_v9 = vpop.eup %1081  ;;  %528 = vst.msk [vmem:[#allocation2 + $0x18] sm:$0xf] %vm521_vm2, %v942_v45  ;;  %v479_v10 = vadd.f32 %v902_v37, %v464_v6  ;;  %v453_v11 = vmul.f32 %v1080_v7, %v1230_v63 }
 0x159   : > { %525 = vst.msk [vmem:[#allocation2 + $0xc] sm:$0xf] %vm521_vm2, %v939_v36  ;;  %v482_v12 = vadd.f32 %v902_v37, %v467_v8  ;;  %v450_v55 = vmul.f32 %v1082_v9, %v1222_v56 }
 0x15a   : > { %v940_v13 = vpack.c.bf16 %v479_v10, %v479_v10  ;;  %v468_v14 = vmul.f32 %v901_v29, %v453_v11 }
 0x15b   : > { %v943_v15 = vpack.c.bf16 %v482_v12, %v482_v12  ;;  %v465_v46 = vmul.f32 %v901_v29, %v450_v55 }
 0x15c   : > { %526 = vst.msk [vmem:[#allocation2 + $0x10] sm:$0xf] %vm521_vm2, %v940_v13  ;;  %v483_v16 = vadd.f32 %v902_v37, %v468_v14  ;;  %v1060_v17 = vld [vmem:[#allocation2] sm:$0xff]  }
 0x15d   : > { %529 = vst.msk [vmem:[#allocation2 + $0x1c] sm:$0xf] %vm521_vm2, %v943_v15  ;;  %v480_v18 = vadd.f32 %v902_v37, %v465_v46  ;;  %1008 = vmatmul.mubr.msk.bf16.vlgmr.msra.gmra.mrb[0].mxu0 %vm335_vm0, %v1060_v17 }
 0x15e   : > { %v944_v19 = vpack.c.bf16 %v483_v16, %v483_v16  ;;  %1011 = vmatprep.mubr.msk.bf16.mxu0 %vm1126_vm1, %v1125_v5 }
 0x15f   : > { %v941_v63 = vpack.c.bf16 %v480_v18, %v480_v18 }
 0x160   : > { %530 = vst.msk [vmem:[#allocation2 + $0x20] sm:$0xf] %vm521_vm2, %v944_v19  ;;  %v1061_v56 = vld [vmem:[#allocation2 + $0x8] sm:$0xff]  }
 0x161   : > { %527 = vst.msk [vmem:[#allocation2 + $0x14] sm:$0xf] %vm521_vm2, %v941_v63 }
 0x164   : > { %v1062_v20 = vld [vmem:[#allocation2 + $0x18] sm:$0xff]  }
 0x165   : > { %1012 = vmatmul.mubr.msk.bf16.gmra.mrb[4].mxu0 %vm335_vm0, %v1061_v56  ;;  %1020 = vmatmul.mubr.msk.bf16.vlgmr.msra.gmra.mrb[0].mxu1 %vm335_vm0, %v1062_v20 }
 0x166   : > { %1015 = vmatprep.mubr.msk.bf16.mxu0 %vm1126_vm1, %v1125_v5  ;;  %1023 = vmatprep.mubr.msk.bf16.mxu1 %vm1126_vm1, %v1125_v5 }
 0x167   : > { %v1064_v22 = vld [vmem:[#allocation2 + $0x20] ss:$0 sps:$4 sm:$0xff]  }
 0x168   : > { %v1063_v21 = vld [vmem:[#allocation2 + $0x10] sm:$0xff]  }
 0x16d   : > { %1016 = vmatmul.mubr.msk.bf16.gmra.mrb[8].mxu0 %vm335_vm0, %v1063_v21  ;;  %1024 = vmatmul.mubr.msk.bf16.gmra.mrb[4].mxu1 %vm335_vm0, %v1064_v22 }
 0x230   : > { %v636_v24 = vpop.f32.mrb[0].mxu0 }
 0x231   : > { %v637_v25 = vadd.f32 %v912_v23, %v636_v24  ;;  %v1009_v26 = vpop.f32.mrb[1].mxu0 }
 0x232   : > { %v639_v29 = vpop.f32.mrb[2].mxu0 }
 0x233   : > { %v683_v30 = vmul.f32 0.70710677, %v637_v25  ;;  %v640_v31 = vadd.f32 %v912_v23, %v639_v29  ;;  %v1010_v32 = vpop.f32.mrb[3].mxu0  ;;  %v674_v62 = vmul.f32 0.5, %v637_v25 }
 0x235   : > { %1083 = verf.f32 %v683_v30  ;;  %v684_v33 = vmul.f32 0.70710677, %v640_v31  ;;  %v675_v35 = vmul.f32 0.5, %v640_v31 }
 0x237   : > { %1085 = verf.f32 %v684_v33 }
 0x238   : > { %v644_v5 = vpop.f32.mrb[4].mxu0  ;;  %v660_v34 = vpop.f32.mrb[0].mxu1 }
 0x239   : > { %v645_v37 = vadd.f32 %v912_v23, %v644_v5  ;;  %v661_v38 = vadd.f32 %v912_v23, %v660_v34  ;;  %v1013_v39 = vpop.f32.mrb[5].mxu0  ;;  %v1021_v40 = vpop.f32.mrb[1].mxu1 }
 0x23a   : > { %v647_v41 = vpop.f32.mrb[6].mxu0  ;;  %v663_v42 = vpop.f32.mrb[2].mxu1 }
 0x23b   : > { %v685_v43 = vmul.f32 0.70710677, %v645_v37  ;;  %v689_v44 = vmul.f32 0.70710677, %v661_v38  ;;  %v648_v47 = vadd.f32 %v912_v23, %v647_v41  ;;  %v664_v48 = vadd.f32 %v912_v23, %v663_v42  ;;  %v1014_v27 = vpop.f32.mrb[7].mxu0  ;;  %v1022_v49 = vpop.f32.mrb[3].mxu1 }
 0x23c   : > { %v676_v46 = vmul.f32 0.5, %v645_v37  ;;  %v680_v18 = vmul.f32 0.5, %v661_v38 }
 0x23d   : > { %1087 = verf.f32 %v685_v43  ;;  %v686_v50 = vmul.f32 0.70710677, %v648_v47  ;;  %v690_v52 = vmul.f32 0.70710677, %v664_v48  ;;  %v677_v16 = vmul.f32 0.5, %v648_v47 }
 0x23e   : > { %1089 = verf.f32 %v689_v44  ;;  %v681_v19 = vmul.f32 0.5, %v664_v48 }
 0x23f   : > { %v1084_v51 = vpop.eup %1083  ;;  %1091 = verf.f32 %v686_v50 }
 0x240   : > { %v701_v53 = vadd.f32 1.0, %v1084_v51  ;;  %v652_v54 = vpop.f32.mrb[8].mxu0  ;;  %v668_v57 = vpop.f32.mrb[4].mxu1  ;;  %1093 = verf.f32 %v690_v52 }
 0x241   : > { %v1086_v58 = vpop.eup %1085  ;;  %v653_v59 = vadd.f32 %v912_v23, %v652_v54  ;;  %v669_v60 = vadd.f32 %v912_v23, %v668_v57  ;;  %v1017_v28 = vpop.f32.mrb[9].mxu0 }
 0x242   : > { %v1025_v61 = vpop.f32.mrb[5].mxu1  ;;  %v702_v0 = vadd.f32 1.0, %v1086_v58  ;;  %v655_v1 = vpop.f32.mrb[10].mxu0  ;;  %v710_v45 = vmul.f32 %v701_v53, %v674_v62 }
 0x243   : > { %v671_v2 = vpop.f32.mrb[6].mxu1  ;;  %v687_v3 = vmul.f32 0.70710677, %v653_v59  ;;  %v691_v4 = vmul.f32 0.70710677, %v669_v60  ;;  %v656_v7 = vadd.f32 %v912_v23, %v655_v1  ;;  %v1018_v36 = vpop.f32.mrb[11].mxu0 }
 0x244   : > { %v711_v6 = vmul.f32 %v702_v0, %v675_v35  ;;  %v1026_v8 = vpop.f32.mrb[7].mxu1  ;;  %v682_v30 = vmul.f32 0.5, %v669_v60  ;;  %v678_v33 = vmul.f32 0.5, %v653_v59 }
 0x245   : > { %1095 = verf.f32 %v687_v3  ;;  %v688_v10 = vmul.f32 0.70710677, %v656_v7  ;;  %v679_v34 = vmul.f32 0.5, %v656_v7 }
 0x246   : > { %v973_v9 = vpack.c.bf16 %v711_v6, %v710_v45  ;;  %1097 = verf.f32 %v691_v4 }
 0x247   : > { %v1088_v11 = vpop.eup %1087  ;;  %1099 = verf.f32 %v688_v10 }
 0x248   : > { %v1090_v12 = vpop.eup %1089  ;;  %974 = vst [vmem:[%s1294_s13] sm:$0xff] %v973_v9   ;;  %v703_v55 = vadd.f32 1.0, %v1088_v11 }
 0x249   : > { %v1092_v13 = vpop.eup %1091  ;;  %v707_v14 = vadd.f32 1.0, %v1090_v12 }
 0x24a   : > { %v1094_v15 = vpop.eup %1093  ;;  %v704_v17 = vadd.f32 1.0, %v1092_v13  ;;  %v712_v56 = vmul.f32 %v703_v55, %v676_v46 }
 0x24b   : > { %v708_v63 = vadd.f32 1.0, %v1094_v15  ;;  %v716_v21 = vmul.f32 %v707_v14, %v680_v18 }
 0x24c   : > { %v713_v20 = vmul.f32 %v704_v17, %v677_v16 }
 0x24d   : > { %v717_v22 = vmul.f32 %v708_v63, %v681_v19 }
 0x24e   : > { %v978_v24 = vpack.c.bf16 %v713_v20, %v712_v56 }
 0x24f   : > { %v1096_v23 = vpop.eup %1095  ;;  %v988_v26 = vpack.c.bf16 %v717_v22, %v716_v21 }
 0x250   : > { %v1098_v25 = vpop.eup %1097  ;;  %993 = vst [vmem:[%s1294_s13 + $0x8] sm:$0xff] %v978_v24   ;;  %v705_v29 = vadd.f32 1.0, %v1096_v23 }
 0x251   : > { %v709_v31 = vadd.f32 1.0, %v1098_v25  ;;  %v1100_v32 = vpop.eup %1099  ;;  %995 = vst [vmem:[%s1294_s13 + $0x18] sm:$0xff] %v988_v26  }
 0x252   : > { %v706_v37 = vadd.f32 1.0, %v1100_v32  ;;  %v714_v38 = vmul.f32 %v705_v29, %v678_v33 }
 0x253   : > { %v718_v5 = vmul.f32 %v709_v31, %v682_v30 }
 0x254   : > { %v715_v40 = vmul.f32 %v706_v37, %v679_v34 }
 0x255   : > { %v953_v39 = vpack.c.bf16 %v718_v5, %v718_v5 }
 0x256   : > { %v983_v41 = vpack.c.bf16 %v715_v40, %v714_v38 }
 0x257   : > { %764 = vst [vmem:[%s1294_s13 + $0x20] sm:$0xf] %v953_v39 }
 0x258   : > { %994 = vst [vmem:[%s1294_s13 + $0x10] sm:$0xff] %v983_v41  }
 0x259 PF: > { %s15_s20 = sadd.s32 1, %s1123_s20   ;;  %s1316_s18 = smov %s1119_s19 }
 0x25a   : > { %p12_p5 = scmp.ge.s32.totalorder %s15_s20, 4   ;;  %s1317_s19 = smov %s1319_s21 }
 0x25c   :  { %14 = sbr.rel (!%p12_p5) target bundleno = 2 (0x2), region = 80 }

// kernel: multimodal_gpt_forward.19
= control target key start
LH: loop header
LB: loop body
LE: loop exit
PB: predicated region body
PF: predicated region fallthrough
CT: control target
= control target key end

     0   :  { %s1209_s21 = smov 0   ;;  %s1211_s22 = smov 0   ;;  %s1474_s0 = inlined_call_operand.vmem [shape: bf16[2,72,128], index: 0, kind: input, shape index: {}]   ;;  %s1475_s1 = inlined_call_operand.vmem [shape: bf16[128,32], index: 1, kind: input, shape index: {}]   ;;  %s1476_s2 = inlined_call_operand.vmem [shape: f32[1,32], index: 2, kind: input, shape index: {}]   ;;  %s1477_s3 = inlined_call_operand.vmem [shape: bf16[2,72,32], index: 3, kind: input, shape index: {}]   ;;  %s1478_s4 = inlined_call_operand.vmem [shape: f32[1,32], index: 4, kind: input, shape index: {}]   ;;  %s1479_s5 = inlined_call_operand.vmem [shape: f32[1,32], index: 5, kind: input, shape index: {}]   ;;  %s1480_s6 = inlined_call_operand.vmem [shape: bf16[2,72,32], index: 6, kind: output, shape index: {}]  }
   0x1   :  { %s1213_s23 = smov 0  }
   0x2 LB: > { %s35_s24 = sadd.s32 1, %s1166_s22  ;;  %p966_p0 = scmp.ge.s32.totalorder %s1170_s23, 1  ;;  %s1170_s23 = sphi %s1213_s23, %s16_s23   ;;  %s1166_s22 = sphi %s1211_s22, %s1482_s22   ;;  %s1162_s21 = sphi %s1209_s21, %s1481_s21  }
   0x3   : > { %p37_p1 = scmp.ge.s32.totalorder %s35_s24, 2  ;;  %p273_p2 = scmp.lt.s32.totalorder %s1170_s23, 3 }
   0x5   : > { %s1484_s24 = smov (%p37_p1, %s35_s24), 0  ;;  %p274_p3 = pnand %p966_p0, %p273_p2 }
   0x6   : > { %v1117_v0 = vld [vmem:[%s1475_s1] sm:$0xff] (!%p274_p3)   ;;  %v1172_v1 = vmov (!%p274_p3), 0.0   ;;  %v1118_v2 = vld [vmem:[%s1475_s1 + $0x8] sm:$0xff] (!%p274_p3)   ;;  %p329_p4 = scmp.lt.s32.totalorder (!%p274_p3), %s1162_s21, 1  ;;  %vm372_vm0 = vcmask (!%p274_p3), 261120   ;;  %vm1173_vm1 = vmmov (!%p274_p3), 0  }
   0x7   : > { %277 = sbr.rel (%p274_p3) target bundleno = 603 (0x25b), region = 44  ;;  %1038 = vmatprep.subr.bf16.mxu0 (!%p274_p3), %v1172_v1  ;;  %1074 = vmatprep.subr.bf16.mxu1 (!%p274_p3), %v1172_v1  ;;  %373 = vst.msk [vmem:[#allocation2] sm:$0xff] (!%p274_p3), %vm372_vm0, %v1172_v1  ;;  %374 = vst.msk [vmem:[#allocation2 + $0x8] sm:$0xff] (!%p274_p3), %vm372_vm0, %v1172_v1  ;;  %v1119_v3 = vld [vmem:[%s1475_s1 + $0x10] sm:$0xff] (!%p274_p3)   ;;  %v1120_v4 = vld [vmem:[%s1475_s1 + $0x18] sm:$0xff] (!%p274_p3)   ;;  %vm825_vm2 = vcmask (!%p274_p3), 257024  }
   0x8   : > { %1039 = vmatpush3.bf16.msra.mxu0 (!%p274_p3), %v1117_v0  ;;  %1082 = vmatpush3.bf16.msra.mxu1 (!%p274_p3), %v1117_v0  ;;  %375 = vst.msk [vmem:[#allocation2 + $0x10] sm:$0xff] (!%p274_p3), %vm372_vm0, %v1172_v1  ;;  %376 = vst.msk [vmem:[#allocation2 + $0x18] sm:$0xff] (!%p274_p3), %vm372_vm0, %v1172_v1  ;;  %v1121_v5 = vld [vmem:[%s1475_s1 + $0x20] sm:$0xff] (!%p274_p3)   ;;  %v1122_v6 = vld [vmem:[%s1475_s1 + $0x28] sm:$0xff] (!%p274_p3)  }
   0x9   : > { %1040 = vmatprep.subr.bf16.mxu0 (!%p274_p3), %v1172_v1  ;;  %1075 = vmatprep.subr.bf16.mxu1 (!%p274_p3), %v1172_v1  ;;  %377 = vst.msk [vmem:[#allocation2 + $0x20] sm:$0xff] (!%p274_p3), %vm372_vm0, %v1172_v1  ;;  %378 = vst.msk [vmem:[#allocation2 + $0x28] sm:$0xff] (!%p274_p3), %vm372_vm0, %v1172_v1  ;;  %v1123_v7 = vld [vmem:[%s1475_s1 + $0x30] sm:$0xff] (!%p274_p3)   ;;  %v1124_v8 = vld [vmem:[%s1475_s1 + $0x38] sm:$0xff] (!%p274_p3)  }
   0xa   : > { %1054 = vmatprep.mubr.msk.bf16.mxu0 (!%p274_p3), %vm1173_vm1, %v1172_v1  ;;  %1066 = vmatprep.mubr.msk.bf16.mxu1 (!%p274_p3), %vm1173_vm1, %v1172_v1  ;;  %379 = vst.msk [vmem:[#allocation2 + $0x30] sm:$0xff] (!%p274_p3), %vm372_vm0, %v1172_v1  ;;  %380 = vst.msk [vmem:[#allocation2 + $0x38] sm:$0xff] (!%p274_p3), %vm372_vm0, %v1172_v1  ;;  %v1325_v36 = vld [vmem:[%s1476_s2] ss:$0 sm:$0xff] (!%p274_p3) }
   0xb   : > { %381 = vst.msk [vmem:[#allocation2 + $0x40] sm:$0xff] (!%p274_p3), %vm372_vm0, %v1172_v1 }
   0xc   : > { %1041 = vmatpush3.bf16.msra.mxu0 (!%p274_p3), %v1118_v2  ;;  %1083 = vmatpush3.bf16.msra.mxu1 (!%p274_p3), %v1118_v2 }
   0xd   : > { %1042 = vmatprep.subr.bf16.mxu0 (!%p274_p3), %v1172_v1  ;;  %1076 = vmatprep.subr.bf16.mxu1 (!%p274_p3), %v1172_v1 }
   0xe   : > { %s1486_s21 = smov (!%p329_p4, %s1162_s21), 1  ;;  %v382_v14 = vld [vmem:[#allocation2] sm:$0xff]  ;;  %v383_v17 = vld [vmem:[#allocation2 + $0x8] sm:$0xff] }
   0xf   : > { %s1262_s7 = smul.u32 36, %s1486_s21  ;;  %v384_v30 = vld [vmem:[#allocation2 + $0x10] sm:$0xff]  ;;  %v385_v35 = vld [vmem:[#allocation2 + $0x18] sm:$0xff] }
  0x10   : > { %1043 = vmatpush3.bf16.msra.mxu0 %v1119_v3  ;;  %1084 = vmatpush3.bf16.msra.mxu1 %v1119_v3  ;;  %v386_v56 = vld [vmem:[#allocation2 + $0x20] sm:$0xff]  ;;  %v387_v62 = vld [vmem:[#allocation2 + $0x28] sm:$0xff] }
  0x11   : > { %s1270_s10 = scalar_lea.vmem %s1474_s0, %s1262_s7  ;;  %1044 = vmatprep.subr.bf16.mxu0 %v1172_v1  ;;  %1077 = vmatprep.subr.bf16.mxu1 %v1172_v1  ;;  %v388_v15 = vld [vmem:[#allocation2 + $0x30] sm:$0xff]  ;;  %v389_v19 = vld [vmem:[#allocation2 + $0x38] sm:$0xff]  ;;  %s1314_s26 = scalar_lea.vmem %s1477_s3, %s1262_s7 }
  0x12   : > { %v1125_v9 = vld [vmem:[%s1270_s10] sm:$0xff]   ;;  %v1126_v10 = vld [vmem:[%s1270_s10 + $0x18] sm:$0xff]   ;;  %v1127_v11 = vld [vmem:[%s1270_s10 + $0x8] sm:$0xff]   ;;  %s1422_s12 = scalar_lea.vmem %s1480_s6, %s1262_s7 }
  0x13   : > { %v1129_v12 = vld [vmem:[%s1270_s10 + $0x20] ss:$0 sps:$4 sm:$0xff]   ;;  %v1128_v13 = vld [vmem:[%s1270_s10 + $0x10] sm:$0xff]   ;;  %v1320_v33 = vld [vmem:[%s1314_s26 + $0x18] sm:$0xff]  }
  0x14   : > { %1045 = vmatpush3.bf16.msra.mxu0 %v1120_v4  ;;  %1085 = vmatpush3.bf16.msra.mxu1 %v1120_v4  ;;  %v1007_v31 = vld [vmem:[%s1314_s26] sm:$0xff]   ;;  %v1020_v43 = vunpack.c.l.bf16 %v1320_v33  ;;  %v1022_v57 = vld [vmem:[%s1314_s26 + $0x8] sm:$0xff]  }
  0x15   : > { %1046 = vmatprep.subr.bf16.mxu0 %v1172_v1  ;;  %1078 = vmatprep.subr.bf16.mxu1 %v1172_v1  ;;  %v390_v32 = vld [vmem:[#allocation2 + $0x40] sm:$0xff]  ;;  %v1008_v40 = vunpack.c.l.bf16 %v1007_v31  ;;  %v1009_v60 = vunpack.c.h.bf16 %v1007_v31  ;;  %v1012_v2 = vunpack.c.l.bf16 %v1022_v57 }
  0x18   : > { %1047 = vmatpush3.bf16.msra.mxu0 %v1121_v5  ;;  %1086 = vmatpush3.bf16.msra.mxu1 %v1121_v5 }
  0x19   : > { %1048 = vmatprep.subr.bf16.mxu0 %v1172_v1  ;;  %1079 = vmatprep.subr.bf16.mxu1 %v1172_v1 }
  0x1c   : > { %1049 = vmatpush3.bf16.msra.mxu0 %v1122_v6  ;;  %1087 = vmatpush3.bf16.msra.mxu1 %v1122_v6 }
  0x1d   : > { %1050 = vmatprep.subr.bf16.mxu0 %v1172_v1  ;;  %1080 = vmatprep.subr.bf16.mxu1 %v1172_v1 }
  0x20   : > { %1051 = vmatpush3.bf16.msra.mxu0 %v1123_v7  ;;  %1088 = vmatpush3.bf16.msra.mxu1 %v1123_v7 }
  0x21   : > { %1052 = vmatprep.subr.bf16.mxu0 %v1172_v1  ;;  %1081 = vmatprep.subr.bf16.mxu1 %v1172_v1 }
  0x24   : > { %1053 = vmatpush3.bf16.msra.mxu0 %v1124_v8  ;;  %1089 = vmatpush3.bf16.msra.mxu1 %v1124_v8 }
  0x27   : > { %1055 = vmatmul.mubr.bf16.vlgmr.msra.gmra.mrb[0].mxu0 %v1125_v9  ;;  %1067 = vmatmul.mubr.bf16.vlgmr.msra.gmra.mrb[0].mxu1 %v1126_v10  ;;  %v1013_v9 = vunpack.c.h.bf16 %v1022_v57 }
  0x28   : > { %1058 = vmatprep.mubr.msk.bf16.mxu0 %vm1173_vm1, %v1172_v1  ;;  %1070 = vmatprep.mubr.msk.bf16.mxu1 %vm1173_vm1, %v1172_v1 }
  0x2f   : > { %1059 = vmatmul.mubr.bf16.gmra.mrb[4].mxu0 %v1127_v11  ;;  %1071 = vmatmul.mubr.bf16.gmra.mrb[4].mxu1 %v1129_v12 }
  0x30   : > { %1062 = vmatprep.mubr.msk.bf16.mxu0 %vm1173_vm1, %v1172_v1 }
  0x37   : > { %1063 = vmatmul.mubr.bf16.gmra.mrb[8].mxu0 %v1128_v13  ;;  %v1023_v13 = vld [vmem:[%s1314_s26 + $0x10] sm:$0xff]  }
  0xfa   : > { %v526_v16 = vpop.f32.mrb[0].mxu0  ;;  %v550_v18 = vpop.f32.mrb[0].mxu1 }
  0xfb   : > { %v564_v20 = vadd.f32 %v526_v16, %v382_v14  ;;  %v1056_v21 = vpop.f32.mrb[1].mxu0  ;;  %v570_v22 = vadd.f32 %v550_v18, %v388_v15  ;;  %v1068_v23 = vpop.f32.mrb[1].mxu1  ;;  %v619_v15 = vld [vmem:[%s1314_s26 + $0x20] sm:$0xf] }
  0xfc   : > { %v529_v24 = vpop.f32.mrb[2].mxu0  ;;  %v553_v25 = vpop.f32.mrb[2].mxu1  ;;  %v628_v21 = vunpack.c.l.bf16 %v619_v15 }
  0xfd   : > { %574 = vst.msk [vmem:[#allocation2] sm:$0xff] %vm372_vm0, %v564_v20  ;;  %v565_v26 = vadd.f32 %v529_v24, %v383_v17  ;;  %v1057_v27 = vpop.f32.mrb[3].mxu0  ;;  %580 = vst.msk [vmem:[#allocation2 + $0x30] sm:$0xff] %vm372_vm0, %v570_v22  ;;  %v571_v28 = vadd.f32 %v553_v25, %v389_v19  ;;  %v1069_v29 = vpop.f32.mrb[3].mxu1  ;;  %v1016_v19 = vunpack.c.l.bf16 %v1023_v13 }
  0xff   : > { %575 = vst.msk [vmem:[#allocation2 + $0x8] sm:$0xff] %vm372_vm0, %v565_v26  ;;  %581 = vst.msk [vmem:[#allocation2 + $0x38] sm:$0xff] %vm372_vm0, %v571_v28  ;;  %v1017_v26 = vunpack.c.h.bf16 %v1023_v13  ;;  %v1021_v28 = vunpack.c.h.bf16 %v1320_v33 }
 0x102   : > { %v534_v34 = vpop.f32.mrb[4].mxu0  ;;  %v558_v37 = vpop.f32.mrb[4].mxu1 }
 0x103   : > { %v566_v38 = vadd.f32 %v534_v34, %v384_v30  ;;  %v1060_v39 = vpop.f32.mrb[5].mxu0  ;;  %v572_v41 = vadd.f32 %v558_v37, %v390_v32  ;;  %v1072_v42 = vpop.f32.mrb[5].mxu1 }
 0x104   : > { %v537_v44 = vpop.f32.mrb[6].mxu0  ;;  %v586_v45 = vld [vmem:[#allocation2] sm:$0xff]  ;;  %v592_v46 = vld [vmem:[#allocation2 + $0x30] sm:$0xff]  ;;  %v561_v47 = vpop.f32.mrb[6].mxu1 }
 0x105   : > { %576 = vst.msk [vmem:[#allocation2 + $0x10] sm:$0xff] %vm372_vm0, %v566_v38  ;;  %v567_v48 = vadd.f32 %v537_v44, %v385_v35  ;;  %v1061_v49 = vpop.f32.mrb[7].mxu0  ;;  %v602_v50 = vadd.f32 %v1325_v36, %v586_v45  ;;  %582 = vst.msk [vmem:[#allocation2 + $0x40] sm:$0xff] %vm372_vm0, %v572_v41  ;;  %v608_v51 = vadd.f32 %v1325_v36, %v592_v46  ;;  %v1073_v52 = vpop.f32.mrb[7].mxu1 }
 0x106   : > { %v587_v53 = vld [vmem:[#allocation2 + $0x8] sm:$0xff]  ;;  %v593_v23 = vld [vmem:[#allocation2 + $0x38] sm:$0xff] }
 0x107   : > { %577 = vst.msk [vmem:[#allocation2 + $0x18] sm:$0xff] %vm372_vm0, %v567_v48  ;;  %v629_v54 = vadd.f32 %v1008_v40, %v602_v50  ;;  %v1333_v55 = vadd.f32 %v1020_v43, %v608_v51  ;;  %v603_v59 = vadd.f32 %v1325_v36, %v587_v53  ;;  %v609_v32 = vadd.f32 %v1325_v36, %v593_v23 }
 0x109   : > { %v640_v58 = vsel %vm372_vm0, %v629_v54, 0.0  ;;  %v658_v1 = vsel %vm372_vm0, %v1333_v55, 0.0  ;;  %v630_v7 = vadd.f32 %v1009_v60, %v603_v59  ;;  %v636_v39 = vadd.f32 %v1021_v28, %v609_v32 }
 0x10a   : > { %641 = vadd.xlane.f32.xlu0 %v640_v58  ;;  %v542_v61 = vpop.f32.mrb[8].mxu0 }
 0x10b   : > { %v568_v63 = vadd.f32 %v542_v61, %v386_v56  ;;  %v1064_v0 = vpop.f32.mrb[9].mxu0  ;;  %v643_v16 = vsel %vm372_vm0, %v630_v7, 0.0  ;;  %v661_v40 = vsel %vm372_vm0, %v636_v39, 0.0 }
 0x10c   : > { %v545_v3 = vpop.f32.mrb[10].mxu0  ;;  %v588_v4 = vld [vmem:[#allocation2 + $0x10] sm:$0xff]  ;;  %v594_v14 = vld [vmem:[#allocation2 + $0x40] sm:$0xff] }
 0x10d   : > { %578 = vst.msk [vmem:[#allocation2 + $0x20] sm:$0xff] %vm372_vm0, %v568_v63  ;;  %v569_v5 = vadd.f32 %v545_v3, %v387_v62  ;;  %v1065_v6 = vpop.f32.mrb[11].mxu0  ;;  %v604_v8 = vadd.f32 %v1325_v36, %v588_v4  ;;  %v610_v20 = vadd.f32 %v1325_v36, %v594_v14 }
 0x10e   : > { %659 = vadd.xlane.f32.xlu0 %v658_v1  ;;  %v589_v10 = vld [vmem:[#allocation2 + $0x18] sm:$0xff] }
 0x10f   : > { %579 = vst.msk [vmem:[#allocation2 + $0x28] sm:$0xff] %vm372_vm0, %v569_v5  ;;  %v631_v11 = vadd.f32 %v1012_v2, %v604_v8  ;;  %v605_v12 = vadd.f32 %v1325_v36, %v589_v10  ;;  %v637_v31 = vadd.f32 %v628_v21, %v610_v20 }
 0x111   : > { %v646_v17 = vsel %vm372_vm0, %v631_v11, 0.0  ;;  %v632_v18 = vadd.f32 %v1013_v9, %v605_v12  ;;  %v664_v38 = vsel %vm372_vm0, %v637_v31, 0.0 }
 0x112   : > { %644 = vadd.xlane.f32.xlu0 %v643_v16  ;;  %647 = vadd.xlane.f32.xlu1 %v646_v17 }
 0x113   : > { %v649_v24 = vsel %vm372_vm0, %v632_v18, 0.0 }
 0x114   : > { %v590_v22 = vld [vmem:[#allocation2 + $0x20] sm:$0xff] }
 0x115   : > { %v606_v25 = vadd.f32 %v1325_v36, %v590_v22 }
 0x116   : > { %650 = vadd.xlane.f32.xlu1 %v649_v24  ;;  %v591_v27 = vld [vmem:[#allocation2 + $0x28] sm:$0xff] }
 0x117   : > { %v633_v29 = vadd.f32 %v1016_v19, %v606_v25  ;;  %v607_v30 = vadd.f32 %v1325_v36, %v591_v27 }
 0x119   : > { %v652_v34 = vsel %vm372_vm0, %v633_v29, 0.0  ;;  %v634_v35 = vadd.f32 %v1017_v26, %v607_v30 }
 0x11a   : > { %653 = vadd.xlane.f32.xlu0 %v652_v34 }
 0x11b   : > { %v655_v37 = vsel %vm372_vm0, %v634_v35, 0.0 }
 0x11c   : > { %656 = vadd.xlane.f32.xlu1 %v655_v37  ;;  %v1407_v37 = vld [vmem:[%s1478_s4] ss:$0 sm:$0xff] }
 0x11e   : > { %665 = vadd.xlane.f32.xlu0 %v664_v38 }
 0x120   : > { %662 = vadd.xlane.f32.xlu1 %v661_v40 }
 0x197   : > { %v642_v33 = vpop.xlane.xlu0 %641 }
 0x198   : > { %v668_v41 = vmul.f32 0.03125, %v642_v33  ;;  %v1413_v33 = vld [vmem:[%s1479_s5] ss:$0 sm:$0xff] }
 0x19a   : > { %v1358_v42 = vsub.f32 %v629_v54, %v668_v41 }
 0x19b   : > { %v660_v43 = vpop.xlane.xlu0 %659 }
 0x19c   : > { %v674_v36 = vmul.f32 0.03125, %v660_v43  ;;  %v686_v44 = vmul.f32 %v1358_v42, %v1358_v42 }
 0x19e   : > { %v1363_v45 = vsub.f32 %v1333_v55, %v674_v36  ;;  %v695_v46 = vsel %vm372_vm0, %v686_v44, 0.0 }
 0x19f   : > { %v645_v47 = vpop.xlane.xlu0 %644  ;;  %v648_v48 = vpop.xlane.xlu1 %647  ;;  %696 = vadd.xlane.f32.xlu1 %v695_v46 }
 0x1a0   : > { %v669_v49 = vmul.f32 0.03125, %v645_v47  ;;  %v670_v50 = vmul.f32 0.03125, %v648_v48  ;;  %v692_v51 = vmul.f32 %v1363_v45, %v1363_v45 }
 0x1a2   : > { %v1368_v52 = vsub.f32 %v630_v7, %v669_v49  ;;  %v1370_v53 = vsub.f32 %v631_v11, %v670_v50  ;;  %v713_v54 = vsel %vm372_vm0, %v692_v51, 0.0 }
 0x1a3   : > { %v651_v56 = vpop.xlane.xlu1 %650  ;;  %714 = vadd.xlane.f32.xlu1 %v713_v54 }
 0x1a4   : > { %v671_v55 = vmul.f32 0.03125, %v651_v56  ;;  %v687_v57 = vmul.f32 %v1368_v52, %v1368_v52  ;;  %v688_v58 = vmul.f32 %v1370_v53, %v1370_v53 }
 0x1a6   : > { %v1377_v59 = vsub.f32 %v632_v18, %v671_v55  ;;  %v698_v60 = vsel %vm372_vm0, %v687_v57, 0.0  ;;  %v701_v61 = vsel %vm372_vm0, %v688_v58, 0.0 }
 0x1a7   : > { %699 = vadd.xlane.f32.xlu0 %v698_v60  ;;  %v654_v62 = vpop.xlane.xlu0 %653  ;;  %702 = vadd.xlane.f32.xlu1 %v701_v61 }
 0x1a8   : > { %v672_v63 = vmul.f32 0.03125, %v654_v62  ;;  %v689_v0 = vmul.f32 %v1377_v59, %v1377_v59 }
 0x1a9   : > { %v657_v1 = vpop.xlane.xlu1 %656 }
 0x1aa   : > { %v1383_v2 = vsub.f32 %v633_v29, %v672_v63  ;;  %v673_v3 = vmul.f32 0.03125, %v657_v1  ;;  %v704_v4 = vsel %vm372_vm0, %v689_v0, 0.0 }
 0x1ab   : > { %705 = vadd.xlane.f32.xlu0 %v704_v4  ;;  %v666_v5 = vpop.xlane.xlu0 %665 }
 0x1ac   : > { %v1386_v6 = vsub.f32 %v634_v35, %v673_v3  ;;  %v676_v7 = vmul.f32 0.03125, %v666_v5  ;;  %v690_v8 = vmul.f32 %v1383_v2, %v1383_v2 }
 0x1ad   : > { %v663_v9 = vpop.xlane.xlu1 %662 }
 0x1ae   : > { %v1390_v10 = vsub.f32 %v637_v31, %v676_v7  ;;  %v675_v11 = vmul.f32 0.03125, %v663_v9  ;;  %v707_v12 = vsel %vm372_vm0, %v690_v8, 0.0  ;;  %v691_v13 = vmul.f32 %v1386_v6, %v1386_v6 }
 0x1af   : > { %708 = vadd.xlane.f32.xlu1 %v707_v12 }
 0x1b0   : > { %v1395_v14 = vsub.f32 %v636_v39, %v675_v11  ;;  %v710_v15 = vsel %vm372_vm0, %v691_v13, 0.0  ;;  %v694_v16 = vmul.f32 %v1390_v10, %v1390_v10 }
 0x1b1   : > { %711 = vadd.xlane.f32.xlu0 %v710_v15 }
 0x1b2   : > { %v719_v17 = vsel %vm372_vm0, %v694_v16, 0.0  ;;  %v693_v18 = vmul.f32 %v1395_v14, %v1395_v14 }
 0x1b3   : > { %720 = vadd.xlane.f32.xlu1 %v719_v17 }
 0x1b4   : > { %v716_v19 = vsel %vm372_vm0, %v693_v18, 0.0 }
 0x1b5   : > { %717 = vadd.xlane.f32.xlu0 %v716_v19 }
 0x22c   : > { %v697_v20 = vpop.xlane.xlu1 %696 }
 0x22d   : > { %v722_v21 = vmul.f32 0.03125, %v697_v20 }
 0x22f   : > { %v731_v22 = vadd.f32 1e-05, %v722_v21 }
 0x230   : > { %v715_v23 = vpop.xlane.xlu1 %714 }
 0x231   : > { %1130 = vrsqrt.f32 %v731_v22  ;;  %v728_v24 = vmul.f32 0.03125, %v715_v23 }
 0x233   : > { %v737_v25 = vadd.f32 1e-05, %v728_v24 }
 0x234   : > { %v700_v26 = vpop.xlane.xlu0 %699  ;;  %v703_v27 = vpop.xlane.xlu1 %702 }
 0x235   : > { %1132 = vrsqrt.f32 %v737_v25  ;;  %v723_v28 = vmul.f32 0.03125, %v700_v26  ;;  %v724_v29 = vmul.f32 0.03125, %v703_v27 }
 0x237   : > { %v732_v30 = vadd.f32 1e-05, %v723_v28  ;;  %v733_v31 = vadd.f32 1e-05, %v724_v29 }
 0x238   : > { %v706_v32 = vpop.xlane.xlu0 %705 }
 0x239   : > { %1134 = vrsqrt.f32 %v732_v30  ;;  %v725_v34 = vmul.f32 0.03125, %v706_v32 }
 0x23a   : > { %1136 = vrsqrt.f32 %v733_v31 }
 0x23b   : > { %v1131_v35 = vpop.eup %1130  ;;  %v734_v38 = vadd.f32 1e-05, %v725_v34 }
 0x23c   : > { %v749_v39 = vmul.f32 %v1131_v35, %v1358_v42  ;;  %v709_v40 = vpop.xlane.xlu1 %708 }
 0x23d   : > { %1138 = vrsqrt.f32 %v734_v38  ;;  %v726_v41 = vmul.f32 0.03125, %v709_v40 }
 0x23e   : > { %v764_v43 = vmul.f32 %v1407_v37, %v749_v39  ;;  %v712_v36 = vpop.xlane.xlu0 %711 }
 0x23f   : > { %v1133_v44 = vpop.eup %1132  ;;  %v735_v46 = vadd.f32 1e-05, %v726_v41  ;;  %v727_v47 = vmul.f32 0.03125, %v712_v36 }
 0x240   : > { %v779_v48 = vadd.f32 %v1413_v33, %v764_v43  ;;  %v755_v49 = vmul.f32 %v1133_v44, %v1363_v45  ;;  %v721_v50 = vpop.xlane.xlu1 %720 }
 0x241   : > { %1140 = vrsqrt.f32 %v735_v46  ;;  %v736_v42 = vadd.f32 1e-05, %v727_v47  ;;  %v730_v51 = vmul.f32 0.03125, %v721_v50 }
 0x242   : > { %v997_v54 = vpack.c.bf16 %v779_v48, %v779_v48  ;;  %v770_v56 = vmul.f32 %v1407_v37, %v755_v49  ;;  %v718_v55 = vpop.xlane.xlu0 %717 }
 0x243   : > { %v1135_v57 = vpop.eup %1134  ;;  %1142 = vrsqrt.f32 %v736_v42  ;;  %v739_v58 = vadd.f32 1e-05, %v730_v51  ;;  %v729_v45 = vmul.f32 0.03125, %v718_v55 }
 0x244   : > { %v1137_v60 = vpop.eup %1136  ;;  %826 = vst.msk [vmem:[%s1422_s12] sm:$0xf] %vm825_vm2, %v997_v54  ;;  %v785_v61 = vadd.f32 %v1413_v33, %v770_v56  ;;  %v750_v62 = vmul.f32 %v1135_v57, %v1368_v52 }
 0x245   : > { %v751_v63 = vmul.f32 %v1137_v60, %v1370_v53  ;;  %1144 = vrsqrt.f32 %v739_v58  ;;  %v738_v0 = vadd.f32 1e-05, %v729_v45 }
 0x246   : > { %v1003_v1 = vpack.c.bf16 %v785_v61, %v785_v61  ;;  %v765_v3 = vmul.f32 %v1407_v37, %v750_v62 }
 0x247   : > { %v1139_v4 = vpop.eup %1138  ;;  %v766_v5 = vmul.f32 %v1407_v37, %v751_v63  ;;  %1146 = vrsqrt.f32 %v738_v0 }
 0x248   : > { %832 = vst.msk [vmem:[%s1422_s12 + $0x18] sm:$0xf] %vm825_vm2, %v1003_v1  ;;  %v780_v7 = vadd.f32 %v1413_v33, %v765_v3  ;;  %v752_v52 = vmul.f32 %v1139_v4, %v1377_v59 }
 0x249   : > { %v781_v53 = vadd.f32 %v1413_v33, %v766_v5 }
 0x24a   : > { %v998_v8 = vpack.c.bf16 %v780_v7, %v780_v7  ;;  %v767_v9 = vmul.f32 %v1407_v37, %v752_v52 }
 0x24b   : > { %v1141_v11 = vpop.eup %1140  ;;  %v999_v12 = vpack.c.bf16 %v781_v53, %v781_v53 }
 0x24c   : > { %827 = vst.msk [vmem:[%s1422_s12 + $0x4] sm:$0xf] %vm825_vm2, %v998_v8  ;;  %v782_v13 = vadd.f32 %v1413_v33, %v767_v9  ;;  %v753_v15 = vmul.f32 %v1141_v11, %v1383_v2 }
 0x24d   : > { %v1143_v16 = vpop.eup %1142  ;;  %828 = vst.msk [vmem:[%s1422_s12 + $0x8] sm:$0xf] %vm825_vm2, %v999_v12 }
 0x24e   : > { %v1000_v17 = vpack.c.bf16 %v782_v13, %v782_v13  ;;  %v768_v59 = vmul.f32 %v1407_v37, %v753_v15  ;;  %v754_v18 = vmul.f32 %v1143_v16, %v1386_v6 }
 0x24f   : > { %v1145_v19 = vpop.eup %1144 }
 0x250   : > { %829 = vst.msk [vmem:[%s1422_s12 + $0xc] sm:$0xf] %vm825_vm2, %v1000_v17  ;;  %v783_v20 = vadd.f32 %v1413_v33, %v768_v59  ;;  %v769_v21 = vmul.f32 %v1407_v37, %v754_v18  ;;  %v757_v2 = vmul.f32 %v1145_v19, %v1390_v10 }
 0x251   : > { %v1147_v22 = vpop.eup %1146 }
 0x252   : > { %v1001_v23 = vpack.c.bf16 %v783_v20, %v783_v20  ;;  %v784_v24 = vadd.f32 %v1413_v33, %v769_v21  ;;  %v772_v25 = vmul.f32 %v1407_v37, %v757_v2  ;;  %v756_v26 = vmul.f32 %v1147_v22, %v1395_v14 }
 0x254   : > { %830 = vst.msk [vmem:[%s1422_s12 + $0x10] sm:$0xf] %vm825_vm2, %v1001_v23  ;;  %v1002_v6 = vpack.c.bf16 %v784_v24, %v784_v24  ;;  %v787_v27 = vadd.f32 %v1413_v33, %v772_v25  ;;  %v771_v28 = vmul.f32 %v1407_v37, %v756_v26 }
 0x256   : > { %831 = vst.msk [vmem:[%s1422_s12 + $0x14] sm:$0xf] %vm825_vm2, %v1002_v6  ;;  %v1005_v29 = vpack.c.bf16 %v787_v27, %v787_v27  ;;  %v786_v10 = vadd.f32 %v1413_v33, %v771_v28 }
 0x258   : > { %834 = vst.msk [vmem:[%s1422_s12 + $0x20] sm:$0xf] %vm825_vm2, %v1005_v29  ;;  %v1004_v30 = vpack.c.bf16 %v786_v10, %v786_v10 }
 0x25a   : > { %833 = vst.msk [vmem:[%s1422_s12 + $0x1c] sm:$0xf] %vm825_vm2, %v1004_v30 }
 0x25b PF: > { %s16_s23 = sadd.s32 1, %s1170_s23   ;;  %s1481_s21 = smov %s1166_s22 }
 0x25c   : > { %p13_p5 = scmp.ge.s32.totalorder %s16_s23, 4   ;;  %s1482_s22 = smov %s1484_s24 }
 0x25e   :  { %15 = sbr.rel (!%p13_p5) target bundleno = 2 (0x2), region = 88 }

// kernel: multimodal_gpt_forward.25
= control target key start
LH: loop header
LB: loop body
LE: loop exit
PB: predicated region body
PF: predicated region fallthrough
CT: control target
= control target key end

     0   :  { %s588_s12 = smov 0   ;;  %s590_s13 = smov 0   ;;  %s646_s0 = inlined_call_operand.vmem [shape: bf16[2,72,32], index: 0, kind: input, shape index: {}]   ;;  %s647_s1 = inlined_call_operand.vmem [shape: bf16[32,128], index: 1, kind: input, shape index: {}]   ;;  %s648_s2 = inlined_call_operand.vmem [shape: f32[1,128], index: 2, kind: input, shape index: {}]   ;;  %s649_s3 = inlined_call_operand.vmem [shape: f32[2,72,128], index: 3, kind: output, shape index: {}]  }
   0x1   :  { %s592_s14 = smov 0  }
   0x2 LB: > { %s25_s15 = sadd.s32 1, %s560_s13  ;;  %p454_p0 = scmp.ge.s32.totalorder %s564_s14, 1  ;;  %s564_s14 = sphi %s592_s14, %s13_s14   ;;  %s560_s13 = sphi %s590_s13, %s651_s13   ;;  %s556_s12 = sphi %s588_s12, %s650_s12  }
   0x3   : > { %p27_p1 = scmp.ge.s32.totalorder %s25_s15, 2  ;;  %p158_p2 = scmp.lt.s32.totalorder %s564_s14, 3 }
   0x5   : > { %s653_s15 = smov (%p27_p1, %s25_s15), 0  ;;  %p159_p3 = pnand %p454_p0, %p158_p2 }
   0x6   : > { %v535_v0 = vld [vmem:[%s647_s1] sm:$0xff] (!%p159_p3)   ;;  %v566_v1 = vmov (!%p159_p3), 0.0   ;;  %v536_v2 = vld [vmem:[%s647_s1 + $0x8] sm:$0xff] (!%p159_p3)   ;;  %vm567_vm0 = vmmov (!%p159_p3), 0   ;;  %p191_p4 = scmp.lt.s32.totalorder (!%p159_p3), %s556_s12, 1  ;;  %vm266_vm1 = vcmask (!%p159_p3), 261120  }
   0x7   : > { %162 = sbr.rel (%p159_p3) target bundleno = 252 (0xfc), region = 32  ;;  %479 = vmatprep.subr.bf16.mxu0 (!%p159_p3), %v566_v1  ;;  %503 = vmatprep.subr.bf16.mxu1 (!%p159_p3), %v566_v1  ;;  %v457_v8 = vld [vmem:[%s648_s2] ss:$0 sm:$0xff] (!%p159_p3) }
   0x8   : > { %480 = vmatpush3.bf16.msra.mxu0 (!%p159_p3), %v535_v0  ;;  %483 = vmatprep.mubr.msk.bf16.mxu0 (!%p159_p3), %vm567_vm0, %v566_v1 }
   0x9   : > { %481 = vmatprep.subr.bf16.mxu0 (!%p159_p3), %v566_v1  ;;  %505 = vmatpush3.bf16.msra.mxu1 (!%p159_p3), %v535_v0 }
   0xa   : > { %504 = vmatprep.subr.bf16.mxu1 (!%p159_p3), %v566_v1  ;;  %495 = vmatprep.mubr.msk.bf16.mxu1 (!%p159_p3), %vm567_vm0, %v566_v1 }
   0xc   : > { %482 = vmatpush3.bf16.msra.mxu0 (!%p159_p3), %v536_v2 }
   0xd   : > { %506 = vmatpush3.bf16.msra.mxu1 (!%p159_p3), %v536_v2 }
   0xe   : > { %s655_s12 = smov (!%p191_p4, %s556_s12), 1 }
   0xf   : > { %s507_s20 = smul.u32 36, %s655_s12 }
  0x10   : > { %s508_s24 = smul.u32 72, %s655_s12 }
  0x11   : > { %s198_s23 = scalar_lea.vmem %s646_s0, %s507_s20 }
  0x12   : > { %v537_v3 = vld [vmem:[%s198_s23] sm:$0xff]   ;;  %v538_v4 = vld [vmem:[%s198_s23 + $0x18] sm:$0xff]   ;;  %v539_v5 = vld [vmem:[%s198_s23 + $0x8] sm:$0xff]   ;;  %s626_s29 = scalar_lea.vmem %s649_s3, %s508_s24 }
  0x13   : > { %484 = vmatmul.mubr.msk.bf16.vlgmr.msra.gmra.mrb[0].mxu0 %vm266_vm1, %v537_v3  ;;  %496 = vmatmul.mubr.msk.bf16.vlgmr.msra.gmra.mrb[0].mxu1 %vm266_vm1, %v538_v4  ;;  %v540_v6 = vld [vmem:[%s198_s23 + $0x20] ss:$0 sps:$4 sm:$0xff]   ;;  %v541_v7 = vld [vmem:[%s198_s23 + $0x10] sm:$0xff]  }
  0x14   : > { %487 = vmatprep.mubr.msk.bf16.mxu0 %vm567_vm0, %v566_v1  ;;  %499 = vmatprep.mubr.msk.bf16.mxu1 %vm567_vm0, %v566_v1 }
  0x1b   : > { %488 = vmatmul.mubr.msk.bf16.gmra.mrb[4].mxu0 %vm266_vm1, %v539_v5  ;;  %500 = vmatmul.mubr.msk.bf16.gmra.mrb[4].mxu1 %vm266_vm1, %v540_v6 }
  0x1c   : > { %491 = vmatprep.mubr.msk.bf16.mxu0 %vm567_vm0, %v566_v1 }
  0x23   : > { %492 = vmatmul.mubr.msk.bf16.gmra.mrb[8].mxu0 %vm266_vm1, %v541_v7 }
  0xe6   : > { %v316_v9 = vpop.f32.mrb[0].mxu0  ;;  %v340_v12 = vpop.f32.mrb[0].mxu1 }
  0xe7   : > { %v317_v10 = vadd.f32 %v457_v8, %v316_v9  ;;  %v485_v11 = vpop.f32.mrb[1].mxu0  ;;  %v341_v14 = vadd.f32 %v457_v8, %v340_v12  ;;  %v497_v15 = vpop.f32.mrb[1].mxu1 }
  0xe8   : > { %v319_v13 = vpop.f32.mrb[2].mxu0  ;;  %v343_v18 = vpop.f32.mrb[2].mxu1 }
  0xe9   : > { %354 = vst [vmem:[%s626_s29] sm:$0xff] %v317_v10  ;;  %v320_v16 = vadd.f32 %v457_v8, %v319_v13  ;;  %v486_v17 = vpop.f32.mrb[3].mxu0  ;;  %360 = vst [vmem:[%s626_s29 + $0x30] sm:$0xff] %v341_v14  ;;  %v344_v19 = vadd.f32 %v457_v8, %v343_v18  ;;  %v498_v20 = vpop.f32.mrb[3].mxu1 }
  0xeb   : > { %355 = vst [vmem:[%s626_s29 + $0x8] sm:$0xff] %v320_v16  ;;  %361 = vst [vmem:[%s626_s29 + $0x38] sm:$0xff] %v344_v19 }
  0xee   : > { %v324_v21 = vpop.f32.mrb[4].mxu0  ;;  %v348_v24 = vpop.f32.mrb[4].mxu1 }
  0xef   : > { %v325_v22 = vadd.f32 %v457_v8, %v324_v21  ;;  %v489_v23 = vpop.f32.mrb[5].mxu0  ;;  %v349_v26 = vadd.f32 %v457_v8, %v348_v24  ;;  %v501_v27 = vpop.f32.mrb[5].mxu1 }
  0xf0   : > { %v327_v25 = vpop.f32.mrb[6].mxu0  ;;  %v351_v30 = vpop.f32.mrb[6].mxu1 }
  0xf1   : > { %356 = vst [vmem:[%s626_s29 + $0x10] sm:$0xff] %v325_v22  ;;  %v328_v28 = vadd.f32 %v457_v8, %v327_v25  ;;  %v490_v29 = vpop.f32.mrb[7].mxu0  ;;  %362 = vst [vmem:[%s626_s29 + $0x40] sm:$0xff] %v349_v26  ;;  %v502_v31 = vpop.f32.mrb[7].mxu1 }
  0xf3   : > { %357 = vst [vmem:[%s626_s29 + $0x18] sm:$0xff] %v328_v28 }
  0xf6   : > { %v332_v32 = vpop.f32.mrb[8].mxu0 }
  0xf7   : > { %v333_v33 = vadd.f32 %v457_v8, %v332_v32  ;;  %v493_v34 = vpop.f32.mrb[9].mxu0 }
  0xf8   : > { %v335_v35 = vpop.f32.mrb[10].mxu0 }
  0xf9   : > { %358 = vst [vmem:[%s626_s29 + $0x20] sm:$0xff] %v333_v33  ;;  %v336_v36 = vadd.f32 %v457_v8, %v335_v35  ;;  %v494_v37 = vpop.f32.mrb[11].mxu0 }
  0xfb   : > { %359 = vst [vmem:[%s626_s29 + $0x28] sm:$0xff] %v336_v36 }
  0xfc PF: > { %s13_s14 = sadd.s32 1, %s564_s14   ;;  %s650_s12 = smov %s560_s13 }
  0xfd   : > { %p10_p5 = scmp.ge.s32.totalorder %s13_s14, 4   ;;  %s651_s13 = smov %s653_s15 }
  0xff   :  { %12 = sbr.rel (!%p10_p5) target bundleno = 2 (0x2), region = 62 }

</bundles_post_ra>
